<compile_context>
chip_gen: v7x
topology: tpu7x:2x2x1
jax: 0.10.0
libtpu: 0.0.40
codegen_flags: <defaults>
</compile_context>

<pallas_src>
import numpy as np
import jax
import jax.numpy as jnp
from jax.experimental import pallas as pl
from jax.experimental.pallas import tpu as pltpu

# ----------------------------- configuration --------------------------------
N_NODES    = 16          # 8 users + 8 items
N_USERS    = 8
IN_NFEATS  = 4           # conv0 in_node_feats=4
IN_EFEATS  = 8           # edge feature dim
OUT_NFEATS = 32          # conv0 out_node_feats (=> lin1 in = 32*4*2 = 256)
NUM_RELS   = 8           # etypes [0..7]
HID        = 32          # RelGraphConv hidden
LIN1_OUT   = 128
LANE       = 128         # lane-dense output width


def _vmem_spec():
    return pl.BlockSpec(memory_space=pltpu.MemorySpace.VMEM)


def _smem_spec():
    return pl.BlockSpec(memory_space=pltpu.MemorySpace.SMEM)


def _leaky(v):
    return jnp.where(v > 0, v, 0.01 * v)


def _elu(v):
    return jnp.where(v > 0, v, jnp.exp(v) - 1.0)


def _sigmoid(v):
    return 1.0 / (1.0 + jnp.exp(-v))


# ----------------------------- fused forward kernel -------------------------
def cgmc_fused_kernel(
    # VMEM inputs
    x_ref, xT_ref, adj_ref, eft_ref,
    wn_ref, a_dst_row_ref, v_asrc_ref, v_wesrc_ref, we_dstT_ref,
    w0_ref, ws0_ref, b0_ref,
    w1_ref, ws1_ref, b1_ref,
    w2_ref, ws2_ref, b2_ref,
    lin1_w_ref, lin1_b_ref, lin2_w_row_ref,
    # SMEM inputs (scalar tables)
    ae_ref, we_e_ref, be_ref, lin2_b_ref,
    # output
    out_ref,
):
    f32 = jnp.float32
    x   = x_ref[...]          # [N, Cin]
    xT  = xT_ref[...]         # [Cin, N]
    adj = adj_ref[...]        # [N, N]

    # per-edge-feature [N, N] planes (leading axis = feature)
    eft = [eft_ref[f] for f in range(IN_EFEATS)]

    # ---------------- CGAT-like attention conv (conv0) ----------------------
    H = jnp.dot(x, wn_ref[...], preferred_element_type=f32)          # [N, D]

    # attention logits: VPU multiply + lane/sublane reductions (no MXU)
    s_dst = jnp.sum(H * a_dst_row_ref[...], axis=1, keepdims=True)   # [N, 1]
    s_src = jnp.sum(xT * v_asrc_ref[...], axis=0, keepdims=True)     # [1, N]

    esc = ae_ref[0] * eft[0]
    for f in range(1, IN_EFEATS):
        esc = esc + ae_ref[f] * eft[f]                               # [N, N]

    logits = _leaky(s_dst + s_src + esc)
    mask = adj > 0.0
    masked = jnp.where(mask, logits, jnp.full_like(logits, -1e30))
    m = jnp.max(masked, axis=-1, keepdims=True)
    p = jnp.where(mask, jnp.exp(masked - m), 0.0)
    denom = jnp.sum(p, axis=-1, keepdims=True) + 1e-9
    attn = p / denom
    x0 = _elu(jnp.dot(attn, H, preferred_element_type=f32))          # [N, D]

    # ---------------- per-relation edge gates & weighted adjacency ----------
    we_dstT = we_dstT_ref[...]      # [R, D]
    v_wesrc = v_wesrc_ref[...]      # [Cin, R]
    A = []
    for r in range(NUM_RELS):
        eef_r = we_e_ref[0, r] * eft[0]
        for f in range(1, IN_EFEATS):
            eef_r = eef_r + we_e_ref[f, r] * eft[f]                  # [N, N]
        edst_r = jnp.sum(H * we_dstT[r:r + 1, :], axis=1, keepdims=True)   # [N,1]
        esrc_r = jnp.sum(xT * v_wesrc[:, r:r + 1], axis=0, keepdims=True)  # [1,N]
        gate_r = _sigmoid(_leaky(eef_r + edst_r + esrc_r + be_ref[r]))
        A.append(adj * gate_r)                                       # [N, N]

    # ---------------- 3x RelGraphConv (unrolled relation loop) --------------
    rgcn = [(w0_ref, ws0_ref, b0_ref),
            (w1_ref, ws1_ref, b1_ref),
            (w2_ref, ws2_ref, b2_ref)]
    hs = [x0]
    h = x0
    for (w_ref, ws_ref, b_ref) in rgcn:
        acc = jnp.dot(h, ws_ref[...], preferred_element_type=f32) + b_ref[...]
        for r in range(NUM_RELS):
            msg = jnp.dot(h, w_ref[r], preferred_element_type=f32)   # [N, HID]
            acc = acc + jnp.dot(A[r], msg, preferred_element_type=f32)
        h = _elu(acc)
        hs.append(h)

    # ---------------- MLP head on [user_states | item_states] ---------------
    # feat = concat([states[:U], states[U:]], 1); done implicitly by slicing
    # lin1_w into per-layer-state 32-row blocks (avoids in-kernel concat).
    h_lin = lin1_b_ref[...]                                          # [1, 128]
    for k, hk in enumerate(hs):
        wu = lin1_w_ref[OUT_NFEATS * k: OUT_NFEATS * (k + 1), :]
        wi = lin1_w_ref[4 * OUT_NFEATS + OUT_NFEATS * k:
                        4 * OUT_NFEATS + OUT_NFEATS * (k + 1), :]
        h_lin = h_lin + jnp.dot(hk[:N_USERS], wu, preferred_element_type=f32)
        h_lin = h_lin + jnp.dot(hk[N_USERS:], wi, preferred_element_type=f32)
    h_lin = jnp.maximum(h_lin, 0.0)                                  # [U, 128]

    # lin2 as a lane reduction (avoids a K=128, N=1 MXU matmul)
    y = jnp.sum(h_lin * lin2_w_row_ref[...], axis=1, keepdims=True) + lin2_b_ref[0]
    y = _sigmoid(y)                                                  # [U, 1]

    # lane-dense output slab (unmasked store); wrapper takes column 0
    out_ref[...] = jnp.broadcast_to(y, (N_USERS, LANE))


# ----------------------------- wrapper ---------------------------------------
def cgmc_forward(params, node_x, adj, ef):
    N = node_x.shape[0]
    assert N == N_NODES and N_USERS * 2 == N

    # host-side layout plumbing (tiny): transposes & parameter re-combinations
    xT         = node_x.T                                  # [Cin, N]
    eft        = jnp.transpose(ef, (2, 0, 1))              # [Fe, N, N]
    a_dst_row  = params["a_dst"].T                         # [1, D]
    v_asrc     = jnp.dot(params["wn"], params["a_src"].T)  # [Cin, 1]
    v_wesrc    = jnp.dot(params["wn"], params["we_src"])   # [Cin, R]
    we_dstT    = params["we_dst"].T                        # [R, D]
    lin2_w_row = params["lin2_w"].T                        # [1, 128]
    lin2_b     = params["lin2_b"].reshape(1)               # [1]

    vm_inputs = [
        node_x, xT, adj, eft,
        params["wn"], a_dst_row, v_asrc, v_wesrc, we_dstT,
        params["rgcn0_w"], params["rgcn0_wself"], params["rgcn0_b"],
        params["rgcn1_w"], params["rgcn1_wself"], params["rgcn1_b"],
        params["rgcn2_w"], params["rgcn2_wself"], params["rgcn2_b"],
        params["lin1_w"], params["lin1_b"], lin2_w_row,
    ]
    sm_inputs = [params["ae"], params["we_e"], params["be"], lin2_b]

    out = pl.pallas_call(
        cgmc_fused_kernel,
        out_shape=jax.ShapeDtypeStruct((N_USERS, LANE), jnp.float32),
        in_specs=[_vmem_spec() for _ in vm_inputs] + [_smem_spec() for _ in sm_inputs],
        out_specs=_vmem_spec(),
        # NOTE(v7x): for real utilization, batch many subgraphs and add a
        # leading 'parallel' grid axis; a single 16-node graph cannot use the
        # second TensorCore.
    )(*vm_inputs, *sm_inputs)
    return out[:, 0]


# ----------------------------- parameter init --------------------------------
def init_params(key):
    ks = jax.random.split(key, 24)
    s = 0.1
    p = {
        "wn":     s * jax.random.normal(ks[0], (IN_NFEATS, OUT_NFEATS), jnp.float32),
        "a_src":  s * jax.random.normal(ks[1], (1, OUT_NFEATS), jnp.float32),
        "a_dst":  s * jax.random.normal(ks[2], (OUT_NFEATS, 1), jnp.float32),
        "ae":     s * jax.random.normal(ks[3], (IN_EFEATS,), jnp.float32),
        "we_src": s * jax.random.normal(ks[4], (OUT_NFEATS, NUM_RELS), jnp.float32),
        "we_dst": s * jax.random.normal(ks[5], (OUT_NFEATS, NUM_RELS), jnp.float32),
        "we_e":   s * jax.random.normal(ks[6], (IN_EFEATS, NUM_RELS), jnp.float32),
        "be":     s * jax.random.normal(ks[7], (NUM_RELS,), jnp.float32),
        "lin1_w": s * jax.random.normal(ks[8], (OUT_NFEATS * 4 * 2, LIN1_OUT), jnp.float32),
        "lin1_b": s * jax.random.normal(ks[9], (1, LIN1_OUT), jnp.float32),
        "lin2_w": s * jax.random.normal(ks[10], (LIN1_OUT, 1), jnp.float32),
        "lin2_b": s * jax.random.normal(ks[11], (1, 1), jnp.float32),
    }
    din = OUT_NFEATS
    for l in range(3):
        p[f"rgcn{l}_w"] = s * jax.random.normal(ks[12 + 3 * l], (NUM_RELS, din, HID), jnp.float32)
        p[f"rgcn{l}_wself"] = s * jax.random.normal(ks[13 + 3 * l], (din, HID), jnp.float32)
        p[f"rgcn{l}_b"] = s * jax.random.normal(ks[14 + 3 * l], (1, HID), jnp.float32)
        din = HID
    return p


if __name__ == "__main__":
    key = jax.random.PRNGKey(0)
    kx, ke, kp = jax.random.split(key, 3)

    # synthetic bipartite subgraph: users [0..7], items [8..15], fully connected
    # user<->item both directions (edge_mask == 1 everywhere, eval mode).
    node_x = jax.random.normal(kx, (N_NODES, IN_NFEATS), jnp.float32)
    adj_np = np.zeros((N_NODES, N_NODES), np.float32)
    adj_np[:N_USERS, N_USERS:] = 1.0   # item -> user messages
    adj_np[N_USERS:, :N_USERS] = 1.0   # user -> item messages
    adj = jnp.asarray(adj_np)
    ef = jax.random.normal(ke, (N_NODES, N_NODES, IN_EFEATS), jnp.float32)
    ef = ef * adj[:, :, None]          # edge features only where edges exist

    params = init_params(kp)

    fwd = jax.jit(cgmc_forward)
    out = fwd(params, node_x, adj, ef)
    out = jax.block_until_ready(out)
    assert out.shape == (N_USERS,)
    assert bool(jnp.all(jnp.isfinite(out)))
    print("KERNEL_OK")
</pallas_src>

<mosaic_0001>
module attributes {stable_mosaic.version = 11 : i64} {
  func.func @cgmc_fused_kernel(%arg0: memref<16x4xf32, #tpu.memory_space<vmem>>, %arg1: memref<4x16xf32, #tpu.memory_space<vmem>>, %arg2: memref<16x16xf32, #tpu.memory_space<vmem>>, %arg3: memref<8x16x16xf32, #tpu.memory_space<vmem>>, %arg4: memref<4x32xf32, #tpu.memory_space<vmem>>, %arg5: memref<1x32xf32, #tpu.memory_space<vmem>>, %arg6: memref<4x1xf32, #tpu.memory_space<vmem>>, %arg7: memref<4x8xf32, #tpu.memory_space<vmem>>, %arg8: memref<8x32xf32, #tpu.memory_space<vmem>>, %arg9: memref<8x32x32xf32, #tpu.memory_space<vmem>>, %arg10: memref<32x32xf32, #tpu.memory_space<vmem>>, %arg11: memref<1x32xf32, #tpu.memory_space<vmem>>, %arg12: memref<8x32x32xf32, #tpu.memory_space<vmem>>, %arg13: memref<32x32xf32, #tpu.memory_space<vmem>>, %arg14: memref<1x32xf32, #tpu.memory_space<vmem>>, %arg15: memref<8x32x32xf32, #tpu.memory_space<vmem>>, %arg16: memref<32x32xf32, #tpu.memory_space<vmem>>, %arg17: memref<1x32xf32, #tpu.memory_space<vmem>>, %arg18: memref<256x128xf32, #tpu.memory_space<vmem>>, %arg19: memref<1x128xf32, #tpu.memory_space<vmem>>, %arg20: memref<1x128xf32, #tpu.memory_space<vmem>>, %arg21: memref<8xf32, #tpu.memory_space<smem>>, %arg22: memref<8x8xf32, #tpu.memory_space<smem>>, %arg23: memref<8xf32, #tpu.memory_space<smem>>, %arg24: memref<1xf32, #tpu.memory_space<smem>>, %arg25: memref<8x128xf32, #tpu.memory_space<vmem>>) attributes {dimension_semantics = [], scalar_prefetch = 0 : i64, scratch_operands = 0 : i64, tpu.core_type = #tpu.core_type<tc>} {
    %c0 = arith.constant 0 : index
    %c0_0 = arith.constant 0 : index
    %0 = vector.load %arg0[%c0, %c0_0] : memref<16x4xf32, #tpu.memory_space<vmem>>, vector<16x4xf32>
    %c0_1 = arith.constant 0 : index
    %c0_2 = arith.constant 0 : index
    %1 = vector.load %arg1[%c0_1, %c0_2] : memref<4x16xf32, #tpu.memory_space<vmem>>, vector<4x16xf32>
    %c0_3 = arith.constant 0 : index
    %c0_4 = arith.constant 0 : index
    %2 = vector.load %arg2[%c0_3, %c0_4] : memref<16x16xf32, #tpu.memory_space<vmem>>, vector<16x16xf32>
    %c0_5 = arith.constant 0 : index
    %c0_6 = arith.constant 0 : index
    %c0_7 = arith.constant 0 : index
    %3 = vector.load %arg3[%c0_5, %c0_6, %c0_7] : memref<8x16x16xf32, #tpu.memory_space<vmem>>, vector<1x16x16xf32>
    %4 = vector.shape_cast %3 : vector<1x16x16xf32> to vector<16x16xf32>
    %c1 = arith.constant 1 : index
    %c0_8 = arith.constant 0 : index
    %c0_9 = arith.constant 0 : index
    %5 = vector.load %arg3[%c1, %c0_8, %c0_9] : memref<8x16x16xf32, #tpu.memory_space<vmem>>, vector<1x16x16xf32>
    %6 = vector.shape_cast %5 : vector<1x16x16xf32> to vector<16x16xf32>
    %c2 = arith.constant 2 : index
    %c0_10 = arith.constant 0 : index
    %c0_11 = arith.constant 0 : index
    %7 = vector.load %arg3[%c2, %c0_10, %c0_11] : memref<8x16x16xf32, #tpu.memory_space<vmem>>, vector<1x16x16xf32>
    %8 = vector.shape_cast %7 : vector<1x16x16xf32> to vector<16x16xf32>
    %c3 = arith.constant 3 : index
    %c0_12 = arith.constant 0 : index
    %c0_13 = arith.constant 0 : index
    %9 = vector.load %arg3[%c3, %c0_12, %c0_13] : memref<8x16x16xf32, #tpu.memory_space<vmem>>, vector<1x16x16xf32>
    %10 = vector.shape_cast %9 : vector<1x16x16xf32> to vector<16x16xf32>
    %c4 = arith.constant 4 : index
    %c0_14 = arith.constant 0 : index
    %c0_15 = arith.constant 0 : index
    %11 = vector.load %arg3[%c4, %c0_14, %c0_15] : memref<8x16x16xf32, #tpu.memory_space<vmem>>, vector<1x16x16xf32>
    %12 = vector.shape_cast %11 : vector<1x16x16xf32> to vector<16x16xf32>
    %c5 = arith.constant 5 : index
    %c0_16 = arith.constant 0 : index
    %c0_17 = arith.constant 0 : index
    %13 = vector.load %arg3[%c5, %c0_16, %c0_17] : memref<8x16x16xf32, #tpu.memory_space<vmem>>, vector<1x16x16xf32>
    %14 = vector.shape_cast %13 : vector<1x16x16xf32> to vector<16x16xf32>
    %c6 = arith.constant 6 : index
    %c0_18 = arith.constant 0 : index
    %c0_19 = arith.constant 0 : index
    %15 = vector.load %arg3[%c6, %c0_18, %c0_19] : memref<8x16x16xf32, #tpu.memory_space<vmem>>, vector<1x16x16xf32>
    %16 = vector.shape_cast %15 : vector<1x16x16xf32> to vector<16x16xf32>
    %c7 = arith.constant 7 : index
    %c0_20 = arith.constant 0 : index
    %c0_21 = arith.constant 0 : index
    %17 = vector.load %arg3[%c7, %c0_20, %c0_21] : memref<8x16x16xf32, #tpu.memory_space<vmem>>, vector<1x16x16xf32>
    %18 = vector.shape_cast %17 : vector<1x16x16xf32> to vector<16x16xf32>
    %c0_22 = arith.constant 0 : index
    %c0_23 = arith.constant 0 : index
    %19 = vector.load %arg4[%c0_22, %c0_23] : memref<4x32xf32, #tpu.memory_space<vmem>>, vector<4x32xf32>
    %cst = arith.constant dense<0.000000e+00> : vector<16x32xf32>
    %20 = tpu.matmul %0, %19, %cst {dimension_numbers = #tpu.dot_dimension_numbers<[1], [0], [0], [1], [0, 0, 1, 1], [], []>} : vector<16x4xf32>, vector<4x32xf32>, vector<16x32xf32> -> vector<16x32xf32>
    %c0_24 = arith.constant 0 : index
    %c0_25 = arith.constant 0 : index
    %21 = vector.load %arg5[%c0_24, %c0_25] : memref<1x32xf32, #tpu.memory_space<vmem>>, vector<1x32xf32>
    %22 = vector.broadcast %21 : vector<1x32xf32> to vector<16x32xf32>
    %23 = arith.mulf %20, %22 : vector<16x32xf32>
    %cst_26 = arith.constant dense<0.000000e+00> : vector<16xf32>
    %24 = vector.multi_reduction <add>, %23, %cst_26 [1] : vector<16x32xf32> to vector<16xf32>
    %25 = vector.shape_cast %24 : vector<16xf32> to vector<16x1xf32>
    %c0_27 = arith.constant 0 : index
    %c0_28 = arith.constant 0 : index
    %26 = vector.load %arg6[%c0_27, %c0_28] : memref<4x1xf32, #tpu.memory_space<vmem>>, vector<4x1xf32>
    %27 = vector.broadcast %26 : vector<4x1xf32> to vector<4x16xf32>
    %28 = arith.mulf %1, %27 : vector<4x16xf32>
    %cst_29 = arith.constant dense<0.000000e+00> : vector<16xf32>
    %29 = vector.multi_reduction <add>, %28, %cst_29 [0] : vector<4x16xf32> to vector<16xf32>
    %30 = vector.shape_cast %29 : vector<16xf32> to vector<1x16xf32>
    %c0_30 = arith.constant 0 : index
    %31 = memref.load %arg21[%c0_30] : memref<8xf32, #tpu.memory_space<smem>>
    %32 = vector.broadcast %31 : f32 to vector<16x16xf32>
    %33 = arith.mulf %32, %4 : vector<16x16xf32>
    %c1_31 = arith.constant 1 : index
    %34 = memref.load %arg21[%c1_31] : memref<8xf32, #tpu.memory_space<smem>>
    %35 = vector.broadcast %34 : f32 to vector<16x16xf32>
    %36 = arith.mulf %35, %6 : vector<16x16xf32>
    %37 = arith.addf %33, %36 : vector<16x16xf32>
    %c2_32 = arith.constant 2 : index
    %38 = memref.load %arg21[%c2_32] : memref<8xf32, #tpu.memory_space<smem>>
    %39 = vector.broadcast %38 : f32 to vector<16x16xf32>
    %40 = arith.mulf %39, %8 : vector<16x16xf32>
    %41 = arith.addf %37, %40 : vector<16x16xf32>
    %c3_33 = arith.constant 3 : index
    %42 = memref.load %arg21[%c3_33] : memref<8xf32, #tpu.memory_space<smem>>
    %43 = vector.broadcast %42 : f32 to vector<16x16xf32>
    %44 = arith.mulf %43, %10 : vector<16x16xf32>
    %45 = arith.addf %41, %44 : vector<16x16xf32>
    %c4_34 = arith.constant 4 : index
    %46 = memref.load %arg21[%c4_34] : memref<8xf32, #tpu.memory_space<smem>>
    %47 = vector.broadcast %46 : f32 to vector<16x16xf32>
    %48 = arith.mulf %47, %12 : vector<16x16xf32>
    %49 = arith.addf %45, %48 : vector<16x16xf32>
    %c5_35 = arith.constant 5 : index
    %50 = memref.load %arg21[%c5_35] : memref<8xf32, #tpu.memory_space<smem>>
    %51 = vector.broadcast %50 : f32 to vector<16x16xf32>
    %52 = arith.mulf %51, %14 : vector<16x16xf32>
    %53 = arith.addf %49, %52 : vector<16x16xf32>
    %c6_36 = arith.constant 6 : index
    %54 = memref.load %arg21[%c6_36] : memref<8xf32, #tpu.memory_space<smem>>
    %55 = vector.broadcast %54 : f32 to vector<16x16xf32>
    %56 = arith.mulf %55, %16 : vector<16x16xf32>
    %57 = arith.addf %53, %56 : vector<16x16xf32>
    %c7_37 = arith.constant 7 : index
    %58 = memref.load %arg21[%c7_37] : memref<8xf32, #tpu.memory_space<smem>>
    %59 = vector.broadcast %58 : f32 to vector<16x16xf32>
    %60 = arith.mulf %59, %18 : vector<16x16xf32>
    %61 = arith.addf %57, %60 : vector<16x16xf32>
    %62 = vector.broadcast %25 : vector<16x1xf32> to vector<16x16xf32>
    %63 = vector.broadcast %30 : vector<1x16xf32> to vector<16x16xf32>
    %64 = arith.addf %62, %63 : vector<16x16xf32>
    %65 = arith.addf %64, %61 : vector<16x16xf32>
    %cst_38 = arith.constant 0.000000e+00 : f32
    %66 = vector.broadcast %cst_38 : f32 to vector<16x16xf32>
    %67 = arith.cmpf ogt, %65, %66 : vector<16x16xf32>
    %cst_39 = arith.constant 0.00999999977 : f32
    %68 = vector.broadcast %cst_39 : f32 to vector<16x16xf32>
    %69 = arith.mulf %68, %65 : vector<16x16xf32>
    %70 = arith.select %67, %65, %69 : vector<16x16xi1>, vector<16x16xf32>
    %cst_40 = arith.constant 0.000000e+00 : f32
    %71 = vector.broadcast %cst_40 : f32 to vector<16x16xf32>
    %72 = arith.cmpf ogt, %2, %71 : vector<16x16xf32>
    %cst_41 = arith.constant -1.000000e+30 : f32
    %73 = vector.broadcast %cst_41 : f32 to vector<16x16xf32>
    %74 = arith.select %72, %70, %73 : vector<16x16xi1>, vector<16x16xf32>
    %cst_42 = arith.constant dense<0xFF800000> : vector<16xf32>
    %75 = vector.multi_reduction <maximumf>, %74, %cst_42 [1] : vector<16x16xf32> to vector<16xf32>
    %76 = vector.shape_cast %75 : vector<16xf32> to vector<16x1xf32>
    %77 = vector.broadcast %76 : vector<16x1xf32> to vector<16x16xf32>
    %78 = arith.subf %74, %77 : vector<16x16xf32>
    %79 = math.exp %78 : vector<16x16xf32>
    %cst_43 = arith.constant 0.000000e+00 : f32
    %80 = vector.broadcast %cst_43 : f32 to vector<16x16xf32>
    %81 = arith.select %72, %79, %80 : vector<16x16xi1>, vector<16x16xf32>
    %cst_44 = arith.constant dense<0.000000e+00> : vector<16xf32>
    %82 = vector.multi_reduction <add>, %81, %cst_44 [1] : vector<16x16xf32> to vector<16xf32>
    %83 = vector.shape_cast %82 : vector<16xf32> to vector<16x1xf32>
    %cst_45 = arith.constant 9.99999971E-10 : f32
    %84 = vector.broadcast %cst_45 : f32 to vector<16x1xf32>
    %85 = arith.addf %83, %84 : vector<16x1xf32>
    %86 = vector.broadcast %85 : vector<16x1xf32> to vector<16x16xf32>
    %87 = arith.divf %81, %86 : vector<16x16xf32>
    %cst_46 = arith.constant dense<0.000000e+00> : vector<16x32xf32>
    %88 = tpu.matmul %87, %20, %cst_46 {dimension_numbers = #tpu.dot_dimension_numbers<[1], [0], [0], [1], [0, 0, 1, 1], [], []>} : vector<16x16xf32>, vector<16x32xf32>, vector<16x32xf32> -> vector<16x32xf32>
    %cst_47 = arith.constant 0.000000e+00 : f32
    %89 = vector.broadcast %cst_47 : f32 to vector<16x32xf32>
    %90 = arith.cmpf ogt, %88, %89 : vector<16x32xf32>
    %91 = math.exp %88 : vector<16x32xf32>
    %cst_48 = arith.constant 1.000000e+00 : f32
    %92 = vector.broadcast %cst_48 : f32 to vector<16x32xf32>
    %93 = arith.subf %91, %92 : vector<16x32xf32>
    %94 = arith.select %90, %88, %93 : vector<16x32xi1>, vector<16x32xf32>
    %c0_49 = arith.constant 0 : index
    %c0_50 = arith.constant 0 : index
    %95 = vector.load %arg8[%c0_49, %c0_50] : memref<8x32xf32, #tpu.memory_space<vmem>>, vector<8x32xf32>
    %c0_51 = arith.constant 0 : index
    %c0_52 = arith.constant 0 : index
    %96 = vector.load %arg7[%c0_51, %c0_52] : memref<4x8xf32, #tpu.memory_space<vmem>>, vector<4x8xf32>
    %c0_53 = arith.constant 0 : index
    %c0_54 = arith.constant 0 : index
    %97 = memref.load %arg22[%c0_53, %c0_54] : memref<8x8xf32, #tpu.memory_space<smem>>
    %98 = vector.broadcast %97 : f32 to vector<16x16xf32>
    %99 = arith.mulf %98, %4 : vector<16x16xf32>
    %c1_55 = arith.constant 1 : index
    %c0_56 = arith.constant 0 : index
    %100 = memref.load %arg22[%c1_55, %c0_56] : memref<8x8xf32, #tpu.memory_space<smem>>
    %101 = vector.broadcast %100 : f32 to vector<16x16xf32>
    %102 = arith.mulf %101, %6 : vector<16x16xf32>
    %103 = arith.addf %99, %102 : vector<16x16xf32>
    %c2_57 = arith.constant 2 : index
    %c0_58 = arith.constant 0 : index
    %104 = memref.load %arg22[%c2_57, %c0_58] : memref<8x8xf32, #tpu.memory_space<smem>>
    %105 = vector.broadcast %104 : f32 to vector<16x16xf32>
    %106 = arith.mulf %105, %8 : vector<16x16xf32>
    %107 = arith.addf %103, %106 : vector<16x16xf32>
    %c3_59 = arith.constant 3 : index
    %c0_60 = arith.constant 0 : index
    %108 = memref.load %arg22[%c3_59, %c0_60] : memref<8x8xf32, #tpu.memory_space<smem>>
    %109 = vector.broadcast %108 : f32 to vector<16x16xf32>
    %110 = arith.mulf %109, %10 : vector<16x16xf32>
    %111 = arith.addf %107, %110 : vector<16x16xf32>
    %c4_61 = arith.constant 4 : index
    %c0_62 = arith.constant 0 : index
    %112 = memref.load %arg22[%c4_61, %c0_62] : memref<8x8xf32, #tpu.memory_space<smem>>
    %113 = vector.broadcast %112 : f32 to vector<16x16xf32>
    %114 = arith.mulf %113, %12 : vector<16x16xf32>
    %115 = arith.addf %111, %114 : vector<16x16xf32>
    %c5_63 = arith.constant 5 : index
    %c0_64 = arith.constant 0 : index
    %116 = memref.load %arg22[%c5_63, %c0_64] : memref<8x8xf32, #tpu.memory_space<smem>>
    %117 = vector.broadcast %116 : f32 to vector<16x16xf32>
    %118 = arith.mulf %117, %14 : vector<16x16xf32>
    %119 = arith.addf %115, %118 : vector<16x16xf32>
    %c6_65 = arith.constant 6 : index
    %c0_66 = arith.constant 0 : index
    %120 = memref.load %arg22[%c6_65, %c0_66] : memref<8x8xf32, #tpu.memory_space<smem>>
    %121 = vector.broadcast %120 : f32 to vector<16x16xf32>
    %122 = arith.mulf %121, %16 : vector<16x16xf32>
    %123 = arith.addf %119, %122 : vector<16x16xf32>
    %c7_67 = arith.constant 7 : index
    %c0_68 = arith.constant 0 : index
    %124 = memref.load %arg22[%c7_67, %c0_68] : memref<8x8xf32, #tpu.memory_space<smem>>
    %125 = vector.broadcast %124 : f32 to vector<16x16xf32>
    %126 = arith.mulf %125, %18 : vector<16x16xf32>
    %127 = arith.addf %123, %126 : vector<16x16xf32>
    %128 = vector.extract_strided_slice %95 {offsets = [0, 0], sizes = [1, 32], strides = [1, 1]} : vector<8x32xf32> to vector<1x32xf32>
    %129 = vector.broadcast %128 : vector<1x32xf32> to vector<16x32xf32>
    %130 = arith.mulf %20, %129 : vector<16x32xf32>
    %cst_69 = arith.constant dense<0.000000e+00> : vector<16xf32>
    %131 = vector.multi_reduction <add>, %130, %cst_69 [1] : vector<16x32xf32> to vector<16xf32>
    %132 = vector.shape_cast %131 : vector<16xf32> to vector<16x1xf32>
    %133 = vector.extract_strided_slice %96 {offsets = [0, 0], sizes = [4, 1], strides = [1, 1]} : vector<4x8xf32> to vector<4x1xf32>
    %134 = vector.broadcast %133 : vector<4x1xf32> to vector<4x16xf32>
    %135 = arith.mulf %1, %134 : vector<4x16xf32>
    %cst_70 = arith.constant dense<0.000000e+00> : vector<16xf32>
    %136 = vector.multi_reduction <add>, %135, %cst_70 [0] : vector<4x16xf32> to vector<16xf32>
    %137 = vector.shape_cast %136 : vector<16xf32> to vector<1x16xf32>
    %138 = vector.broadcast %132 : vector<16x1xf32> to vector<16x16xf32>
    %139 = arith.addf %127, %138 : vector<16x16xf32>
    %140 = vector.broadcast %137 : vector<1x16xf32> to vector<16x16xf32>
    %141 = arith.addf %139, %140 : vector<16x16xf32>
    %c0_71 = arith.constant 0 : index
    %142 = memref.load %arg23[%c0_71] : memref<8xf32, #tpu.memory_space<smem>>
    %143 = vector.broadcast %142 : f32 to vector<16x16xf32>
    %144 = arith.addf %141, %143 : vector<16x16xf32>
    %cst_72 = arith.constant 0.000000e+00 : f32
    %145 = vector.broadcast %cst_72 : f32 to vector<16x16xf32>
    %146 = arith.cmpf ogt, %144, %145 : vector<16x16xf32>
    %cst_73 = arith.constant 0.00999999977 : f32
    %147 = vector.broadcast %cst_73 : f32 to vector<16x16xf32>
    %148 = arith.mulf %147, %144 : vector<16x16xf32>
    %149 = arith.select %146, %144, %148 : vector<16x16xi1>, vector<16x16xf32>
    %cst_74 = arith.constant 0.000000e+00 : f32
    %150 = vector.broadcast %cst_74 : f32 to vector<16x16xf32>
    %151 = arith.subf %150, %149 : vector<16x16xf32>
    %152 = math.exp %151 : vector<16x16xf32>
    %cst_75 = arith.constant 1.000000e+00 : f32
    %153 = vector.broadcast %cst_75 : f32 to vector<16x16xf32>
    %154 = arith.addf %153, %152 : vector<16x16xf32>
    %cst_76 = arith.constant 1.000000e+00 : f32
    %155 = vector.broadcast %cst_76 : f32 to vector<16x16xf32>
    %156 = arith.divf %155, %154 : vector<16x16xf32>
    %157 = arith.mulf %2, %156 : vector<16x16xf32>
    %c0_77 = arith.constant 0 : index
    %c1_78 = arith.constant 1 : index
    %158 = memref.load %arg22[%c0_77, %c1_78] : memref<8x8xf32, #tpu.memory_space<smem>>
    %159 = vector.broadcast %158 : f32 to vector<16x16xf32>
    %160 = arith.mulf %159, %4 : vector<16x16xf32>
    %c1_79 = arith.constant 1 : index
    %c1_80 = arith.constant 1 : index
    %161 = memref.load %arg22[%c1_79, %c1_80] : memref<8x8xf32, #tpu.memory_space<smem>>
    %162 = vector.broadcast %161 : f32 to vector<16x16xf32>
    %163 = arith.mulf %162, %6 : vector<16x16xf32>
    %164 = arith.addf %160, %163 : vector<16x16xf32>
    %c2_81 = arith.constant 2 : index
    %c1_82 = arith.constant 1 : index
    %165 = memref.load %arg22[%c2_81, %c1_82] : memref<8x8xf32, #tpu.memory_space<smem>>
    %166 = vector.broadcast %165 : f32 to vector<16x16xf32>
    %167 = arith.mulf %166, %8 : vector<16x16xf32>
    %168 = arith.addf %164, %167 : vector<16x16xf32>
    %c3_83 = arith.constant 3 : index
    %c1_84 = arith.constant 1 : index
    %169 = memref.load %arg22[%c3_83, %c1_84] : memref<8x8xf32, #tpu.memory_space<smem>>
    %170 = vector.broadcast %169 : f32 to vector<16x16xf32>
    %171 = arith.mulf %170, %10 : vector<16x16xf32>
    %172 = arith.addf %168, %171 : vector<16x16xf32>
    %c4_85 = arith.constant 4 : index
    %c1_86 = arith.constant 1 : index
    %173 = memref.load %arg22[%c4_85, %c1_86] : memref<8x8xf32, #tpu.memory_space<smem>>
    %174 = vector.broadcast %173 : f32 to vector<16x16xf32>
    %175 = arith.mulf %174, %12 : vector<16x16xf32>
    %176 = arith.addf %172, %175 : vector<16x16xf32>
    %c5_87 = arith.constant 5 : index
    %c1_88 = arith.constant 1 : index
    %177 = memref.load %arg22[%c5_87, %c1_88] : memref<8x8xf32, #tpu.memory_space<smem>>
    %178 = vector.broadcast %177 : f32 to vector<16x16xf32>
    %179 = arith.mulf %178, %14 : vector<16x16xf32>
    %180 = arith.addf %176, %179 : vector<16x16xf32>
    %c6_89 = arith.constant 6 : index
    %c1_90 = arith.constant 1 : index
    %181 = memref.load %arg22[%c6_89, %c1_90] : memref<8x8xf32, #tpu.memory_space<smem>>
    %182 = vector.broadcast %181 : f32 to vector<16x16xf32>
    %183 = arith.mulf %182, %16 : vector<16x16xf32>
    %184 = arith.addf %180, %183 : vector<16x16xf32>
    %c7_91 = arith.constant 7 : index
    %c1_92 = arith.constant 1 : index
    %185 = memref.load %arg22[%c7_91, %c1_92] : memref<8x8xf32, #tpu.memory_space<smem>>
    %186 = vector.broadcast %185 : f32 to vector<16x16xf32>
    %187 = arith.mulf %186, %18 : vector<16x16xf32>
    %188 = arith.addf %184, %187 : vector<16x16xf32>
    %189 = vector.extract_strided_slice %95 {offsets = [1, 0], sizes = [1, 32], strides = [1, 1]} : vector<8x32xf32> to vector<1x32xf32>
    %190 = vector.broadcast %189 : vector<1x32xf32> to vector<16x32xf32>
    %191 = arith.mulf %20, %190 : vector<16x32xf32>
    %cst_93 = arith.constant dense<0.000000e+00> : vector<16xf32>
    %192 = vector.multi_reduction <add>, %191, %cst_93 [1] : vector<16x32xf32> to vector<16xf32>
    %193 = vector.shape_cast %192 : vector<16xf32> to vector<16x1xf32>
    %194 = vector.extract_strided_slice %96 {offsets = [0, 1], sizes = [4, 1], strides = [1, 1]} : vector<4x8xf32> to vector<4x1xf32>
    %195 = vector.broadcast %194 : vector<4x1xf32> to vector<4x16xf32>
    %196 = arith.mulf %1, %195 : vector<4x16xf32>
    %cst_94 = arith.constant dense<0.000000e+00> : vector<16xf32>
    %197 = vector.multi_reduction <add>, %196, %cst_94 [0] : vector<4x16xf32> to vector<16xf32>
    %198 = vector.shape_cast %197 : vector<16xf32> to vector<1x16xf32>
    %199 = vector.broadcast %193 : vector<16x1xf32> to vector<16x16xf32>
    %200 = arith.addf %188, %199 : vector<16x16xf32>
    %201 = vector.broadcast %198 : vector<1x16xf32> to vector<16x16xf32>
    %202 = arith.addf %200, %201 : vector<16x16xf32>
    %c1_95 = arith.constant 1 : index
    %203 = memref.load %arg23[%c1_95] : memref<8xf32, #tpu.memory_space<smem>>
    %204 = vector.broadcast %203 : f32 to vector<16x16xf32>
    %205 = arith.addf %202, %204 : vector<16x16xf32>
    %cst_96 = arith.constant 0.000000e+00 : f32
    %206 = vector.broadcast %cst_96 : f32 to vector<16x16xf32>
    %207 = arith.cmpf ogt, %205, %206 : vector<16x16xf32>
    %cst_97 = arith.constant 0.00999999977 : f32
    %208 = vector.broadcast %cst_97 : f32 to vector<16x16xf32>
    %209 = arith.mulf %208, %205 : vector<16x16xf32>
    %210 = arith.select %207, %205, %209 : vector<16x16xi1>, vector<16x16xf32>
    %cst_98 = arith.constant 0.000000e+00 : f32
    %211 = vector.broadcast %cst_98 : f32 to vector<16x16xf32>
    %212 = arith.subf %211, %210 : vector<16x16xf32>
    %213 = math.exp %212 : vector<16x16xf32>
    %cst_99 = arith.constant 1.000000e+00 : f32
    %214 = vector.broadcast %cst_99 : f32 to vector<16x16xf32>
    %215 = arith.addf %214, %213 : vector<16x16xf32>
    %cst_100 = arith.constant 1.000000e+00 : f32
    %216 = vector.broadcast %cst_100 : f32 to vector<16x16xf32>
    %217 = arith.divf %216, %215 : vector<16x16xf32>
    %218 = arith.mulf %2, %217 : vector<16x16xf32>
    %c0_101 = arith.constant 0 : index
    %c2_102 = arith.constant 2 : index
    %219 = memref.load %arg22[%c0_101, %c2_102] : memref<8x8xf32, #tpu.memory_space<smem>>
    %220 = vector.broadcast %219 : f32 to vector<16x16xf32>
    %221 = arith.mulf %220, %4 : vector<16x16xf32>
    %c1_103 = arith.constant 1 : index
    %c2_104 = arith.constant 2 : index
    %222 = memref.load %arg22[%c1_103, %c2_104] : memref<8x8xf32, #tpu.memory_space<smem>>
    %223 = vector.broadcast %222 : f32 to vector<16x16xf32>
    %224 = arith.mulf %223, %6 : vector<16x16xf32>
    %225 = arith.addf %221, %224 : vector<16x16xf32>
    %c2_105 = arith.constant 2 : index
    %c2_106 = arith.constant 2 : index
    %226 = memref.load %arg22[%c2_105, %c2_106] : memref<8x8xf32, #tpu.memory_space<smem>>
    %227 = vector.broadcast %226 : f32 to vector<16x16xf32>
    %228 = arith.mulf %227, %8 : vector<16x16xf32>
    %229 = arith.addf %225, %228 : vector<16x16xf32>
    %c3_107 = arith.constant 3 : index
    %c2_108 = arith.constant 2 : index
    %230 = memref.load %arg22[%c3_107, %c2_108] : memref<8x8xf32, #tpu.memory_space<smem>>
    %231 = vector.broadcast %230 : f32 to vector<16x16xf32>
    %232 = arith.mulf %231, %10 : vector<16x16xf32>
    %233 = arith.addf %229, %232 : vector<16x16xf32>
    %c4_109 = arith.constant 4 : index
    %c2_110 = arith.constant 2 : index
    %234 = memref.load %arg22[%c4_109, %c2_110] : memref<8x8xf32, #tpu.memory_space<smem>>
    %235 = vector.broadcast %234 : f32 to vector<16x16xf32>
    %236 = arith.mulf %235, %12 : vector<16x16xf32>
    %237 = arith.addf %233, %236 : vector<16x16xf32>
    %c5_111 = arith.constant 5 : index
    %c2_112 = arith.constant 2 : index
    %238 = memref.load %arg22[%c5_111, %c2_112] : memref<8x8xf32, #tpu.memory_space<smem>>
    %239 = vector.broadcast %238 : f32 to vector<16x16xf32>
    %240 = arith.mulf %239, %14 : vector<16x16xf32>
    %241 = arith.addf %237, %240 : vector<16x16xf32>
    %c6_113 = arith.constant 6 : index
    %c2_114 = arith.constant 2 : index
    %242 = memref.load %arg22[%c6_113, %c2_114] : memref<8x8xf32, #tpu.memory_space<smem>>
    %243 = vector.broadcast %242 : f32 to vector<16x16xf32>
    %244 = arith.mulf %243, %16 : vector<16x16xf32>
    %245 = arith.addf %241, %244 : vector<16x16xf32>
    %c7_115 = arith.constant 7 : index
    %c2_116 = arith.constant 2 : index
    %246 = memref.load %arg22[%c7_115, %c2_116] : memref<8x8xf32, #tpu.memory_space<smem>>
    %247 = vector.broadcast %246 : f32 to vector<16x16xf32>
    %248 = arith.mulf %247, %18 : vector<16x16xf32>
    %249 = arith.addf %245, %248 : vector<16x16xf32>
    %250 = vector.extract_strided_slice %95 {offsets = [2, 0], sizes = [1, 32], strides = [1, 1]} : vector<8x32xf32> to vector<1x32xf32>
    %251 = vector.broadcast %250 : vector<1x32xf32> to vector<16x32xf32>
    %252 = arith.mulf %20, %251 : vector<16x32xf32>
    %cst_117 = arith.constant dense<0.000000e+00> : vector<16xf32>
    %253 = vector.multi_reduction <add>, %252, %cst_117 [1] : vector<16x32xf32> to vector<16xf32>
    %254 = vector.shape_cast %253 : vector<16xf32> to vector<16x1xf32>
    %255 = vector.extract_strided_slice %96 {offsets = [0, 2], sizes = [4, 1], strides = [1, 1]} : vector<4x8xf32> to vector<4x1xf32>
    %256 = vector.broadcast %255 : vector<4x1xf32> to vector<4x16xf32>
    %257 = arith.mulf %1, %256 : vector<4x16xf32>
    %cst_118 = arith.constant dense<0.000000e+00> : vector<16xf32>
    %258 = vector.multi_reduction <add>, %257, %cst_118 [0] : vector<4x16xf32> to vector<16xf32>
    %259 = vector.shape_cast %258 : vector<16xf32> to vector<1x16xf32>
    %260 = vector.broadcast %254 : vector<16x1xf32> to vector<16x16xf32>
    %261 = arith.addf %249, %260 : vector<16x16xf32>
    %262 = vector.broadcast %259 : vector<1x16xf32> to vector<16x16xf32>
    %263 = arith.addf %261, %262 : vector<16x16xf32>
    %c2_119 = arith.constant 2 : index
    %264 = memref.load %arg23[%c2_119] : memref<8xf32, #tpu.memory_space<smem>>
    %265 = vector.broadcast %264 : f32 to vector<16x16xf32>
    %266 = arith.addf %263, %265 : vector<16x16xf32>
    %cst_120 = arith.constant 0.000000e+00 : f32
    %267 = vector.broadcast %cst_120 : f32 to vector<16x16xf32>
    %268 = arith.cmpf ogt, %266, %267 : vector<16x16xf32>
    %cst_121 = arith.constant 0.00999999977 : f32
    %269 = vector.broadcast %cst_121 : f32 to vector<16x16xf32>
    %270 = arith.mulf %269, %266 : vector<16x16xf32>
    %271 = arith.select %268, %266, %270 : vector<16x16xi1>, vector<16x16xf32>
    %cst_122 = arith.constant 0.000000e+00 : f32
    %272 = vector.broadcast %cst_122 : f32 to vector<16x16xf32>
    %273 = arith.subf %272, %271 : vector<16x16xf32>
    %274 = math.exp %273 : vector<16x16xf32>
    %cst_123 = arith.constant 1.000000e+00 : f32
    %275 = vector.broadcast %cst_123 : f32 to vector<16x16xf32>
    %276 = arith.addf %275, %274 : vector<16x16xf32>
    %cst_124 = arith.constant 1.000000e+00 : f32
    %277 = vector.broadcast %cst_124 : f32 to vector<16x16xf32>
    %278 = arith.divf %277, %276 : vector<16x16xf32>
    %279 = arith.mulf %2, %278 : vector<16x16xf32>
    %c0_125 = arith.constant 0 : index
    %c3_126 = arith.constant 3 : index
    %280 = memref.load %arg22[%c0_125, %c3_126] : memref<8x8xf32, #tpu.memory_space<smem>>
    %281 = vector.broadcast %280 : f32 to vector<16x16xf32>
    %282 = arith.mulf %281, %4 : vector<16x16xf32>
    %c1_127 = arith.constant 1 : index
    %c3_128 = arith.constant 3 : index
    %283 = memref.load %arg22[%c1_127, %c3_128] : memref<8x8xf32, #tpu.memory_space<smem>>
    %284 = vector.broadcast %283 : f32 to vector<16x16xf32>
    %285 = arith.mulf %284, %6 : vector<16x16xf32>
    %286 = arith.addf %282, %285 : vector<16x16xf32>
    %c2_129 = arith.constant 2 : index
    %c3_130 = arith.constant 3 : index
    %287 = memref.load %arg22[%c2_129, %c3_130] : memref<8x8xf32, #tpu.memory_space<smem>>
    %288 = vector.broadcast %287 : f32 to vector<16x16xf32>
    %289 = arith.mulf %288, %8 : vector<16x16xf32>
    %290 = arith.addf %286, %289 : vector<16x16xf32>
    %c3_131 = arith.constant 3 : index
    %c3_132 = arith.constant 3 : index
    %291 = memref.load %arg22[%c3_131, %c3_132] : memref<8x8xf32, #tpu.memory_space<smem>>
    %292 = vector.broadcast %291 : f32 to vector<16x16xf32>
    %293 = arith.mulf %292, %10 : vector<16x16xf32>
    %294 = arith.addf %290, %293 : vector<16x16xf32>
    %c4_133 = arith.constant 4 : index
    %c3_134 = arith.constant 3 : index
    %295 = memref.load %arg22[%c4_133, %c3_134] : memref<8x8xf32, #tpu.memory_space<smem>>
    %296 = vector.broadcast %295 : f32 to vector<16x16xf32>
    %297 = arith.mulf %296, %12 : vector<16x16xf32>
    %298 = arith.addf %294, %297 : vector<16x16xf32>
    %c5_135 = arith.constant 5 : index
    %c3_136 = arith.constant 3 : index
    %299 = memref.load %arg22[%c5_135, %c3_136] : memref<8x8xf32, #tpu.memory_space<smem>>
    %300 = vector.broadcast %299 : f32 to vector<16x16xf32>
    %301 = arith.mulf %300, %14 : vector<16x16xf32>
    %302 = arith.addf %298, %301 : vector<16x16xf32>
    %c6_137 = arith.constant 6 : index
    %c3_138 = arith.constant 3 : index
    %303 = memref.load %arg22[%c6_137, %c3_138] : memref<8x8xf32, #tpu.memory_space<smem>>
    %304 = vector.broadcast %303 : f32 to vector<16x16xf32>
    %305 = arith.mulf %304, %16 : vector<16x16xf32>
    %306 = arith.addf %302, %305 : vector<16x16xf32>
    %c7_139 = arith.constant 7 : index
    %c3_140 = arith.constant 3 : index
    %307 = memref.load %arg22[%c7_139, %c3_140] : memref<8x8xf32, #tpu.memory_space<smem>>
    %308 = vector.broadcast %307 : f32 to vector<16x16xf32>
    %309 = arith.mulf %308, %18 : vector<16x16xf32>
    %310 = arith.addf %306, %309 : vector<16x16xf32>
    %311 = vector.extract_strided_slice %95 {offsets = [3, 0], sizes = [1, 32], strides = [1, 1]} : vector<8x32xf32> to vector<1x32xf32>
    %312 = vector.broadcast %311 : vector<1x32xf32> to vector<16x32xf32>
    %313 = arith.mulf %20, %312 : vector<16x32xf32>
    %cst_141 = arith.constant dense<0.000000e+00> : vector<16xf32>
    %314 = vector.multi_reduction <add>, %313, %cst_141 [1] : vector<16x32xf32> to vector<16xf32>
    %315 = vector.shape_cast %314 : vector<16xf32> to vector<16x1xf32>
    %316 = vector.extract_strided_slice %96 {offsets = [0, 3], sizes = [4, 1], strides = [1, 1]} : vector<4x8xf32> to vector<4x1xf32>
    %317 = vector.broadcast %316 : vector<4x1xf32> to vector<4x16xf32>
    %318 = arith.mulf %1, %317 : vector<4x16xf32>
    %cst_142 = arith.constant dense<0.000000e+00> : vector<16xf32>
    %319 = vector.multi_reduction <add>, %318, %cst_142 [0] : vector<4x16xf32> to vector<16xf32>
    %320 = vector.shape_cast %319 : vector<16xf32> to vector<1x16xf32>
    %321 = vector.broadcast %315 : vector<16x1xf32> to vector<16x16xf32>
    %322 = arith.addf %310, %321 : vector<16x16xf32>
    %323 = vector.broadcast %320 : vector<1x16xf32> to vector<16x16xf32>
    %324 = arith.addf %322, %323 : vector<16x16xf32>
    %c3_143 = arith.constant 3 : index
    %325 = memref.load %arg23[%c3_143] : memref<8xf32, #tpu.memory_space<smem>>
    %326 = vector.broadcast %325 : f32 to vector<16x16xf32>
    %327 = arith.addf %324, %326 : vector<16x16xf32>
    %cst_144 = arith.constant 0.000000e+00 : f32
    %328 = vector.broadcast %cst_144 : f32 to vector<16x16xf32>
    %329 = arith.cmpf ogt, %327, %328 : vector<16x16xf32>
    %cst_145 = arith.constant 0.00999999977 : f32
    %330 = vector.broadcast %cst_145 : f32 to vector<16x16xf32>
    %331 = arith.mulf %330, %327 : vector<16x16xf32>
    %332 = arith.select %329, %327, %331 : vector<16x16xi1>, vector<16x16xf32>
    %cst_146 = arith.constant 0.000000e+00 : f32
    %333 = vector.broadcast %cst_146 : f32 to vector<16x16xf32>
    %334 = arith.subf %333, %332 : vector<16x16xf32>
    %335 = math.exp %334 : vector<16x16xf32>
    %cst_147 = arith.constant 1.000000e+00 : f32
    %336 = vector.broadcast %cst_147 : f32 to vector<16x16xf32>
    %337 = arith.addf %336, %335 : vector<16x16xf32>
    %cst_148 = arith.constant 1.000000e+00 : f32
    %338 = vector.broadcast %cst_148 : f32 to vector<16x16xf32>
    %339 = arith.divf %338, %337 : vector<16x16xf32>
    %340 = arith.mulf %2, %339 : vector<16x16xf32>
    %c0_149 = arith.constant 0 : index
    %c4_150 = arith.constant 4 : index
    %341 = memref.load %arg22[%c0_149, %c4_150] : memref<8x8xf32, #tpu.memory_space<smem>>
    %342 = vector.broadcast %341 : f32 to vector<16x16xf32>
    %343 = arith.mulf %342, %4 : vector<16x16xf32>
    %c1_151 = arith.constant 1 : index
    %c4_152 = arith.constant 4 : index
    %344 = memref.load %arg22[%c1_151, %c4_152] : memref<8x8xf32, #tpu.memory_space<smem>>
    %345 = vector.broadcast %344 : f32 to vector<16x16xf32>
    %346 = arith.mulf %345, %6 : vector<16x16xf32>
    %347 = arith.addf %343, %346 : vector<16x16xf32>
    %c2_153 = arith.constant 2 : index
    %c4_154 = arith.constant 4 : index
    %348 = memref.load %arg22[%c2_153, %c4_154] : memref<8x8xf32, #tpu.memory_space<smem>>
    %349 = vector.broadcast %348 : f32 to vector<16x16xf32>
    %350 = arith.mulf %349, %8 : vector<16x16xf32>
    %351 = arith.addf %347, %350 : vector<16x16xf32>
    %c3_155 = arith.constant 3 : index
    %c4_156 = arith.constant 4 : index
    %352 = memref.load %arg22[%c3_155, %c4_156] : memref<8x8xf32, #tpu.memory_space<smem>>
    %353 = vector.broadcast %352 : f32 to vector<16x16xf32>
    %354 = arith.mulf %353, %10 : vector<16x16xf32>
    %355 = arith.addf %351, %354 : vector<16x16xf32>
    %c4_157 = arith.constant 4 : index
    %c4_158 = arith.constant 4 : index
    %356 = memref.load %arg22[%c4_157, %c4_158] : memref<8x8xf32, #tpu.memory_space<smem>>
    %357 = vector.broadcast %356 : f32 to vector<16x16xf32>
    %358 = arith.mulf %357, %12 : vector<16x16xf32>
    %359 = arith.addf %355, %358 : vector<16x16xf32>
    %c5_159 = arith.constant 5 : index
    %c4_160 = arith.constant 4 : index
    %360 = memref.load %arg22[%c5_159, %c4_160] : memref<8x8xf32, #tpu.memory_space<smem>>
    %361 = vector.broadcast %360 : f32 to vector<16x16xf32>
    %362 = arith.mulf %361, %14 : vector<16x16xf32>
    %363 = arith.addf %359, %362 : vector<16x16xf32>
    %c6_161 = arith.constant 6 : index
    %c4_162 = arith.constant 4 : index
    %364 = memref.load %arg22[%c6_161, %c4_162] : memref<8x8xf32, #tpu.memory_space<smem>>
    %365 = vector.broadcast %364 : f32 to vector<16x16xf32>
    %366 = arith.mulf %365, %16 : vector<16x16xf32>
    %367 = arith.addf %363, %366 : vector<16x16xf32>
    %c7_163 = arith.constant 7 : index
    %c4_164 = arith.constant 4 : index
    %368 = memref.load %arg22[%c7_163, %c4_164] : memref<8x8xf32, #tpu.memory_space<smem>>
    %369 = vector.broadcast %368 : f32 to vector<16x16xf32>
    %370 = arith.mulf %369, %18 : vector<16x16xf32>
    %371 = arith.addf %367, %370 : vector<16x16xf32>
    %372 = vector.extract_strided_slice %95 {offsets = [4, 0], sizes = [1, 32], strides = [1, 1]} : vector<8x32xf32> to vector<1x32xf32>
    %373 = vector.broadcast %372 : vector<1x32xf32> to vector<16x32xf32>
    %374 = arith.mulf %20, %373 : vector<16x32xf32>
    %cst_165 = arith.constant dense<0.000000e+00> : vector<16xf32>
    %375 = vector.multi_reduction <add>, %374, %cst_165 [1] : vector<16x32xf32> to vector<16xf32>
    %376 = vector.shape_cast %375 : vector<16xf32> to vector<16x1xf32>
    %377 = vector.extract_strided_slice %96 {offsets = [0, 4], sizes = [4, 1], strides = [1, 1]} : vector<4x8xf32> to vector<4x1xf32>
    %378 = vector.broadcast %377 : vector<4x1xf32> to vector<4x16xf32>
    %379 = arith.mulf %1, %378 : vector<4x16xf32>
    %cst_166 = arith.constant dense<0.000000e+00> : vector<16xf32>
    %380 = vector.multi_reduction <add>, %379, %cst_166 [0] : vector<4x16xf32> to vector<16xf32>
    %381 = vector.shape_cast %380 : vector<16xf32> to vector<1x16xf32>
    %382 = vector.broadcast %376 : vector<16x1xf32> to vector<16x16xf32>
    %383 = arith.addf %371, %382 : vector<16x16xf32>
    %384 = vector.broadcast %381 : vector<1x16xf32> to vector<16x16xf32>
    %385 = arith.addf %383, %384 : vector<16x16xf32>
    %c4_167 = arith.constant 4 : index
    %386 = memref.load %arg23[%c4_167] : memref<8xf32, #tpu.memory_space<smem>>
    %387 = vector.broadcast %386 : f32 to vector<16x16xf32>
    %388 = arith.addf %385, %387 : vector<16x16xf32>
    %cst_168 = arith.constant 0.000000e+00 : f32
    %389 = vector.broadcast %cst_168 : f32 to vector<16x16xf32>
    %390 = arith.cmpf ogt, %388, %389 : vector<16x16xf32>
    %cst_169 = arith.constant 0.00999999977 : f32
    %391 = vector.broadcast %cst_169 : f32 to vector<16x16xf32>
    %392 = arith.mulf %391, %388 : vector<16x16xf32>
    %393 = arith.select %390, %388, %392 : vector<16x16xi1>, vector<16x16xf32>
    %cst_170 = arith.constant 0.000000e+00 : f32
    %394 = vector.broadcast %cst_170 : f32 to vector<16x16xf32>
    %395 = arith.subf %394, %393 : vector<16x16xf32>
    %396 = math.exp %395 : vector<16x16xf32>
    %cst_171 = arith.constant 1.000000e+00 : f32
    %397 = vector.broadcast %cst_171 : f32 to vector<16x16xf32>
    %398 = arith.addf %397, %396 : vector<16x16xf32>
    %cst_172 = arith.constant 1.000000e+00 : f32
    %399 = vector.broadcast %cst_172 : f32 to vector<16x16xf32>
    %400 = arith.divf %399, %398 : vector<16x16xf32>
    %401 = arith.mulf %2, %400 : vector<16x16xf32>
    %c0_173 = arith.constant 0 : index
    %c5_174 = arith.constant 5 : index
    %402 = memref.load %arg22[%c0_173, %c5_174] : memref<8x8xf32, #tpu.memory_space<smem>>
    %403 = vector.broadcast %402 : f32 to vector<16x16xf32>
    %404 = arith.mulf %403, %4 : vector<16x16xf32>
    %c1_175 = arith.constant 1 : index
    %c5_176 = arith.constant 5 : index
    %405 = memref.load %arg22[%c1_175, %c5_176] : memref<8x8xf32, #tpu.memory_space<smem>>
    %406 = vector.broadcast %405 : f32 to vector<16x16xf32>
    %407 = arith.mulf %406, %6 : vector<16x16xf32>
    %408 = arith.addf %404, %407 : vector<16x16xf32>
    %c2_177 = arith.constant 2 : index
    %c5_178 = arith.constant 5 : index
    %409 = memref.load %arg22[%c2_177, %c5_178] : memref<8x8xf32, #tpu.memory_space<smem>>
    %410 = vector.broadcast %409 : f32 to vector<16x16xf32>
    %411 = arith.mulf %410, %8 : vector<16x16xf32>
    %412 = arith.addf %408, %411 : vector<16x16xf32>
    %c3_179 = arith.constant 3 : index
    %c5_180 = arith.constant 5 : index
    %413 = memref.load %arg22[%c3_179, %c5_180] : memref<8x8xf32, #tpu.memory_space<smem>>
    %414 = vector.broadcast %413 : f32 to vector<16x16xf32>
    %415 = arith.mulf %414, %10 : vector<16x16xf32>
    %416 = arith.addf %412, %415 : vector<16x16xf32>
    %c4_181 = arith.constant 4 : index
    %c5_182 = arith.constant 5 : index
    %417 = memref.load %arg22[%c4_181, %c5_182] : memref<8x8xf32, #tpu.memory_space<smem>>
    %418 = vector.broadcast %417 : f32 to vector<16x16xf32>
    %419 = arith.mulf %418, %12 : vector<16x16xf32>
    %420 = arith.addf %416, %419 : vector<16x16xf32>
    %c5_183 = arith.constant 5 : index
    %c5_184 = arith.constant 5 : index
    %421 = memref.load %arg22[%c5_183, %c5_184] : memref<8x8xf32, #tpu.memory_space<smem>>
    %422 = vector.broadcast %421 : f32 to vector<16x16xf32>
    %423 = arith.mulf %422, %14 : vector<16x16xf32>
    %424 = arith.addf %420, %423 : vector<16x16xf32>
    %c6_185 = arith.constant 6 : index
    %c5_186 = arith.constant 5 : index
    %425 = memref.load %arg22[%c6_185, %c5_186] : memref<8x8xf32, #tpu.memory_space<smem>>
    %426 = vector.broadcast %425 : f32 to vector<16x16xf32>
    %427 = arith.mulf %426, %16 : vector<16x16xf32>
    %428 = arith.addf %424, %427 : vector<16x16xf32>
    %c7_187 = arith.constant 7 : index
    %c5_188 = arith.constant 5 : index
    %429 = memref.load %arg22[%c7_187, %c5_188] : memref<8x8xf32, #tpu.memory_space<smem>>
    %430 = vector.broadcast %429 : f32 to vector<16x16xf32>
    %431 = arith.mulf %430, %18 : vector<16x16xf32>
    %432 = arith.addf %428, %431 : vector<16x16xf32>
    %433 = vector.extract_strided_slice %95 {offsets = [5, 0], sizes = [1, 32], strides = [1, 1]} : vector<8x32xf32> to vector<1x32xf32>
    %434 = vector.broadcast %433 : vector<1x32xf32> to vector<16x32xf32>
    %435 = arith.mulf %20, %434 : vector<16x32xf32>
    %cst_189 = arith.constant dense<0.000000e+00> : vector<16xf32>
    %436 = vector.multi_reduction <add>, %435, %cst_189 [1] : vector<16x32xf32> to vector<16xf32>
    %437 = vector.shape_cast %436 : vector<16xf32> to vector<16x1xf32>
    %438 = vector.extract_strided_slice %96 {offsets = [0, 5], sizes = [4, 1], strides = [1, 1]} : vector<4x8xf32> to vector<4x1xf32>
    %439 = vector.broadcast %438 : vector<4x1xf32> to vector<4x16xf32>
    %440 = arith.mulf %1, %439 : vector<4x16xf32>
    %cst_190 = arith.constant dense<0.000000e+00> : vector<16xf32>
    %441 = vector.multi_reduction <add>, %440, %cst_190 [0] : vector<4x16xf32> to vector<16xf32>
    %442 = vector.shape_cast %441 : vector<16xf32> to vector<1x16xf32>
    %443 = vector.broadcast %437 : vector<16x1xf32> to vector<16x16xf32>
    %444 = arith.addf %432, %443 : vector<16x16xf32>
    %445 = vector.broadcast %442 : vector<1x16xf32> to vector<16x16xf32>
    %446 = arith.addf %444, %445 : vector<16x16xf32>
    %c5_191 = arith.constant 5 : index
    %447 = memref.load %arg23[%c5_191] : memref<8xf32, #tpu.memory_space<smem>>
    %448 = vector.broadcast %447 : f32 to vector<16x16xf32>
    %449 = arith.addf %446, %448 : vector<16x16xf32>
    %cst_192 = arith.constant 0.000000e+00 : f32
    %450 = vector.broadcast %cst_192 : f32 to vector<16x16xf32>
    %451 = arith.cmpf ogt, %449, %450 : vector<16x16xf32>
    %cst_193 = arith.constant 0.00999999977 : f32
    %452 = vector.broadcast %cst_193 : f32 to vector<16x16xf32>
    %453 = arith.mulf %452, %449 : vector<16x16xf32>
    %454 = arith.select %451, %449, %453 : vector<16x16xi1>, vector<16x16xf32>
    %cst_194 = arith.constant 0.000000e+00 : f32
    %455 = vector.broadcast %cst_194 : f32 to vector<16x16xf32>
    %456 = arith.subf %455, %454 : vector<16x16xf32>
    %457 = math.exp %456 : vector<16x16xf32>
    %cst_195 = arith.constant 1.000000e+00 : f32
    %458 = vector.broadcast %cst_195 : f32 to vector<16x16xf32>
    %459 = arith.addf %458, %457 : vector<16x16xf32>
    %cst_196 = arith.constant 1.000000e+00 : f32
    %460 = vector.broadcast %cst_196 : f32 to vector<16x16xf32>
    %461 = arith.divf %460, %459 : vector<16x16xf32>
    %462 = arith.mulf %2, %461 : vector<16x16xf32>
    %c0_197 = arith.constant 0 : index
    %c6_198 = arith.constant 6 : index
    %463 = memref.load %arg22[%c0_197, %c6_198] : memref<8x8xf32, #tpu.memory_space<smem>>
    %464 = vector.broadcast %463 : f32 to vector<16x16xf32>
    %465 = arith.mulf %464, %4 : vector<16x16xf32>
    %c1_199 = arith.constant 1 : index
    %c6_200 = arith.constant 6 : index
    %466 = memref.load %arg22[%c1_199, %c6_200] : memref<8x8xf32, #tpu.memory_space<smem>>
    %467 = vector.broadcast %466 : f32 to vector<16x16xf32>
    %468 = arith.mulf %467, %6 : vector<16x16xf32>
    %469 = arith.addf %465, %468 : vector<16x16xf32>
    %c2_201 = arith.constant 2 : index
    %c6_202 = arith.constant 6 : index
    %470 = memref.load %arg22[%c2_201, %c6_202] : memref<8x8xf32, #tpu.memory_space<smem>>
    %471 = vector.broadcast %470 : f32 to vector<16x16xf32>
    %472 = arith.mulf %471, %8 : vector<16x16xf32>
    %473 = arith.addf %469, %472 : vector<16x16xf32>
    %c3_203 = arith.constant 3 : index
    %c6_204 = arith.constant 6 : index
    %474 = memref.load %arg22[%c3_203, %c6_204] : memref<8x8xf32, #tpu.memory_space<smem>>
    %475 = vector.broadcast %474 : f32 to vector<16x16xf32>
    %476 = arith.mulf %475, %10 : vector<16x16xf32>
    %477 = arith.addf %473, %476 : vector<16x16xf32>
    %c4_205 = arith.constant 4 : index
    %c6_206 = arith.constant 6 : index
    %478 = memref.load %arg22[%c4_205, %c6_206] : memref<8x8xf32, #tpu.memory_space<smem>>
    %479 = vector.broadcast %478 : f32 to vector<16x16xf32>
    %480 = arith.mulf %479, %12 : vector<16x16xf32>
    %481 = arith.addf %477, %480 : vector<16x16xf32>
    %c5_207 = arith.constant 5 : index
    %c6_208 = arith.constant 6 : index
    %482 = memref.load %arg22[%c5_207, %c6_208] : memref<8x8xf32, #tpu.memory_space<smem>>
    %483 = vector.broadcast %482 : f32 to vector<16x16xf32>
    %484 = arith.mulf %483, %14 : vector<16x16xf32>
    %485 = arith.addf %481, %484 : vector<16x16xf32>
    %c6_209 = arith.constant 6 : index
    %c6_210 = arith.constant 6 : index
    %486 = memref.load %arg22[%c6_209, %c6_210] : memref<8x8xf32, #tpu.memory_space<smem>>
    %487 = vector.broadcast %486 : f32 to vector<16x16xf32>
    %488 = arith.mulf %487, %16 : vector<16x16xf32>
    %489 = arith.addf %485, %488 : vector<16x16xf32>
    %c7_211 = arith.constant 7 : index
    %c6_212 = arith.constant 6 : index
    %490 = memref.load %arg22[%c7_211, %c6_212] : memref<8x8xf32, #tpu.memory_space<smem>>
    %491 = vector.broadcast %490 : f32 to vector<16x16xf32>
    %492 = arith.mulf %491, %18 : vector<16x16xf32>
    %493 = arith.addf %489, %492 : vector<16x16xf32>
    %494 = vector.extract_strided_slice %95 {offsets = [6, 0], sizes = [1, 32], strides = [1, 1]} : vector<8x32xf32> to vector<1x32xf32>
    %495 = vector.broadcast %494 : vector<1x32xf32> to vector<16x32xf32>
    %496 = arith.mulf %20, %495 : vector<16x32xf32>
    %cst_213 = arith.constant dense<0.000000e+00> : vector<16xf32>
    %497 = vector.multi_reduction <add>, %496, %cst_213 [1] : vector<16x32xf32> to vector<16xf32>
    %498 = vector.shape_cast %497 : vector<16xf32> to vector<16x1xf32>
    %499 = vector.extract_strided_slice %96 {offsets = [0, 6], sizes = [4, 1], strides = [1, 1]} : vector<4x8xf32> to vector<4x1xf32>
    %500 = vector.broadcast %499 : vector<4x1xf32> to vector<4x16xf32>
    %501 = arith.mulf %1, %500 : vector<4x16xf32>
    %cst_214 = arith.constant dense<0.000000e+00> : vector<16xf32>
    %502 = vector.multi_reduction <add>, %501, %cst_214 [0] : vector<4x16xf32> to vector<16xf32>
    %503 = vector.shape_cast %502 : vector<16xf32> to vector<1x16xf32>
    %504 = vector.broadcast %498 : vector<16x1xf32> to vector<16x16xf32>
    %505 = arith.addf %493, %504 : vector<16x16xf32>
    %506 = vector.broadcast %503 : vector<1x16xf32> to vector<16x16xf32>
    %507 = arith.addf %505, %506 : vector<16x16xf32>
    %c6_215 = arith.constant 6 : index
    %508 = memref.load %arg23[%c6_215] : memref<8xf32, #tpu.memory_space<smem>>
    %509 = vector.broadcast %508 : f32 to vector<16x16xf32>
    %510 = arith.addf %507, %509 : vector<16x16xf32>
    %cst_216 = arith.constant 0.000000e+00 : f32
    %511 = vector.broadcast %cst_216 : f32 to vector<16x16xf32>
    %512 = arith.cmpf ogt, %510, %511 : vector<16x16xf32>
    %cst_217 = arith.constant 0.00999999977 : f32
    %513 = vector.broadcast %cst_217 : f32 to vector<16x16xf32>
    %514 = arith.mulf %513, %510 : vector<16x16xf32>
    %515 = arith.select %512, %510, %514 : vector<16x16xi1>, vector<16x16xf32>
    %cst_218 = arith.constant 0.000000e+00 : f32
    %516 = vector.broadcast %cst_218 : f32 to vector<16x16xf32>
    %517 = arith.subf %516, %515 : vector<16x16xf32>
    %518 = math.exp %517 : vector<16x16xf32>
    %cst_219 = arith.constant 1.000000e+00 : f32
    %519 = vector.broadcast %cst_219 : f32 to vector<16x16xf32>
    %520 = arith.addf %519, %518 : vector<16x16xf32>
    %cst_220 = arith.constant 1.000000e+00 : f32
    %521 = vector.broadcast %cst_220 : f32 to vector<16x16xf32>
    %522 = arith.divf %521, %520 : vector<16x16xf32>
    %523 = arith.mulf %2, %522 : vector<16x16xf32>
    %c0_221 = arith.constant 0 : index
    %c7_222 = arith.constant 7 : index
    %524 = memref.load %arg22[%c0_221, %c7_222] : memref<8x8xf32, #tpu.memory_space<smem>>
    %525 = vector.broadcast %524 : f32 to vector<16x16xf32>
    %526 = arith.mulf %525, %4 : vector<16x16xf32>
    %c1_223 = arith.constant 1 : index
    %c7_224 = arith.constant 7 : index
    %527 = memref.load %arg22[%c1_223, %c7_224] : memref<8x8xf32, #tpu.memory_space<smem>>
    %528 = vector.broadcast %527 : f32 to vector<16x16xf32>
    %529 = arith.mulf %528, %6 : vector<16x16xf32>
    %530 = arith.addf %526, %529 : vector<16x16xf32>
    %c2_225 = arith.constant 2 : index
    %c7_226 = arith.constant 7 : index
    %531 = memref.load %arg22[%c2_225, %c7_226] : memref<8x8xf32, #tpu.memory_space<smem>>
    %532 = vector.broadcast %531 : f32 to vector<16x16xf32>
    %533 = arith.mulf %532, %8 : vector<16x16xf32>
    %534 = arith.addf %530, %533 : vector<16x16xf32>
    %c3_227 = arith.constant 3 : index
    %c7_228 = arith.constant 7 : index
    %535 = memref.load %arg22[%c3_227, %c7_228] : memref<8x8xf32, #tpu.memory_space<smem>>
    %536 = vector.broadcast %535 : f32 to vector<16x16xf32>
    %537 = arith.mulf %536, %10 : vector<16x16xf32>
    %538 = arith.addf %534, %537 : vector<16x16xf32>
    %c4_229 = arith.constant 4 : index
    %c7_230 = arith.constant 7 : index
    %539 = memref.load %arg22[%c4_229, %c7_230] : memref<8x8xf32, #tpu.memory_space<smem>>
    %540 = vector.broadcast %539 : f32 to vector<16x16xf32>
    %541 = arith.mulf %540, %12 : vector<16x16xf32>
    %542 = arith.addf %538, %541 : vector<16x16xf32>
    %c5_231 = arith.constant 5 : index
    %c7_232 = arith.constant 7 : index
    %543 = memref.load %arg22[%c5_231, %c7_232] : memref<8x8xf32, #tpu.memory_space<smem>>
    %544 = vector.broadcast %543 : f32 to vector<16x16xf32>
    %545 = arith.mulf %544, %14 : vector<16x16xf32>
    %546 = arith.addf %542, %545 : vector<16x16xf32>
    %c6_233 = arith.constant 6 : index
    %c7_234 = arith.constant 7 : index
    %547 = memref.load %arg22[%c6_233, %c7_234] : memref<8x8xf32, #tpu.memory_space<smem>>
    %548 = vector.broadcast %547 : f32 to vector<16x16xf32>
    %549 = arith.mulf %548, %16 : vector<16x16xf32>
    %550 = arith.addf %546, %549 : vector<16x16xf32>
    %c7_235 = arith.constant 7 : index
    %c7_236 = arith.constant 7 : index
    %551 = memref.load %arg22[%c7_235, %c7_236] : memref<8x8xf32, #tpu.memory_space<smem>>
    %552 = vector.broadcast %551 : f32 to vector<16x16xf32>
    %553 = arith.mulf %552, %18 : vector<16x16xf32>
    %554 = arith.addf %550, %553 : vector<16x16xf32>
    %555 = vector.extract_strided_slice %95 {offsets = [7, 0], sizes = [1, 32], strides = [1, 1]} : vector<8x32xf32> to vector<1x32xf32>
    %556 = vector.broadcast %555 : vector<1x32xf32> to vector<16x32xf32>
    %557 = arith.mulf %20, %556 : vector<16x32xf32>
    %cst_237 = arith.constant dense<0.000000e+00> : vector<16xf32>
    %558 = vector.multi_reduction <add>, %557, %cst_237 [1] : vector<16x32xf32> to vector<16xf32>
    %559 = vector.shape_cast %558 : vector<16xf32> to vector<16x1xf32>
    %560 = vector.extract_strided_slice %96 {offsets = [0, 7], sizes = [4, 1], strides = [1, 1]} : vector<4x8xf32> to vector<4x1xf32>
    %561 = vector.broadcast %560 : vector<4x1xf32> to vector<4x16xf32>
    %562 = arith.mulf %1, %561 : vector<4x16xf32>
    %cst_238 = arith.constant dense<0.000000e+00> : vector<16xf32>
    %563 = vector.multi_reduction <add>, %562, %cst_238 [0] : vector<4x16xf32> to vector<16xf32>
    %564 = vector.shape_cast %563 : vector<16xf32> to vector<1x16xf32>
    %565 = vector.broadcast %559 : vector<16x1xf32> to vector<16x16xf32>
    %566 = arith.addf %554, %565 : vector<16x16xf32>
    %567 = vector.broadcast %564 : vector<1x16xf32> to vector<16x16xf32>
    %568 = arith.addf %566, %567 : vector<16x16xf32>
    %c7_239 = arith.constant 7 : index
    %569 = memref.load %arg23[%c7_239] : memref<8xf32, #tpu.memory_space<smem>>
    %570 = vector.broadcast %569 : f32 to vector<16x16xf32>
    %571 = arith.addf %568, %570 : vector<16x16xf32>
    %cst_240 = arith.constant 0.000000e+00 : f32
    %572 = vector.broadcast %cst_240 : f32 to vector<16x16xf32>
    %573 = arith.cmpf ogt, %571, %572 : vector<16x16xf32>
    %cst_241 = arith.constant 0.00999999977 : f32
    %574 = vector.broadcast %cst_241 : f32 to vector<16x16xf32>
    %575 = arith.mulf %574, %571 : vector<16x16xf32>
    %576 = arith.select %573, %571, %575 : vector<16x16xi1>, vector<16x16xf32>
    %cst_242 = arith.constant 0.000000e+00 : f32
    %577 = vector.broadcast %cst_242 : f32 to vector<16x16xf32>
    %578 = arith.subf %577, %576 : vector<16x16xf32>
    %579 = math.exp %578 : vector<16x16xf32>
    %cst_243 = arith.constant 1.000000e+00 : f32
    %580 = vector.broadcast %cst_243 : f32 to vector<16x16xf32>
    %581 = arith.addf %580, %579 : vector<16x16xf32>
    %cst_244 = arith.constant 1.000000e+00 : f32
    %582 = vector.broadcast %cst_244 : f32 to vector<16x16xf32>
    %583 = arith.divf %582, %581 : vector<16x16xf32>
    %584 = arith.mulf %2, %583 : vector<16x16xf32>
    %c0_245 = arith.constant 0 : index
    %c0_246 = arith.constant 0 : index
    %585 = vector.load %arg10[%c0_245, %c0_246] : memref<32x32xf32, #tpu.memory_space<vmem>>, vector<32x32xf32>
    %cst_247 = arith.constant dense<0.000000e+00> : vector<16x32xf32>
    %586 = tpu.matmul %94, %585, %cst_247 {dimension_numbers = #tpu.dot_dimension_numbers<[1], [0], [0], [1], [0, 0, 1, 1], [], []>} : vector<16x32xf32>, vector<32x32xf32>, vector<16x32xf32> -> vector<16x32xf32>
    %c0_248 = arith.constant 0 : index
    %c0_249 = arith.constant 0 : index
    %587 = vector.load %arg11[%c0_248, %c0_249] : memref<1x32xf32, #tpu.memory_space<vmem>>, vector<1x32xf32>
    %588 = vector.broadcast %587 : vector<1x32xf32> to vector<16x32xf32>
    %589 = arith.addf %586, %588 : vector<16x32xf32>
    %c0_250 = arith.constant 0 : index
    %c0_251 = arith.constant 0 : index
    %c0_252 = arith.constant 0 : index
    %590 = vector.load %arg9[%c0_250, %c0_251, %c0_252] : memref<8x32x32xf32, #tpu.memory_space<vmem>>, vector<1x32x32xf32>
    %591 = vector.shape_cast %590 : vector<1x32x32xf32> to vector<32x32xf32>
    %cst_253 = arith.constant dense<0.000000e+00> : vector<16x32xf32>
    %592 = tpu.matmul %94, %591, %cst_253 {dimension_numbers = #tpu.dot_dimension_numbers<[1], [0], [0], [1], [0, 0, 1, 1], [], []>} : vector<16x32xf32>, vector<32x32xf32>, vector<16x32xf32> -> vector<16x32xf32>
    %cst_254 = arith.constant dense<0.000000e+00> : vector<16x32xf32>
    %593 = tpu.matmul %157, %592, %cst_254 {dimension_numbers = #tpu.dot_dimension_numbers<[1], [0], [0], [1], [0, 0, 1, 1], [], []>} : vector<16x16xf32>, vector<16x32xf32>, vector<16x32xf32> -> vector<16x32xf32>
    %594 = arith.addf %589, %593 : vector<16x32xf32>
    %c1_255 = arith.constant 1 : index
    %c0_256 = arith.constant 0 : index
    %c0_257 = arith.constant 0 : index
    %595 = vector.load %arg9[%c1_255, %c0_256, %c0_257] : memref<8x32x32xf32, #tpu.memory_space<vmem>>, vector<1x32x32xf32>
    %596 = vector.shape_cast %595 : vector<1x32x32xf32> to vector<32x32xf32>
    %cst_258 = arith.constant dense<0.000000e+00> : vector<16x32xf32>
    %597 = tpu.matmul %94, %596, %cst_258 {dimension_numbers = #tpu.dot_dimension_numbers<[1], [0], [0], [1], [0, 0, 1, 1], [], []>} : vector<16x32xf32>, vector<32x32xf32>, vector<16x32xf32> -> vector<16x32xf32>
    %cst_259 = arith.constant dense<0.000000e+00> : vector<16x32xf32>
    %598 = tpu.matmul %218, %597, %cst_259 {dimension_numbers = #tpu.dot_dimension_numbers<[1], [0], [0], [1], [0, 0, 1, 1], [], []>} : vector<16x16xf32>, vector<16x32xf32>, vector<16x32xf32> -> vector<16x32xf32>
    %599 = arith.addf %594, %598 : vector<16x32xf32>
    %c2_260 = arith.constant 2 : index
    %c0_261 = arith.constant 0 : index
    %c0_262 = arith.constant 0 : index
    %600 = vector.load %arg9[%c2_260, %c0_261, %c0_262] : memref<8x32x32xf32, #tpu.memory_space<vmem>>, vector<1x32x32xf32>
    %601 = vector.shape_cast %600 : vector<1x32x32xf32> to vector<32x32xf32>
    %cst_263 = arith.constant dense<0.000000e+00> : vector<16x32xf32>
    %602 = tpu.matmul %94, %601, %cst_263 {dimension_numbers = #tpu.dot_dimension_numbers<[1], [0], [0], [1], [0, 0, 1, 1], [], []>} : vector<16x32xf32>, vector<32x32xf32>, vector<16x32xf32> -> vector<16x32xf32>
    %cst_264 = arith.constant dense<0.000000e+00> : vector<16x32xf32>
    %603 = tpu.matmul %279, %602, %cst_264 {dimension_numbers = #tpu.dot_dimension_numbers<[1], [0], [0], [1], [0, 0, 1, 1], [], []>} : vector<16x16xf32>, vector<16x32xf32>, vector<16x32xf32> -> vector<16x32xf32>
    %604 = arith.addf %599, %603 : vector<16x32xf32>
    %c3_265 = arith.constant 3 : index
    %c0_266 = arith.constant 0 : index
    %c0_267 = arith.constant 0 : index
    %605 = vector.load %arg9[%c3_265, %c0_266, %c0_267] : memref<8x32x32xf32, #tpu.memory_space<vmem>>, vector<1x32x32xf32>
    %606 = vector.shape_cast %605 : vector<1x32x32xf32> to vector<32x32xf32>
    %cst_268 = arith.constant dense<0.000000e+00> : vector<16x32xf32>
    %607 = tpu.matmul %94, %606, %cst_268 {dimension_numbers = #tpu.dot_dimension_numbers<[1], [0], [0], [1], [0, 0, 1, 1], [], []>} : vector<16x32xf32>, vector<32x32xf32>, vector<16x32xf32> -> vector<16x32xf32>
    %cst_269 = arith.constant dense<0.000000e+00> : vector<16x32xf32>
    %608 = tpu.matmul %340, %607, %cst_269 {dimension_numbers = #tpu.dot_dimension_numbers<[1], [0], [0], [1], [0, 0, 1, 1], [], []>} : vector<16x16xf32>, vector<16x32xf32>, vector<16x32xf32> -> vector<16x32xf32>
    %609 = arith.addf %604, %608 : vector<16x32xf32>
    %c4_270 = arith.constant 4 : index
    %c0_271 = arith.constant 0 : index
    %c0_272 = arith.constant 0 : index
    %610 = vector.load %arg9[%c4_270, %c0_271, %c0_272] : memref<8x32x32xf32, #tpu.memory_space<vmem>>, vector<1x32x32xf32>
    %611 = vector.shape_cast %610 : vector<1x32x32xf32> to vector<32x32xf32>
    %cst_273 = arith.constant dense<0.000000e+00> : vector<16x32xf32>
    %612 = tpu.matmul %94, %611, %cst_273 {dimension_numbers = #tpu.dot_dimension_numbers<[1], [0], [0], [1], [0, 0, 1, 1], [], []>} : vector<16x32xf32>, vector<32x32xf32>, vector<16x32xf32> -> vector<16x32xf32>
    %cst_274 = arith.constant dense<0.000000e+00> : vector<16x32xf32>
    %613 = tpu.matmul %401, %612, %cst_274 {dimension_numbers = #tpu.dot_dimension_numbers<[1], [0], [0], [1], [0, 0, 1, 1], [], []>} : vector<16x16xf32>, vector<16x32xf32>, vector<16x32xf32> -> vector<16x32xf32>
    %614 = arith.addf %609, %613 : vector<16x32xf32>
    %c5_275 = arith.constant 5 : index
    %c0_276 = arith.constant 0 : index
    %c0_277 = arith.constant 0 : index
    %615 = vector.load %arg9[%c5_275, %c0_276, %c0_277] : memref<8x32x32xf32, #tpu.memory_space<vmem>>, vector<1x32x32xf32>
    %616 = vector.shape_cast %615 : vector<1x32x32xf32> to vector<32x32xf32>
    %cst_278 = arith.constant dense<0.000000e+00> : vector<16x32xf32>
    %617 = tpu.matmul %94, %616, %cst_278 {dimension_numbers = #tpu.dot_dimension_numbers<[1], [0], [0], [1], [0, 0, 1, 1], [], []>} : vector<16x32xf32>, vector<32x32xf32>, vector<16x32xf32> -> vector<16x32xf32>
    %cst_279 = arith.constant dense<0.000000e+00> : vector<16x32xf32>
    %618 = tpu.matmul %462, %617, %cst_279 {dimension_numbers = #tpu.dot_dimension_numbers<[1], [0], [0], [1], [0, 0, 1, 1], [], []>} : vector<16x16xf32>, vector<16x32xf32>, vector<16x32xf32> -> vector<16x32xf32>
    %619 = arith.addf %614, %618 : vector<16x32xf32>
    %c6_280 = arith.constant 6 : index
    %c0_281 = arith.constant 0 : index
    %c0_282 = arith.constant 0 : index
    %620 = vector.load %arg9[%c6_280, %c0_281, %c0_282] : memref<8x32x32xf32, #tpu.memory_space<vmem>>, vector<1x32x32xf32>
    %621 = vector.shape_cast %620 : vector<1x32x32xf32> to vector<32x32xf32>
    %cst_283 = arith.constant dense<0.000000e+00> : vector<16x32xf32>
    %622 = tpu.matmul %94, %621, %cst_283 {dimension_numbers = #tpu.dot_dimension_numbers<[1], [0], [0], [1], [0, 0, 1, 1], [], []>} : vector<16x32xf32>, vector<32x32xf32>, vector<16x32xf32> -> vector<16x32xf32>
    %cst_284 = arith.constant dense<0.000000e+00> : vector<16x32xf32>
    %623 = tpu.matmul %523, %622, %cst_284 {dimension_numbers = #tpu.dot_dimension_numbers<[1], [0], [0], [1], [0, 0, 1, 1], [], []>} : vector<16x16xf32>, vector<16x32xf32>, vector<16x32xf32> -> vector<16x32xf32>
    %624 = arith.addf %619, %623 : vector<16x32xf32>
    %c7_285 = arith.constant 7 : index
    %c0_286 = arith.constant 0 : index
    %c0_287 = arith.constant 0 : index
    %625 = vector.load %arg9[%c7_285, %c0_286, %c0_287] : memref<8x32x32xf32, #tpu.memory_space<vmem>>, vector<1x32x32xf32>
    %626 = vector.shape_cast %625 : vector<1x32x32xf32> to vector<32x32xf32>
    %cst_288 = arith.constant dense<0.000000e+00> : vector<16x32xf32>
    %627 = tpu.matmul %94, %626, %cst_288 {dimension_numbers = #tpu.dot_dimension_numbers<[1], [0], [0], [1], [0, 0, 1, 1], [], []>} : vector<16x32xf32>, vector<32x32xf32>, vector<16x32xf32> -> vector<16x32xf32>
    %cst_289 = arith.constant dense<0.000000e+00> : vector<16x32xf32>
    %628 = tpu.matmul %584, %627, %cst_289 {dimension_numbers = #tpu.dot_dimension_numbers<[1], [0], [0], [1], [0, 0, 1, 1], [], []>} : vector<16x16xf32>, vector<16x32xf32>, vector<16x32xf32> -> vector<16x32xf32>
    %629 = arith.addf %624, %628 : vector<16x32xf32>
    %cst_290 = arith.constant 0.000000e+00 : f32
    %630 = vector.broadcast %cst_290 : f32 to vector<16x32xf32>
    %631 = arith.cmpf ogt, %629, %630 : vector<16x32xf32>
    %632 = math.exp %629 : vector<16x32xf32>
    %cst_291 = arith.constant 1.000000e+00 : f32
    %633 = vector.broadcast %cst_291 : f32 to vector<16x32xf32>
    %634 = arith.subf %632, %633 : vector<16x32xf32>
    %635 = arith.select %631, %629, %634 : vector<16x32xi1>, vector<16x32xf32>
    %c0_292 = arith.constant 0 : index
    %c0_293 = arith.constant 0 : index
    %636 = vector.load %arg13[%c0_292, %c0_293] : memref<32x32xf32, #tpu.memory_space<vmem>>, vector<32x32xf32>
    %cst_294 = arith.constant dense<0.000000e+00> : vector<16x32xf32>
    %637 = tpu.matmul %635, %636, %cst_294 {dimension_numbers = #tpu.dot_dimension_numbers<[1], [0], [0], [1], [0, 0, 1, 1], [], []>} : vector<16x32xf32>, vector<32x32xf32>, vector<16x32xf32> -> vector<16x32xf32>
    %c0_295 = arith.constant 0 : index
    %c0_296 = arith.constant 0 : index
    %638 = vector.load %arg14[%c0_295, %c0_296] : memref<1x32xf32, #tpu.memory_space<vmem>>, vector<1x32xf32>
    %639 = vector.broadcast %638 : vector<1x32xf32> to vector<16x32xf32>
    %640 = arith.addf %637, %639 : vector<16x32xf32>
    %c0_297 = arith.constant 0 : index
    %c0_298 = arith.constant 0 : index
    %c0_299 = arith.constant 0 : index
    %641 = vector.load %arg12[%c0_297, %c0_298, %c0_299] : memref<8x32x32xf32, #tpu.memory_space<vmem>>, vector<1x32x32xf32>
    %642 = vector.shape_cast %641 : vector<1x32x32xf32> to vector<32x32xf32>
    %cst_300 = arith.constant dense<0.000000e+00> : vector<16x32xf32>
    %643 = tpu.matmul %635, %642, %cst_300 {dimension_numbers = #tpu.dot_dimension_numbers<[1], [0], [0], [1], [0, 0, 1, 1], [], []>} : vector<16x32xf32>, vector<32x32xf32>, vector<16x32xf32> -> vector<16x32xf32>
    %cst_301 = arith.constant dense<0.000000e+00> : vector<16x32xf32>
    %644 = tpu.matmul %157, %643, %cst_301 {dimension_numbers = #tpu.dot_dimension_numbers<[1], [0], [0], [1], [0, 0, 1, 1], [], []>} : vector<16x16xf32>, vector<16x32xf32>, vector<16x32xf32> -> vector<16x32xf32>
    %645 = arith.addf %640, %644 : vector<16x32xf32>
    %c1_302 = arith.constant 1 : index
    %c0_303 = arith.constant 0 : index
    %c0_304 = arith.constant 0 : index
    %646 = vector.load %arg12[%c1_302, %c0_303, %c0_304] : memref<8x32x32xf32, #tpu.memory_space<vmem>>, vector<1x32x32xf32>
    %647 = vector.shape_cast %646 : vector<1x32x32xf32> to vector<32x32xf32>
    %cst_305 = arith.constant dense<0.000000e+00> : vector<16x32xf32>
    %648 = tpu.matmul %635, %647, %cst_305 {dimension_numbers = #tpu.dot_dimension_numbers<[1], [0], [0], [1], [0, 0, 1, 1], [], []>} : vector<16x32xf32>, vector<32x32xf32>, vector<16x32xf32> -> vector<16x32xf32>
    %cst_306 = arith.constant dense<0.000000e+00> : vector<16x32xf32>
    %649 = tpu.matmul %218, %648, %cst_306 {dimension_numbers = #tpu.dot_dimension_numbers<[1], [0], [0], [1], [0, 0, 1, 1], [], []>} : vector<16x16xf32>, vector<16x32xf32>, vector<16x32xf32> -> vector<16x32xf32>
    %650 = arith.addf %645, %649 : vector<16x32xf32>
    %c2_307 = arith.constant 2 : index
    %c0_308 = arith.constant 0 : index
    %c0_309 = arith.constant 0 : index
    %651 = vector.load %arg12[%c2_307, %c0_308, %c0_309] : memref<8x32x32xf32, #tpu.memory_space<vmem>>, vector<1x32x32xf32>
    %652 = vector.shape_cast %651 : vector<1x32x32xf32> to vector<32x32xf32>
    %cst_310 = arith.constant dense<0.000000e+00> : vector<16x32xf32>
    %653 = tpu.matmul %635, %652, %cst_310 {dimension_numbers = #tpu.dot_dimension_numbers<[1], [0], [0], [1], [0, 0, 1, 1], [], []>} : vector<16x32xf32>, vector<32x32xf32>, vector<16x32xf32> -> vector<16x32xf32>
    %cst_311 = arith.constant dense<0.000000e+00> : vector<16x32xf32>
    %654 = tpu.matmul %279, %653, %cst_311 {dimension_numbers = #tpu.dot_dimension_numbers<[1], [0], [0], [1], [0, 0, 1, 1], [], []>} : vector<16x16xf32>, vector<16x32xf32>, vector<16x32xf32> -> vector<16x32xf32>
    %655 = arith.addf %650, %654 : vector<16x32xf32>
    %c3_312 = arith.constant 3 : index
    %c0_313 = arith.constant 0 : index
    %c0_314 = arith.constant 0 : index
    %656 = vector.load %arg12[%c3_312, %c0_313, %c0_314] : memref<8x32x32xf32, #tpu.memory_space<vmem>>, vector<1x32x32xf32>
    %657 = vector.shape_cast %656 : vector<1x32x32xf32> to vector<32x32xf32>
    %cst_315 = arith.constant dense<0.000000e+00> : vector<16x32xf32>
    %658 = tpu.matmul %635, %657, %cst_315 {dimension_numbers = #tpu.dot_dimension_numbers<[1], [0], [0], [1], [0, 0, 1, 1], [], []>} : vector<16x32xf32>, vector<32x32xf32>, vector<16x32xf32> -> vector<16x32xf32>
    %cst_316 = arith.constant dense<0.000000e+00> : vector<16x32xf32>
    %659 = tpu.matmul %340, %658, %cst_316 {dimension_numbers = #tpu.dot_dimension_numbers<[1], [0], [0], [1], [0, 0, 1, 1], [], []>} : vector<16x16xf32>, vector<16x32xf32>, vector<16x32xf32> -> vector<16x32xf32>
    %660 = arith.addf %655, %659 : vector<16x32xf32>
    %c4_317 = arith.constant 4 : index
    %c0_318 = arith.constant 0 : index
    %c0_319 = arith.constant 0 : index
    %661 = vector.load %arg12[%c4_317, %c0_318, %c0_319] : memref<8x32x32xf32, #tpu.memory_space<vmem>>, vector<1x32x32xf32>
    %662 = vector.shape_cast %661 : vector<1x32x32xf32> to vector<32x32xf32>
    %cst_320 = arith.constant dense<0.000000e+00> : vector<16x32xf32>
    %663 = tpu.matmul %635, %662, %cst_320 {dimension_numbers = #tpu.dot_dimension_numbers<[1], [0], [0], [1], [0, 0, 1, 1], [], []>} : vector<16x32xf32>, vector<32x32xf32>, vector<16x32xf32> -> vector<16x32xf32>
    %cst_321 = arith.constant dense<0.000000e+00> : vector<16x32xf32>
    %664 = tpu.matmul %401, %663, %cst_321 {dimension_numbers = #tpu.dot_dimension_numbers<[1], [0], [0], [1], [0, 0, 1, 1], [], []>} : vector<16x16xf32>, vector<16x32xf32>, vector<16x32xf32> -> vector<16x32xf32>
    %665 = arith.addf %660, %664 : vector<16x32xf32>
    %c5_322 = arith.constant 5 : index
    %c0_323 = arith.constant 0 : index
    %c0_324 = arith.constant 0 : index
    %666 = vector.load %arg12[%c5_322, %c0_323, %c0_324] : memref<8x32x32xf32, #tpu.memory_space<vmem>>, vector<1x32x32xf32>
    %667 = vector.shape_cast %666 : vector<1x32x32xf32> to vector<32x32xf32>
    %cst_325 = arith.constant dense<0.000000e+00> : vector<16x32xf32>
    %668 = tpu.matmul %635, %667, %cst_325 {dimension_numbers = #tpu.dot_dimension_numbers<[1], [0], [0], [1], [0, 0, 1, 1], [], []>} : vector<16x32xf32>, vector<32x32xf32>, vector<16x32xf32> -> vector<16x32xf32>
    %cst_326 = arith.constant dense<0.000000e+00> : vector<16x32xf32>
    %669 = tpu.matmul %462, %668, %cst_326 {dimension_numbers = #tpu.dot_dimension_numbers<[1], [0], [0], [1], [0, 0, 1, 1], [], []>} : vector<16x16xf32>, vector<16x32xf32>, vector<16x32xf32> -> vector<16x32xf32>
    %670 = arith.addf %665, %669 : vector<16x32xf32>
    %c6_327 = arith.constant 6 : index
    %c0_328 = arith.constant 0 : index
    %c0_329 = arith.constant 0 : index
    %671 = vector.load %arg12[%c6_327, %c0_328, %c0_329] : memref<8x32x32xf32, #tpu.memory_space<vmem>>, vector<1x32x32xf32>
    %672 = vector.shape_cast %671 : vector<1x32x32xf32> to vector<32x32xf32>
    %cst_330 = arith.constant dense<0.000000e+00> : vector<16x32xf32>
    %673 = tpu.matmul %635, %672, %cst_330 {dimension_numbers = #tpu.dot_dimension_numbers<[1], [0], [0], [1], [0, 0, 1, 1], [], []>} : vector<16x32xf32>, vector<32x32xf32>, vector<16x32xf32> -> vector<16x32xf32>
    %cst_331 = arith.constant dense<0.000000e+00> : vector<16x32xf32>
    %674 = tpu.matmul %523, %673, %cst_331 {dimension_numbers = #tpu.dot_dimension_numbers<[1], [0], [0], [1], [0, 0, 1, 1], [], []>} : vector<16x16xf32>, vector<16x32xf32>, vector<16x32xf32> -> vector<16x32xf32>
    %675 = arith.addf %670, %674 : vector<16x32xf32>
    %c7_332 = arith.constant 7 : index
    %c0_333 = arith.constant 0 : index
    %c0_334 = arith.constant 0 : index
    %676 = vector.load %arg12[%c7_332, %c0_333, %c0_334] : memref<8x32x32xf32, #tpu.memory_space<vmem>>, vector<1x32x32xf32>
    %677 = vector.shape_cast %676 : vector<1x32x32xf32> to vector<32x32xf32>
    %cst_335 = arith.constant dense<0.000000e+00> : vector<16x32xf32>
    %678 = tpu.matmul %635, %677, %cst_335 {dimension_numbers = #tpu.dot_dimension_numbers<[1], [0], [0], [1], [0, 0, 1, 1], [], []>} : vector<16x32xf32>, vector<32x32xf32>, vector<16x32xf32> -> vector<16x32xf32>
    %cst_336 = arith.constant dense<0.000000e+00> : vector<16x32xf32>
    %679 = tpu.matmul %584, %678, %cst_336 {dimension_numbers = #tpu.dot_dimension_numbers<[1], [0], [0], [1], [0, 0, 1, 1], [], []>} : vector<16x16xf32>, vector<16x32xf32>, vector<16x32xf32> -> vector<16x32xf32>
    %680 = arith.addf %675, %679 : vector<16x32xf32>
    %cst_337 = arith.constant 0.000000e+00 : f32
    %681 = vector.broadcast %cst_337 : f32 to vector<16x32xf32>
    %682 = arith.cmpf ogt, %680, %681 : vector<16x32xf32>
    %683 = math.exp %680 : vector<16x32xf32>
    %cst_338 = arith.constant 1.000000e+00 : f32
    %684 = vector.broadcast %cst_338 : f32 to vector<16x32xf32>
    %685 = arith.subf %683, %684 : vector<16x32xf32>
    %686 = arith.select %682, %680, %685 : vector<16x32xi1>, vector<16x32xf32>
    %c0_339 = arith.constant 0 : index
    %c0_340 = arith.constant 0 : index
    %687 = vector.load %arg16[%c0_339, %c0_340] : memref<32x32xf32, #tpu.memory_space<vmem>>, vector<32x32xf32>
    %cst_341 = arith.constant dense<0.000000e+00> : vector<16x32xf32>
    %688 = tpu.matmul %686, %687, %cst_341 {dimension_numbers = #tpu.dot_dimension_numbers<[1], [0], [0], [1], [0, 0, 1, 1], [], []>} : vector<16x32xf32>, vector<32x32xf32>, vector<16x32xf32> -> vector<16x32xf32>
    %c0_342 = arith.constant 0 : index
    %c0_343 = arith.constant 0 : index
    %689 = vector.load %arg17[%c0_342, %c0_343] : memref<1x32xf32, #tpu.memory_space<vmem>>, vector<1x32xf32>
    %690 = vector.broadcast %689 : vector<1x32xf32> to vector<16x32xf32>
    %691 = arith.addf %688, %690 : vector<16x32xf32>
    %c0_344 = arith.constant 0 : index
    %c0_345 = arith.constant 0 : index
    %c0_346 = arith.constant 0 : index
    %692 = vector.load %arg15[%c0_344, %c0_345, %c0_346] : memref<8x32x32xf32, #tpu.memory_space<vmem>>, vector<1x32x32xf32>
    %693 = vector.shape_cast %692 : vector<1x32x32xf32> to vector<32x32xf32>
    %cst_347 = arith.constant dense<0.000000e+00> : vector<16x32xf32>
    %694 = tpu.matmul %686, %693, %cst_347 {dimension_numbers = #tpu.dot_dimension_numbers<[1], [0], [0], [1], [0, 0, 1, 1], [], []>} : vector<16x32xf32>, vector<32x32xf32>, vector<16x32xf32> -> vector<16x32xf32>
    %cst_348 = arith.constant dense<0.000000e+00> : vector<16x32xf32>
    %695 = tpu.matmul %157, %694, %cst_348 {dimension_numbers = #tpu.dot_dimension_numbers<[1], [0], [0], [1], [0, 0, 1, 1], [], []>} : vector<16x16xf32>, vector<16x32xf32>, vector<16x32xf32> -> vector<16x32xf32>
    %696 = arith.addf %691, %695 : vector<16x32xf32>
    %c1_349 = arith.constant 1 : index
    %c0_350 = arith.constant 0 : index
    %c0_351 = arith.constant 0 : index
    %697 = vector.load %arg15[%c1_349, %c0_350, %c0_351] : memref<8x32x32xf32, #tpu.memory_space<vmem>>, vector<1x32x32xf32>
    %698 = vector.shape_cast %697 : vector<1x32x32xf32> to vector<32x32xf32>
    %cst_352 = arith.constant dense<0.000000e+00> : vector<16x32xf32>
    %699 = tpu.matmul %686, %698, %cst_352 {dimension_numbers = #tpu.dot_dimension_numbers<[1], [0], [0], [1], [0, 0, 1, 1], [], []>} : vector<16x32xf32>, vector<32x32xf32>, vector<16x32xf32> -> vector<16x32xf32>
    %cst_353 = arith.constant dense<0.000000e+00> : vector<16x32xf32>
    %700 = tpu.matmul %218, %699, %cst_353 {dimension_numbers = #tpu.dot_dimension_numbers<[1], [0], [0], [1], [0, 0, 1, 1], [], []>} : vector<16x16xf32>, vector<16x32xf32>, vector<16x32xf32> -> vector<16x32xf32>
    %701 = arith.addf %696, %700 : vector<16x32xf32>
    %c2_354 = arith.constant 2 : index
    %c0_355 = arith.constant 0 : index
    %c0_356 = arith.constant 0 : index
    %702 = vector.load %arg15[%c2_354, %c0_355, %c0_356] : memref<8x32x32xf32, #tpu.memory_space<vmem>>, vector<1x32x32xf32>
    %703 = vector.shape_cast %702 : vector<1x32x32xf32> to vector<32x32xf32>
    %cst_357 = arith.constant dense<0.000000e+00> : vector<16x32xf32>
    %704 = tpu.matmul %686, %703, %cst_357 {dimension_numbers = #tpu.dot_dimension_numbers<[1], [0], [0], [1], [0, 0, 1, 1], [], []>} : vector<16x32xf32>, vector<32x32xf32>, vector<16x32xf32> -> vector<16x32xf32>
    %cst_358 = arith.constant dense<0.000000e+00> : vector<16x32xf32>
    %705 = tpu.matmul %279, %704, %cst_358 {dimension_numbers = #tpu.dot_dimension_numbers<[1], [0], [0], [1], [0, 0, 1, 1], [], []>} : vector<16x16xf32>, vector<16x32xf32>, vector<16x32xf32> -> vector<16x32xf32>
    %706 = arith.addf %701, %705 : vector<16x32xf32>
    %c3_359 = arith.constant 3 : index
    %c0_360 = arith.constant 0 : index
    %c0_361 = arith.constant 0 : index
    %707 = vector.load %arg15[%c3_359, %c0_360, %c0_361] : memref<8x32x32xf32, #tpu.memory_space<vmem>>, vector<1x32x32xf32>
    %708 = vector.shape_cast %707 : vector<1x32x32xf32> to vector<32x32xf32>
    %cst_362 = arith.constant dense<0.000000e+00> : vector<16x32xf32>
    %709 = tpu.matmul %686, %708, %cst_362 {dimension_numbers = #tpu.dot_dimension_numbers<[1], [0], [0], [1], [0, 0, 1, 1], [], []>} : vector<16x32xf32>, vector<32x32xf32>, vector<16x32xf32> -> vector<16x32xf32>
    %cst_363 = arith.constant dense<0.000000e+00> : vector<16x32xf32>
    %710 = tpu.matmul %340, %709, %cst_363 {dimension_numbers = #tpu.dot_dimension_numbers<[1], [0], [0], [1], [0, 0, 1, 1], [], []>} : vector<16x16xf32>, vector<16x32xf32>, vector<16x32xf32> -> vector<16x32xf32>
    %711 = arith.addf %706, %710 : vector<16x32xf32>
    %c4_364 = arith.constant 4 : index
    %c0_365 = arith.constant 0 : index
    %c0_366 = arith.constant 0 : index
    %712 = vector.load %arg15[%c4_364, %c0_365, %c0_366] : memref<8x32x32xf32, #tpu.memory_space<vmem>>, vector<1x32x32xf32>
    %713 = vector.shape_cast %712 : vector<1x32x32xf32> to vector<32x32xf32>
    %cst_367 = arith.constant dense<0.000000e+00> : vector<16x32xf32>
    %714 = tpu.matmul %686, %713, %cst_367 {dimension_numbers = #tpu.dot_dimension_numbers<[1], [0], [0], [1], [0, 0, 1, 1], [], []>} : vector<16x32xf32>, vector<32x32xf32>, vector<16x32xf32> -> vector<16x32xf32>
    %cst_368 = arith.constant dense<0.000000e+00> : vector<16x32xf32>
    %715 = tpu.matmul %401, %714, %cst_368 {dimension_numbers = #tpu.dot_dimension_numbers<[1], [0], [0], [1], [0, 0, 1, 1], [], []>} : vector<16x16xf32>, vector<16x32xf32>, vector<16x32xf32> -> vector<16x32xf32>
    %716 = arith.addf %711, %715 : vector<16x32xf32>
    %c5_369 = arith.constant 5 : index
    %c0_370 = arith.constant 0 : index
    %c0_371 = arith.constant 0 : index
    %717 = vector.load %arg15[%c5_369, %c0_370, %c0_371] : memref<8x32x32xf32, #tpu.memory_space<vmem>>, vector<1x32x32xf32>
    %718 = vector.shape_cast %717 : vector<1x32x32xf32> to vector<32x32xf32>
    %cst_372 = arith.constant dense<0.000000e+00> : vector<16x32xf32>
    %719 = tpu.matmul %686, %718, %cst_372 {dimension_numbers = #tpu.dot_dimension_numbers<[1], [0], [0], [1], [0, 0, 1, 1], [], []>} : vector<16x32xf32>, vector<32x32xf32>, vector<16x32xf32> -> vector<16x32xf32>
    %cst_373 = arith.constant dense<0.000000e+00> : vector<16x32xf32>
    %720 = tpu.matmul %462, %719, %cst_373 {dimension_numbers = #tpu.dot_dimension_numbers<[1], [0], [0], [1], [0, 0, 1, 1], [], []>} : vector<16x16xf32>, vector<16x32xf32>, vector<16x32xf32> -> vector<16x32xf32>
    %721 = arith.addf %716, %720 : vector<16x32xf32>
    %c6_374 = arith.constant 6 : index
    %c0_375 = arith.constant 0 : index
    %c0_376 = arith.constant 0 : index
    %722 = vector.load %arg15[%c6_374, %c0_375, %c0_376] : memref<8x32x32xf32, #tpu.memory_space<vmem>>, vector<1x32x32xf32>
    %723 = vector.shape_cast %722 : vector<1x32x32xf32> to vector<32x32xf32>
    %cst_377 = arith.constant dense<0.000000e+00> : vector<16x32xf32>
    %724 = tpu.matmul %686, %723, %cst_377 {dimension_numbers = #tpu.dot_dimension_numbers<[1], [0], [0], [1], [0, 0, 1, 1], [], []>} : vector<16x32xf32>, vector<32x32xf32>, vector<16x32xf32> -> vector<16x32xf32>
    %cst_378 = arith.constant dense<0.000000e+00> : vector<16x32xf32>
    %725 = tpu.matmul %523, %724, %cst_378 {dimension_numbers = #tpu.dot_dimension_numbers<[1], [0], [0], [1], [0, 0, 1, 1], [], []>} : vector<16x16xf32>, vector<16x32xf32>, vector<16x32xf32> -> vector<16x32xf32>
    %726 = arith.addf %721, %725 : vector<16x32xf32>
    %c7_379 = arith.constant 7 : index
    %c0_380 = arith.constant 0 : index
    %c0_381 = arith.constant 0 : index
    %727 = vector.load %arg15[%c7_379, %c0_380, %c0_381] : memref<8x32x32xf32, #tpu.memory_space<vmem>>, vector<1x32x32xf32>
    %728 = vector.shape_cast %727 : vector<1x32x32xf32> to vector<32x32xf32>
    %cst_382 = arith.constant dense<0.000000e+00> : vector<16x32xf32>
    %729 = tpu.matmul %686, %728, %cst_382 {dimension_numbers = #tpu.dot_dimension_numbers<[1], [0], [0], [1], [0, 0, 1, 1], [], []>} : vector<16x32xf32>, vector<32x32xf32>, vector<16x32xf32> -> vector<16x32xf32>
    %cst_383 = arith.constant dense<0.000000e+00> : vector<16x32xf32>
    %730 = tpu.matmul %584, %729, %cst_383 {dimension_numbers = #tpu.dot_dimension_numbers<[1], [0], [0], [1], [0, 0, 1, 1], [], []>} : vector<16x16xf32>, vector<16x32xf32>, vector<16x32xf32> -> vector<16x32xf32>
    %731 = arith.addf %726, %730 : vector<16x32xf32>
    %cst_384 = arith.constant 0.000000e+00 : f32
    %732 = vector.broadcast %cst_384 : f32 to vector<16x32xf32>
    %733 = arith.cmpf ogt, %731, %732 : vector<16x32xf32>
    %734 = math.exp %731 : vector<16x32xf32>
    %cst_385 = arith.constant 1.000000e+00 : f32
    %735 = vector.broadcast %cst_385 : f32 to vector<16x32xf32>
    %736 = arith.subf %734, %735 : vector<16x32xf32>
    %737 = arith.select %733, %731, %736 : vector<16x32xi1>, vector<16x32xf32>
    %c0_386 = arith.constant 0 : index
    %c0_387 = arith.constant 0 : index
    %738 = vector.load %arg19[%c0_386, %c0_387] : memref<1x128xf32, #tpu.memory_space<vmem>>, vector<1x128xf32>
    %c0_388 = arith.constant 0 : index
    %c0_389 = arith.constant 0 : index
    %739 = vector.load %arg18[%c0_388, %c0_389] : memref<256x128xf32, #tpu.memory_space<vmem>>, vector<32x128xf32>
    %c128 = arith.constant 128 : index
    %c0_390 = arith.constant 0 : index
    %740 = vector.load %arg18[%c128, %c0_390] : memref<256x128xf32, #tpu.memory_space<vmem>>, vector<32x128xf32>
    %741 = vector.extract_strided_slice %94 {offsets = [0, 0], sizes = [8, 32], strides = [1, 1]} : vector<16x32xf32> to vector<8x32xf32>
    %cst_391 = arith.constant dense<0.000000e+00> : vector<8x128xf32>
    %742 = tpu.matmul %741, %739, %cst_391 {dimension_numbers = #tpu.dot_dimension_numbers<[1], [0], [0], [1], [0, 0, 1, 1], [], []>} : vector<8x32xf32>, vector<32x128xf32>, vector<8x128xf32> -> vector<8x128xf32>
    %743 = vector.broadcast %738 : vector<1x128xf32> to vector<8x128xf32>
    %744 = arith.addf %743, %742 : vector<8x128xf32>
    %745 = vector.extract_strided_slice %94 {offsets = [8, 0], sizes = [8, 32], strides = [1, 1]} : vector<16x32xf32> to vector<8x32xf32>
    %cst_392 = arith.constant dense<0.000000e+00> : vector<8x128xf32>
    %746 = tpu.matmul %745, %740, %cst_392 {dimension_numbers = #tpu.dot_dimension_numbers<[1], [0], [0], [1], [0, 0, 1, 1], [], []>} : vector<8x32xf32>, vector<32x128xf32>, vector<8x128xf32> -> vector<8x128xf32>
    %747 = arith.addf %744, %746 : vector<8x128xf32>
    %c32 = arith.constant 32 : index
    %c0_393 = arith.constant 0 : index
    %748 = vector.load %arg18[%c32, %c0_393] : memref<256x128xf32, #tpu.memory_space<vmem>>, vector<32x128xf32>
    %c160 = arith.constant 160 : index
    %c0_394 = arith.constant 0 : index
    %749 = vector.load %arg18[%c160, %c0_394] : memref<256x128xf32, #tpu.memory_space<vmem>>, vector<32x128xf32>
    %750 = vector.extract_strided_slice %635 {offsets = [0, 0], sizes = [8, 32], strides = [1, 1]} : vector<16x32xf32> to vector<8x32xf32>
    %cst_395 = arith.constant dense<0.000000e+00> : vector<8x128xf32>
    %751 = tpu.matmul %750, %748, %cst_395 {dimension_numbers = #tpu.dot_dimension_numbers<[1], [0], [0], [1], [0, 0, 1, 1], [], []>} : vector<8x32xf32>, vector<32x128xf32>, vector<8x128xf32> -> vector<8x128xf32>
    %752 = arith.addf %747, %751 : vector<8x128xf32>
    %753 = vector.extract_strided_slice %635 {offsets = [8, 0], sizes = [8, 32], strides = [1, 1]} : vector<16x32xf32> to vector<8x32xf32>
    %cst_396 = arith.constant dense<0.000000e+00> : vector<8x128xf32>
    %754 = tpu.matmul %753, %749, %cst_396 {dimension_numbers = #tpu.dot_dimension_numbers<[1], [0], [0], [1], [0, 0, 1, 1], [], []>} : vector<8x32xf32>, vector<32x128xf32>, vector<8x128xf32> -> vector<8x128xf32>
    %755 = arith.addf %752, %754 : vector<8x128xf32>
    %c64 = arith.constant 64 : index
    %c0_397 = arith.constant 0 : index
    %756 = vector.load %arg18[%c64, %c0_397] : memref<256x128xf32, #tpu.memory_space<vmem>>, vector<32x128xf32>
    %c192 = arith.constant 192 : index
    %c0_398 = arith.constant 0 : index
    %757 = vector.load %arg18[%c192, %c0_398] : memref<256x128xf32, #tpu.memory_space<vmem>>, vector<32x128xf32>
    %758 = vector.extract_strided_slice %686 {offsets = [0, 0], sizes = [8, 32], strides = [1, 1]} : vector<16x32xf32> to vector<8x32xf32>
    %cst_399 = arith.constant dense<0.000000e+00> : vector<8x128xf32>
    %759 = tpu.matmul %758, %756, %cst_399 {dimension_numbers = #tpu.dot_dimension_numbers<[1], [0], [0], [1], [0, 0, 1, 1], [], []>} : vector<8x32xf32>, vector<32x128xf32>, vector<8x128xf32> -> vector<8x128xf32>
    %760 = arith.addf %755, %759 : vector<8x128xf32>
    %761 = vector.extract_strided_slice %686 {offsets = [8, 0], sizes = [8, 32], strides = [1, 1]} : vector<16x32xf32> to vector<8x32xf32>
    %cst_400 = arith.constant dense<0.000000e+00> : vector<8x128xf32>
    %762 = tpu.matmul %761, %757, %cst_400 {dimension_numbers = #tpu.dot_dimension_numbers<[1], [0], [0], [1], [0, 0, 1, 1], [], []>} : vector<8x32xf32>, vector<32x128xf32>, vector<8x128xf32> -> vector<8x128xf32>
    %763 = arith.addf %760, %762 : vector<8x128xf32>
    %c96 = arith.constant 96 : index
    %c0_401 = arith.constant 0 : index
    %764 = vector.load %arg18[%c96, %c0_401] : memref<256x128xf32, #tpu.memory_space<vmem>>, vector<32x128xf32>
    %c224 = arith.constant 224 : index
    %c0_402 = arith.constant 0 : index
    %765 = vector.load %arg18[%c224, %c0_402] : memref<256x128xf32, #tpu.memory_space<vmem>>, vector<32x128xf32>
    %766 = vector.extract_strided_slice %737 {offsets = [0, 0], sizes = [8, 32], strides = [1, 1]} : vector<16x32xf32> to vector<8x32xf32>
    %cst_403 = arith.constant dense<0.000000e+00> : vector<8x128xf32>
    %767 = tpu.matmul %766, %764, %cst_403 {dimension_numbers = #tpu.dot_dimension_numbers<[1], [0], [0], [1], [0, 0, 1, 1], [], []>} : vector<8x32xf32>, vector<32x128xf32>, vector<8x128xf32> -> vector<8x128xf32>
    %768 = arith.addf %763, %767 : vector<8x128xf32>
    %769 = vector.extract_strided_slice %737 {offsets = [8, 0], sizes = [8, 32], strides = [1, 1]} : vector<16x32xf32> to vector<8x32xf32>
    %cst_404 = arith.constant dense<0.000000e+00> : vector<8x128xf32>
    %770 = tpu.matmul %769, %765, %cst_404 {dimension_numbers = #tpu.dot_dimension_numbers<[1], [0], [0], [1], [0, 0, 1, 1], [], []>} : vector<8x32xf32>, vector<32x128xf32>, vector<8x128xf32> -> vector<8x128xf32>
    %771 = arith.addf %768, %770 : vector<8x128xf32>
    %cst_405 = arith.constant 0.000000e+00 : f32
    %772 = vector.broadcast %cst_405 : f32 to vector<8x128xf32>
    %773 = arith.maximumf %771, %772 : vector<8x128xf32>
    %c0_406 = arith.constant 0 : index
    %c0_407 = arith.constant 0 : index
    %774 = vector.load %arg20[%c0_406, %c0_407] : memref<1x128xf32, #tpu.memory_space<vmem>>, vector<1x128xf32>
    %775 = vector.broadcast %774 : vector<1x128xf32> to vector<8x128xf32>
    %776 = arith.mulf %773, %775 : vector<8x128xf32>
    %cst_408 = arith.constant dense<0.000000e+00> : vector<8xf32>
    %777 = vector.multi_reduction <add>, %776, %cst_408 [1] : vector<8x128xf32> to vector<8xf32>
    %778 = vector.shape_cast %777 : vector<8xf32> to vector<8x1xf32>
    %c0_409 = arith.constant 0 : index
    %779 = memref.load %arg24[%c0_409] : memref<1xf32, #tpu.memory_space<smem>>
    %780 = vector.broadcast %779 : f32 to vector<8x1xf32>
    %781 = arith.addf %778, %780 : vector<8x1xf32>
    %cst_410 = arith.constant 0.000000e+00 : f32
    %782 = vector.broadcast %cst_410 : f32 to vector<8x1xf32>
    %783 = arith.subf %782, %781 : vector<8x1xf32>
    %784 = math.exp %783 : vector<8x1xf32>
    %cst_411 = arith.constant 1.000000e+00 : f32
    %785 = vector.broadcast %cst_411 : f32 to vector<8x1xf32>
    %786 = arith.addf %785, %784 : vector<8x1xf32>
    %cst_412 = arith.constant 1.000000e+00 : f32
    %787 = vector.broadcast %cst_412 : f32 to vector<8x1xf32>
    %788 = arith.divf %787, %786 : vector<8x1xf32>
    %789 = vector.shape_cast %788 : vector<8x1xf32> to vector<8x1xf32>
    %790 = vector.broadcast %789 : vector<8x1xf32> to vector<8x128xf32>
    %c0_413 = arith.constant 0 : index
    %c0_414 = arith.constant 0 : index
    %791 = vector.load %arg25[%c0_413, %c0_414] : memref<8x128xf32, #tpu.memory_space<vmem>>, vector<8x128xf32>
    tpu.vector_store %arg25[%c0_413, %c0_414], %790 {strides = array<i32>} : memref<8x128xf32, #tpu.memory_space<vmem>>, vector<8x128xf32>,
    return
  }
}

</mosaic_0001>

<bundles_post_ra>
// kernel: cgmc_forward.1
= control target key start
LH: loop header
LB: loop body
LE: loop exit
PB: predicated region body
PF: predicated region fallthrough
CT: control target
= control target key end

     0   :  { %s9709_s0 = inlined_call_operand.vmem [shape: f32[16,4], index: 0, kind: input, shape index: {}]   ;;  %s9710_s1 = inlined_call_operand.vmem [shape: f32[4,16], index: 1, kind: input, shape index: {}]   ;;  %s9711_s2 = inlined_call_operand.vmem [shape: f32[16,16], index: 2, kind: input, shape index: {}]   ;;  %s9712_s3 = inlined_call_operand.vmem [shape: f32[8,16,16], index: 3, kind: input, shape index: {}]   ;;  %s9713_s4 = inlined_call_operand.vmem [shape: f32[4,32], index: 4, kind: input, shape index: {}]   ;;  %s9714_s5 = inlined_call_operand.vmem [shape: f32[1,32], index: 5, kind: input, shape index: {}]   ;;  %s9715_s6 = inlined_call_operand.vmem [shape: f32[4,1], index: 6, kind: input, shape index: {}]   ;;  %s9716_s7 = inlined_call_operand.vmem [shape: f32[4,8], index: 7, kind: input, shape index: {}]   ;;  %s9717_s8 = inlined_call_operand.hbm [shape: f32[8,32], index: 8, kind: input, shape index: {}]   ;;  %s9718_s9 = inlined_call_operand.vmem [shape: f32[8,32,32], index: 9, kind: input, shape index: {}]   ;;  %s9719_s10 = inlined_call_operand.hbm [shape: f32[32,32], index: 10, kind: input, shape index: {}]   ;;  %s9720_s11 = inlined_call_operand.vmem [shape: f32[1,32], index: 11, kind: input, shape index: {}]   ;;  %s9721_s12 = inlined_call_operand.hbm [shape: f32[8,32,32], index: 12, kind: input, shape index: {}]   ;;  %s9722_s13 = inlined_call_operand.hbm [shape: f32[32,32], index: 13, kind: input, shape index: {}]   ;;  %s9723_s14 = inlined_call_operand.vmem [shape: f32[1,32], index: 14, kind: input, shape index: {}]   ;;  %s9724_s15 = inlined_call_operand.hbm [shape: f32[8,32,32], index: 15, kind: input, shape index: {}]   ;;  %s9725_s16 = inlined_call_operand.hbm [shape: f32[32,32], index: 16, kind: input, shape index: {}]   ;;  %s9726_s17 = inlined_call_operand.vmem [shape: f32[1,32], index: 17, kind: input, shape index: {}]   ;;  %s9727_s18 = inlined_call_operand.hbm [shape: f32[256,128], index: 18, kind: input, shape index: {}]   ;;  %s9728_s19 = inlined_call_operand.hbm [shape: f32[1,128], index: 19, kind: input, shape index: {}]   ;;  %s9729_s20 = inlined_call_operand.hbm [shape: f32[1,128], index: 20, kind: input, shape index: {}]   ;;  %s9730_s21 = inlined_call_operand.hbm [shape: f32[8], index: 21, kind: input, shape index: {}]   ;;  %s9731_s22 = inlined_call_operand.hbm [shape: f32[8,8], index: 22, kind: input, shape index: {}]   ;;  %s9732_s23 = inlined_call_operand.hbm [shape: f32[8], index: 23, kind: input, shape index: {}]   ;;  %s9733_s24 = inlined_call_operand.<no memory space> [shape: f32[1], index: 24, kind: input, shape index: {}]   ;;  %s9734_s25 = inlined_call_operand.vmem [shape: f32[8,128], index: 25, kind: output, shape index: {}]  }
   0x1   :  { %9789 = sst [smem:[#allocation47_spill]] %s9709_s0 }
   0x2   :  { %9790 = sst [smem:[#allocation48_spill]] %s9710_s1 }
   0x3   :  { %9791 = sst [smem:[#allocation49_spill]] %s9711_s2 }
   0x4   :  { %9792 = sst [smem:[#allocation50_spill]] %s9712_s3 }
   0x5   :  { %9793 = sst [smem:[#allocation51_spill]] %s9713_s4 }
   0x6   :  { %9794 = sst [smem:[#allocation52_spill]] %s9714_s5 }
   0x7   :  { %9795 = sst [smem:[#allocation53_spill]] %s9715_s6 }
   0x8   :  { %9796 = sst [smem:[#allocation54_spill]] %s9716_s7 }
   0x9   :  { %9797 = sst [smem:[#allocation55_spill]] %s9717_s8 }
   0xa   :  { %9798 = sst [smem:[#allocation56_spill]] %s9718_s9 }
   0xb   :  { %9799 = sst [smem:[#allocation57_spill]] %s9720_s11 }
   0xc   :  { %9800 = sst [smem:[#allocation58_spill]] %s9723_s14 }
   0xd   :  { %9801 = sst [smem:[#allocation59_spill]] %s9726_s17 }
   0xe   :  { %9802 = sst [smem:[#allocation60_spill]] %s9733_s24 }
   0xf   :  { %9803 = sst [smem:[#allocation61_spill]] %s9734_s25 }
  0x10   :  { %31 = vsyncpa [#allocation4], 0 }
  0x11   :  { %32 = vsyncpa [#allocation7], 0 }
  0x12   :  { %33 = vsyncpa [#allocation10], 0 }
  0x13   :  { %34 = vsyncpa [#allocation13], 0 }
  0x14   :  { %35 = vsyncpa [#allocation16], 0 }
  0x15   :  { %36 = vsyncpa [#allocation5], 0 }
  0x16   :  { %37 = vsyncpa [#allocation20], 0  ;;  %s8041_s29 = smov [#allocation6]   ;;  %s7799_s7 = scalar_lea.hbm %s9719_s10, 512 }
  0x17   :  { %s71_s2 = sshll.u32 %s8041_s29, 4  ;;  %p7800_p0 = scmp.ne.s32.totalorder %s9719_s10, %s7799_s7  ;;  %s72_s2 = int_to_ptr.vmem [resolvable:$true] %s71_s2 }
  0x18   :  { %p7803_p1 = scmp.lt.u32.totalorder %s7799_s7, %s9719_s10 }
  0x1a   :  { %p7805_p2 = pnand %p7803_p1, %p7800_p0 }
  0x1c   :  { %7808 = shalt.err (!%p7805_p2)
}
  0x1d   :  { %s7809_s27 = scalar_lea.vmem %s72_s2, 512  ;;  %p7814_p4 = scmp.lt.s32.totalorder %s72_s2, %s72_s2 }
  0x1e   :  { %p7810_p3 = scmp.ne.s32.totalorder %s72_s2, %s7809_s27  ;;  %p7815_p5 = scmp.lt.s32.totalorder %s7809_s27, %s7809_s27 }
  0x20   :  { %p7816_p6 = por %p7815_p5, %p7814_p4 }
  0x22   :  { %p7817_p7 = pnand %p7816_p6, %p7810_p3 }
  0x24   :  { %7820 = shalt.err (!%p7817_p7)
}
  0x25   :  { %s8042_s4 = smov 128   ;;  %s8043_s28 = smov 8  }
  0x26   :  { %77 = dma.hbm_to_vmem [thread:$0]  %s9719_s10, 512, %s72_s2, [#allocation7], %s8042_s4, %s8042_s4, %s8043_s28  }
  0x27   :  { %s8044_s0 = smov [#allocation9]   ;;  %s8045_s6 = smov [#allocation12]  }
  0x28   :  { %s97_s29 = sshll.u32 %s8044_s0, 4  ;;  %s123_s30 = sshll.u32 %s8045_s6, 4  ;;  %s98_s29 = int_to_ptr.vmem [resolvable:$true] %s97_s29  ;;  %s124_s30 = int_to_ptr.vmem [resolvable:$true] %s123_s30 }
  0x29   :  { %s7821_s26 = scalar_lea.hbm %s9722_s13, 512 }
  0x2a   :  { %p7822_p8 = scmp.ne.s32.totalorder %s9722_s13, %s7821_s26  ;;  %p7825_p9 = scmp.lt.u32.totalorder %s7821_s26, %s9722_s13 }
  0x2c   :  { %p7827_p10 = pnand %p7825_p9, %p7822_p8 }
  0x2e   :  { %7830 = shalt.err (!%p7827_p10)
}
  0x2f   :  { %s7831_s10 = scalar_lea.vmem %s98_s29, 512  ;;  %p7836_p12 = scmp.lt.s32.totalorder %s98_s29, %s98_s29 }
  0x30   :  { %p7832_p11 = scmp.ne.s32.totalorder %s98_s29, %s7831_s10  ;;  %p7837_p13 = scmp.lt.s32.totalorder %s7831_s10, %s7831_s10 }
  0x32   :  { %p7838_p0 = por %p7837_p13, %p7836_p12 }
  0x34   :  { %p7839_p1 = pnand %p7838_p0, %p7832_p11 }
  0x36   :  { %7842 = shalt.err (!%p7839_p1)
}
  0x37   :  { %103 = dma.hbm_to_vmem [thread:$0]  %s9722_s13, 512, %s98_s29, [#allocation10], %s8042_s4, %s8042_s4, %s8043_s28  }
  0x38   :  { %s7843_s0 = scalar_lea.hbm %s9725_s16, 512 }
  0x39   :  { %p7844_p2 = scmp.ne.s32.totalorder %s9725_s16, %s7843_s0  ;;  %p7847_p3 = scmp.lt.u32.totalorder %s7843_s0, %s9725_s16 }
  0x3b   :  { %p7849_p4 = pnand %p7847_p3, %p7844_p2 }
  0x3d   :  { %7852 = shalt.err (!%p7849_p4)
}
  0x3e   :  { %s7853_s1 = scalar_lea.vmem %s124_s30, 512  ;;  %p7858_p6 = scmp.lt.s32.totalorder %s124_s30, %s124_s30 }
  0x3f   :  { %p7854_p5 = scmp.ne.s32.totalorder %s124_s30, %s7853_s1  ;;  %p7859_p7 = scmp.lt.s32.totalorder %s7853_s1, %s7853_s1 }
  0x41   :  { %p7860_p8 = por %p7859_p7, %p7858_p6 }
  0x43   :  { %p7861_p9 = pnand %p7860_p8, %p7854_p5 }
  0x45   :  { %7864 = shalt.err (!%p7861_p9)
}
  0x46   :  { %129 = dma.hbm_to_vmem [thread:$0]  %s9725_s16, 512, %s124_s30, [#allocation13], %s8042_s4, %s8042_s4, %s8043_s28  }
  0x47   :  { %s8046_s8 = smov [#allocation15]   ;;  %s7865_s9 = scalar_lea.hbm %s9728_s19, 16 }
  0x48   :  { %s150_s27 = sshll.u32 %s8046_s8, 4  ;;  %p7866_p10 = scmp.ne.s32.totalorder %s9728_s19, %s7865_s9  ;;  %s151_s27 = int_to_ptr.vmem [resolvable:$true] %s150_s27 }
  0x49   :  { %p7869_p11 = scmp.lt.u32.totalorder %s7865_s9, %s9728_s19 }
  0x4b   :  { %p7871_p12 = pnand %p7869_p11, %p7866_p10 }
  0x4d   :  { %7874 = shalt.err (!%p7871_p12)
}
  0x4e   :  { %s7875_s7 = scalar_lea.vmem %s151_s27, 16  ;;  %s7879_s16 = scalar_lea.vmem %s151_s27, 32 }
  0x4f   :  { %p7876_p13 = scmp.ne.s32.totalorder %s151_s27, %s7875_s7  ;;  %p7880_p0 = scmp.lt.s32.totalorder %s151_s27, %s151_s27 }
  0x50   :  { %p7881_p1 = scmp.lt.s32.totalorder %s7879_s16, %s7875_s7 }
  0x52   :  { %p7882_p2 = por %p7881_p1, %p7880_p0 }
  0x54   :  { %p7883_p3 = pnand %p7882_p2, %p7876_p13 }
  0x56   :  { %7886 = shalt.err (!%p7883_p3)
}
  0x57   :  { %153 = dma.hbm_to_vmem [thread:$0]  %s9728_s19, 16, %s151_s27, [#allocation16]  }
  0x58   :  { %s7887_s13 = scalar_lea.hbm %s9731_s22, 128 }
  0x59   :  { %p7888_p4 = scmp.ne.s32.totalorder %s9731_s22, %s7887_s13  ;;  %p7891_p5 = scmp.lt.u32.totalorder %s7887_s13, %s9731_s22 }
  0x5b   :  { %p7893_p6 = pnand %p7891_p5, %p7888_p4 }
  0x5d   :  { %7896 = shalt.err (!%p7893_p6)
}
  0x5e   :  { %s8047_s9 = smov [#allocation19]   ;;  %s8048_s19 = smov [#allocation3]  }
  0x5f   :  { %179 = dma.hbm_to_smem %s9731_s22, 128, %s8047_s9, [#allocation20]  }
  0x60   :  { %s60_s27 = sshll.u32 %s8048_s19, 4  ;;  %s8049_s0 = smov [#allocation8]   ;;  %s61_s27 = int_to_ptr.vmem [resolvable:$true] %s60_s27 }
  0x61   :  { %s85_s6 = sshll.u32 %s8049_s0, 4  ;;  %s9804_s30 = sld [smem:[#allocation55_spill]]  ;;  %s86_s6 = int_to_ptr.vmem [resolvable:$true] %s85_s6 }
  0x67   :  { %s7897_s3 = scalar_lea.hbm %s9804_s30, 128 }
  0x68   :  { %p7898_p7 = scmp.ne.s32.totalorder %s9804_s30, %s7897_s3  ;;  %p7901_p8 = scmp.lt.u32.totalorder %s7897_s3, %s9804_s30 }
  0x6a   :  { %p7903_p9 = pnand %p7901_p8, %p7898_p7 }
  0x6c   :  { %7906 = shalt.err (!%p7903_p9)
}
  0x6d   :  { %s7907_s22 = scalar_lea.vmem %s61_s27, 128  ;;  %p7912_p11 = scmp.lt.s32.totalorder %s61_s27, %s61_s27 }
  0x6e   :  { %p7908_p10 = scmp.ne.s32.totalorder %s61_s27, %s7907_s22  ;;  %p7913_p12 = scmp.lt.s32.totalorder %s7907_s22, %s7907_s22 }
  0x70   :  { %p7914_p13 = por %p7913_p12, %p7912_p11 }
  0x72   :  { %p7915_p0 = pnand %p7914_p13, %p7908_p10 }
  0x74   :  { %7918 = shalt.err (!%p7915_p0)
}
  0x75   :  { %63 = dma.hbm_to_vmem [thread:$0]  %s9804_s30, 128, %s61_s27, [#allocation4]  }
  0x76   :  { %s7919_s5 = scalar_lea.hbm %s9721_s12, 4096 }
  0x77   :  { %p7920_p1 = scmp.ne.s32.totalorder %s9721_s12, %s7919_s5  ;;  %p7923_p2 = scmp.lt.u32.totalorder %s7919_s5, %s9721_s12 }
  0x79   :  { %p7925_p3 = pnand %p7923_p2, %p7920_p1 }
  0x7b   :  { %7928 = shalt.err (!%p7925_p3)
}
  0x7c   :  { %s7929_s16 = scalar_lea.vmem %s86_s6, 4096  ;;  %p7934_p5 = scmp.lt.s32.totalorder %s86_s6, %s86_s6 }
  0x7d   :  { %p7930_p4 = scmp.ne.s32.totalorder %s86_s6, %s7929_s16  ;;  %p7935_p6 = scmp.lt.s32.totalorder %s7929_s16, %s7929_s16 }
  0x7f   :  { %p7936_p7 = por %p7935_p6, %p7934_p5 }
  0x81   :  { %p7937_p8 = pnand %p7936_p7, %p7930_p4 }
  0x83   :  { %7940 = shalt.err (!%p7937_p8)
}
  0x84   :  { %91 = dma.hbm_to_vmem [thread:$0]  %s9721_s12, 4096, %s86_s6, [#allocation7], %s8042_s4, %s8042_s4, %s8043_s28  }
  0x85   :  { %s8050_s3 = smov [#allocation11]   ;;  %s8051_s1 = smov [#allocation14]  }
  0x86   :  { %s111_s26 = sshll.u32 %s8050_s3, 4  ;;  %s137_s13 = sshll.u32 %s8051_s1, 4  ;;  %s112_s26 = int_to_ptr.vmem [resolvable:$true] %s111_s26  ;;  %s138_s13 = int_to_ptr.vmem [resolvable:$true] %s137_s13 }
  0x87   :  { %s7941_s8 = scalar_lea.hbm %s9724_s15, 4096 }
  0x88   :  { %p7942_p9 = scmp.ne.s32.totalorder %s9724_s15, %s7941_s8  ;;  %p7945_p10 = scmp.lt.u32.totalorder %s7941_s8, %s9724_s15 }
  0x8a   :  { %p7947_p11 = pnand %p7945_p10, %p7942_p9 }
  0x8c   :  { %7950 = shalt.err (!%p7947_p11)
}
  0x8d   :  { %s7951_s12 = scalar_lea.vmem %s112_s26, 4096  ;;  %p7956_p13 = scmp.lt.s32.totalorder %s112_s26, %s112_s26 }
  0x8e   :  { %p7952_p12 = scmp.ne.s32.totalorder %s112_s26, %s7951_s12  ;;  %p7957_p0 = scmp.lt.s32.totalorder %s7951_s12, %s7951_s12 }
  0x90   :  { %p7958_p1 = por %p7957_p0, %p7956_p13 }
  0x92   :  { %p7959_p2 = pnand %p7958_p1, %p7952_p12 }
  0x94   :  { %7962 = shalt.err (!%p7959_p2)
}
  0x95   :  { %117 = dma.hbm_to_vmem [thread:$0]  %s9724_s15, 4096, %s112_s26, [#allocation10], %s8042_s4, %s8042_s4, %s8043_s28  }
  0x96   :  { %s7963_s7 = scalar_lea.hbm %s9727_s18, 4096 }
  0x97   :  { %p7964_p3 = scmp.ne.s32.totalorder %s9727_s18, %s7963_s7  ;;  %p7967_p4 = scmp.lt.u32.totalorder %s7963_s7, %s9727_s18 }
  0x99   :  { %p7969_p5 = pnand %p7967_p4, %p7964_p3 }
  0x9b   :  { %7972 = shalt.err (!%p7969_p5)
}
  0x9c   :  { %s7973_s1 = scalar_lea.vmem %s138_s13, 4096  ;;  %p7978_p7 = scmp.lt.s32.totalorder %s138_s13, %s138_s13 }
  0x9d   :  { %p7974_p6 = scmp.ne.s32.totalorder %s138_s13, %s7973_s1  ;;  %p7979_p8 = scmp.lt.s32.totalorder %s7973_s1, %s7973_s1 }
  0x9f   :  { %p7980_p9 = por %p7979_p8, %p7978_p7 }
  0xa1   :  { %p7981_p10 = pnand %p7980_p9, %p7974_p6 }
  0xa3   :  { %7984 = shalt.err (!%p7981_p10)
}
  0xa4   :  { %143 = dma.hbm_to_vmem [thread:$0]  %s9727_s18, 4096, %s138_s13, [#allocation13], %s8042_s4, %s8042_s4, %s8043_s28  }
  0xa5   :  { %s8052_s29 = smov [#allocation17]   ;;  %s7985_s2 = scalar_lea.hbm %s9729_s20, 16 }
  0xa6   :  { %s160_s22 = sshll.u32 %s8052_s29, 4  ;;  %p7986_p11 = scmp.ne.s32.totalorder %s9729_s20, %s7985_s2  ;;  %s161_s22 = int_to_ptr.vmem [resolvable:$true] %s160_s22 }
  0xa7   :  { %p7989_p12 = scmp.lt.u32.totalorder %s7985_s2, %s9729_s20 }
  0xa9   :  { %p7991_p13 = pnand %p7989_p12, %p7986_p11 }
  0xab   :  { %7994 = shalt.err (!%p7991_p13)
}
  0xac   :  { %s7995_s25 = scalar_lea.vmem %s161_s22, 16  ;;  %s7999_s18 = scalar_lea.vmem %s161_s22, 32 }
  0xad   :  { %p7996_p0 = scmp.ne.s32.totalorder %s161_s22, %s7995_s25  ;;  %p8000_p1 = scmp.lt.s32.totalorder %s161_s22, %s161_s22 }
  0xae   :  { %p8001_p2 = scmp.lt.s32.totalorder %s7999_s18, %s7995_s25 }
  0xb0   :  { %p8002_p3 = por %p8001_p2, %p8000_p1 }
  0xb2   :  { %p8003_p4 = pnand %p8002_p3, %p7996_p0 }
  0xb4   :  { %8006 = shalt.err (!%p8003_p4)
}
  0xb5   :  { %163 = dma.hbm_to_vmem [thread:$0]  %s9729_s20, 16, %s161_s22, [#allocation16]  }
  0xb6   :  { %s8007_s0 = scalar_lea.hbm %s9730_s21, 16 }
  0xb7   :  { %p8008_p5 = scmp.ne.s32.totalorder %s9730_s21, %s8007_s0  ;;  %p8011_p6 = scmp.lt.u32.totalorder %s8007_s0, %s9730_s21 }
  0xb9   :  { %p8013_p7 = pnand %p8011_p6, %p8008_p5 }
  0xbb   :  { %8016 = shalt.err (!%p8013_p7)
}
  0xbc   :  { %s8053_s3 = smov [#allocation18]   ;;  %s8017_s29 = scalar_lea.hbm %s9732_s23, 16 }
  0xbd   :  { %171 = dma.hbm_to_smem %s9730_s21, 16, %s8053_s3, [#allocation5]  }
  0xbe   :  { %p8018_p8 = scmp.ne.s32.totalorder %s9732_s23, %s8017_s29  ;;  %p8021_p9 = scmp.lt.u32.totalorder %s8017_s29, %s9732_s23 }
  0xc0   :  { %p8023_p10 = pnand %p8021_p9, %p8018_p8 }
  0xc2   :  { %8026 = shalt.err (!%p8023_p10)
}
  0xc3   :  { %s8054_s9 = smov [#allocation21]  }
  0xc4   :  { %187 = dma.hbm_to_smem %s9732_s23, 16, %s8054_s9, [#allocation20]  }
  0xc5   :  { %8027 = dma.done.wait [#allocation4], 128  }
  0xc6   :  { %8028 = vsyncadd [#allocation4], 4294967168 }
  0xc7   :  { %8029 = dma.done.wait [#allocation7], 4608  }
  0xc8   :  { %8030 = vsyncadd [#allocation7], 4294962688 }
  0xc9   :  { %8031 = dma.done.wait [#allocation10], 4608  }
  0xca   :  { %8032 = vsyncadd [#allocation10], 4294962688 }
  0xcb   :  { %8033 = dma.done.wait [#allocation13], 4608  }
  0xcc   :  { %8034 = vsyncadd [#allocation13], 4294962688 }
  0xcd   :  { %8035 = dma.done.wait [#allocation16], 32  }
  0xce   :  { %8036 = vsyncadd [#allocation16], 4294967264 }
  0xcf   :  { %8037 = dma.done.wait [#allocation5], 16  }
  0xd0   :  { %8038 = vsyncadd [#allocation5], 4294967280 }
  0xd1   :  { %8039 = dma.done.wait [#allocation20], 144  }
  0xd2   :  { %8040 = vsyncadd [#allocation20], 4294967152 }
  0xd3   :  { %226 = sfence }
  0xd4   :  { %s9805_s25 = sld [smem:[#allocation51_spill]]  ;;  %vm263_vm0 = vcmask 1043456   ;;  %s9806_s4 = sld [smem:[#allocation47_spill]]  ;;  %vm256_vm1 = vcmask 31744   ;;  %v8055_v4 = vmov 0   ;;  %v599_v5 = vlaneseq  ;;  %v551_v8 = vld [vmem:[#allocation3] sm:$0xff] }
  0xd5   :  { %s9807_s7 = sld [smem:[#allocation53_spill]]  ;;  %7678 = vset.pattern.permute.xlu0 %v8055_v4  ;;  %7679 = vset.pattern.permute.xlu1 %v8055_v4  ;;  %v8056_v16 = vmov 1   ;;  %s9808_s30 = sld [smem:[#allocation52_spill]]  ;;  %vm351_vm2 = vcmask 261120   ;;  %v8057_v50 = vmov 3   ;;  %v8058_v53 = vmov 5  }
  0xd6   :  { %v600_v6 = vshrl.u32 %v599_v5, 7  ;;  %s9809_s15 = sld [smem:[#allocation54_spill]]  ;;  %s6120_s26 = sld [smem:[#allocation18 + $0x1]]  ;;  %vm365_vm3 = vcmask 125952   ;;  %vm433_vm7 = vcmask 130048  }
  0xd7   :  { %s373_s20 = sld [smem:[#allocation18]]  ;;  %s6121_s29 = sld [smem:[#allocation18 + $0x2]] }
  0xd8   :  { %v994_v7 = vsub.s32 4, %v600_v6  ;;  %v1190_v9 = vsub.s32 6, %v600_v6  ;;  %v1288_v10 = vsub.s32 7, %v600_v6  ;;  %v700_v14 = vsub.s32 1, %v600_v6  ;;  %s9810_s10 = sld [smem:[#allocation50_spill]]  ;;  %s8420_s5 = sld [smem:[#allocation18 + $0x3]] }
  0xd9   :  { %v896_v17 = vsub.s32 3, %v600_v6  ;;  %v1092_v19 = vsub.s32 5, %v600_v6  ;;  %v601_v21 = vsub.s32 0, %v600_v6  ;;  %v798_v39 = vsub.s32 2, %v600_v6  ;;  %s9811_s6 = sld [smem:[#allocation48_spill]]  ;;  %s6123_s19 = sld [smem:[#allocation18 + $0x4]] }
  0xda   :  { %v255_v0 = vld [vmem:[%s9805_s25] sm:$0xf]  ;;  %v228_v2 = vld [vmem:[%s9806_s4 + $0x8] sm:$0xff]  ;;  %v995_v11 = vrot.slane %v551_v8, %v994_v7  ;;  %v1191_v12 = vrot.slane %v551_v8, %v1190_v9  ;;  %v1289_v13 = vrot.slane %v551_v8, %v1288_v10  ;;  %v701_v15 = vrot.slane %v551_v8, %v700_v14  ;;  %s6126_s9 = sld [smem:[#allocation18 + $0x7]]  ;;  %s9812_s16 = sld [smem:[#allocation49_spill]] }
  0xdb   :  { %v227_v1 = vld [vmem:[%s9806_s4] sm:$0xff]  ;;  %6655 = vmatprep.subr.msk.mxu0 %vm263_vm0, %v255_v0  ;;  %v897_v18 = vrot.slane %v551_v8, %v896_v17  ;;  %v1093_v20 = vrot.slane %v551_v8, %v1092_v19  ;;  %v602_v22 = vrot.slane %v551_v8, %v601_v21  ;;  %v799_v40 = vrot.slane %v551_v8, %v798_v39  ;;  %s8561_s3 = sld [smem:[#allocation19 + $0x1]]  ;;  %s8619_s2 = sld [smem:[#allocation19 + $0x3]] }
  0xdc   :  { %6657 = vmatprep.mubr.msk.f32.mxu0 %vm256_vm1, %v227_v1  ;;  %v358_v3 = vld [vmem:[%s9807_s7] sm:$0xf]  ;;  %6656 = vmatpush3.msk.msra.mxu0 %vm263_vm0, %v255_v0  ;;  %v378_v57 = vstv %s6120_s26  ;;  %s6125_s26 = sld [smem:[#allocation18 + $0x6]]  ;;  %s8563_s1 = sld [smem:[#allocation19 + $0x81]] }
  0xdd   :  { %6658 = vmatmul.mubr.msk.f32.vlgmr.msra.gmra.mrb[0].mxu0 %vm256_vm1, %v228_v2  ;;  %361 = vperm.xlu0 %7678, %v358_v3   ;;  %v6119_v23 = vld [vmem:[%s9808_s30] ss:$0 sm:$0xff]  ;;  %v374_v56 = vstv %s373_s20  ;;  %v384_v3 = vstv %s6121_s29  ;;  %s6124_s30 = sld [smem:[#allocation18 + $0x5]]  ;;  %s8567_s20 = sld [smem:[#allocation19 + $0x181]] }
  0xde   :  { %v8405_v49 = vld [vmem:[%s9809_s15] sm:$0xf]  ;;  %v8413_v54 = vld [vmem:[%s9810_s10 + $0x8] sm:$0xff]  ;;  %v8418_v55 = vld [vmem:[%s9810_s10 + $0x18] sm:$0xff]  ;;  %s8565_s15 = sld [smem:[#allocation19 + $0x101]]  ;;  %s8625_s12 = sld [smem:[#allocation19 + $0x183]] }
  0xdf   :  { %v8425_v59 = vld [vmem:[%s9811_s6] sm:$0xf]  ;;  %v8436_v62 = vld [vmem:[%s9810_s10 + $0x10] sm:$0xff]  ;;  %v376_v63 = vmul.f32 %v374_v56, %v8413_v54  ;;  %v380_v0 = vmul.f32 %v8418_v55, %v378_v57  ;;  %v8444_v2 = vld [vmem:[%s9810_s10 + $0x28] sm:$0xff]  ;;  %v396_v19 = vstv %s6123_s19  ;;  %s8574_s29 = sld [smem:[#allocation19 + $0x281]]  ;;  %s8628_s21 = sld [smem:[#allocation19 + $0x203]] }
  0xe0   :  { %v8431_v61 = vld [vmem:[%s9810_s10] sm:$0xff]  ;;  %v379_v5 = vmul.f32 %v8436_v62, %v378_v57  ;;  %v386_v8 = vmul.f32 %v8444_v2, %v384_v3  ;;  %v8458_v10 = vld [vmem:[%s9810_s10 + $0x38] sm:$0xff]  ;;  %v8465_v14 = vld [vmem:[%s9810_s10 + $0x30] sm:$0xff]  ;;  %s8583_s22 = sld [smem:[#allocation19 + $0x301]]  ;;  %s8631_s25 = sld [smem:[#allocation19 + $0x283]] }
  0xe1   :  { %7680 = vset.pattern.permute.xlu0 %v8056_v16  ;;  %v375_v4 = vmul.f32 %v374_v56, %v8431_v61  ;;  %v8451_v6 = vld [vmem:[%s9810_s10 + $0x20] sm:$0xff]  ;;  %v382_v7 = vadd.f32 %v380_v0, %v376_v63  ;;  %v8495_v39 = vld [vmem:[%s9810_s10 + $0x68] sm:$0xff]  ;;  %s8589_s8 = sld [smem:[#allocation19 + $0x381]]  ;;  %9813 = sst [smem:[#allocation29_spill]] %s8619_s2 }
  0xe2   :  { %s8638_s23 = sld [smem:[#allocation19 + $0x303]]  ;;  %s8667_s4 = sld [smem:[#allocation19]] }
  0xe3   :  { %v388_v16 = vadd.f32 %v386_v8, %v382_v7  ;;  %s8647_s18 = sld [smem:[#allocation19 + $0x383]]  ;;  %s8669_s28 = sld [smem:[#allocation19 + $0x80]] }
  0xe4   :  { %9816 = sst [smem:[#allocation32_spill]] %s8625_s12  ;;  %s8678_s13 = sld [smem:[#allocation19 + $0x100]] }
  0xe5   :  { %9817 = sst [smem:[#allocation33_spill]] %s8628_s21  ;;  %s8682_s19 = sld [smem:[#allocation19 + $0x180]] }
  0xe6   :  { %9818 = sst [smem:[#allocation34_spill]] %s8631_s25  ;;  %s8691_s0 = sld [smem:[#allocation19 + $0x200]] }
  0xe7   :  { %s8698_s7 = sld [smem:[#allocation19 + $0x280]]  ;;  %s8740_s17 = sld [smem:[#allocation21 + $0x1]] }
  0xe8   :  { %9819 = sst [smem:[#allocation35_spill]] %s8638_s23  ;;  %s8707_s27 = sld [smem:[#allocation19 + $0x300]] }
  0xe9   :  { %9820 = sst [smem:[#allocation36_spill]] %s8647_s18  ;;  %s8734_s24 = sld [smem:[#allocation21]] }
  0xea   :  { %s8759_s14 = sld [smem:[#allocation19 + $0x2]] }
  0xeb   :  { %s8761_s11 = sld [smem:[#allocation19 + $0x82]] }
  0xec   :  { %s8763_s6 = sld [smem:[#allocation19 + $0x102]] }
 0x15c   :  { %v362_v58 = vpop.permute.xlu0 %361 }
 0x15d   :  { %v364_v1 = vmul.f32 %v362_v58, %v8425_v59  ;;  %v8508_v58 = vld [vmem:[%s9810_s10 + $0x78] sm:$0xff] }
 0x15f   :  { %v366_v9 = vsel %vm365_vm3, %v364_v1, 0.0  ;;  %v8514_v1 = vld [vmem:[%s9810_s10 + $0x70] sm:$0xff] }
 0x1b0   :  { %v6659_v24 = vpop.f32.mrb[0].mxu0 }
 0x1b1   :  { %v333_v25 = vpop.f32.mrb[1].mxu0  ;;  %v350_v26 = vmul.f32 %v6659_v24, %v6119_v23  ;;  %v8373_v27 = vmul.f32 %v6659_v24, %v1191_v12  ;;  %v8375_v28 = vmul.f32 %v6659_v24, %v1289_v13  ;;  %v8377_v29 = vmul.f32 %v6659_v24, %v602_v22 }
 0x1b2   :  { %v7220_v30 = vpack.c.bf16 %v6659_v24, %v333_v25  ;;  %v349_v31 = vmul.f32 %v6119_v23, %v333_v25  ;;  %v996_v33 = vmul.f32 %v995_v11, %v333_v25  ;;  %v8380_v34 = vmul.f32 %v1289_v13, %v333_v25 }
 0x1b3   :  { %v355_v32 = vsel %vm351_vm2, %v350_v26, 0.0  ;;  %v603_v36 = vmul.f32 %v602_v22, %v333_v25  ;;  %v8384_v38 = vmul.f32 %v701_v15, %v333_v25  ;;  %v8386_v41 = vmul.f32 %v6659_v24, %v701_v15  ;;  %v8477_v22 = vld [vmem:[%s9810_s10 + $0x40] sm:$0xff]  ;;  %v8483_v26 = vld [vmem:[%s9810_s10 + $0x58] sm:$0xff] }
 0x1b4   :  { %356 = vadd.xlane.f32.xlu1 %v355_v32  ;;  %7221 = vmatprep.subr.bf16.mxu0 %v7220_v30  ;;  %v352_v35 = vsel %vm351_vm2, %v349_v31, 0.0  ;;  %v8388_v42 = vmul.f32 %v6659_v24, %v799_v40  ;;  %v8390_v43 = vmul.f32 %v897_v18, %v333_v25  ;;  %v8392_v44 = vmul.f32 %v6659_v24, %v897_v18  ;;  %v8471_v18 = vld [vmem:[%s9810_s10 + $0x48] sm:$0xff] }
 0x1b5   :  { %7223 = vmatpush3.bf16.msra.mxu0 %v7220_v30  ;;  %353 = vadd.xlane.f32.xlu0 %v352_v35  ;;  %v605_v37 = vsel %vm351_vm2, %v603_v36, 0.0  ;;  %v8394_v45 = vmul.f32 %v6659_v24, %v995_v11  ;;  %v8396_v46 = vmul.f32 %v1093_v20, %v333_v25  ;;  %v8398_v47 = vmul.f32 %v6659_v24, %v1093_v20 }
 0x1b6   :  { %v8400_v48 = vmul.f32 %v1191_v12, %v333_v25  ;;  %v800_v51 = vmul.f32 %v799_v40, %v333_v25  ;;  %v998_v60 = vsel %vm351_vm2, %v996_v33, 0.0  ;;  %v390_v11 = vstv %s8420_s5  ;;  %v8489_v33 = vld [vmem:[%s9810_s10 + $0x50] sm:$0xff]  ;;  %s8623_s5 = sld [smem:[#allocation19 + $0x103]] }
 0x1b7   :  { %v381_v12 = vadd.f32 %v379_v5, %v375_v4  ;;  %v385_v13 = vmul.f32 %v8451_v6, %v384_v3  ;;  %v367_v15 = vrot.slane %v366_v9, 4  ;;  %v392_v17 = vmul.f32 %v8458_v10, %v390_v11 }
 0x1b8   :  { %v802_v52 = vsel %vm351_vm2, %v800_v51, 0.0  ;;  %v391_v21 = vmul.f32 %v8465_v14, %v390_v11  ;;  %v398_v25 = vmul.f32 %v8471_v18, %v396_v19  ;;  %v402_v30 = vstv %s6124_s30  ;;  %s8716_s30 = sld [smem:[#allocation19 + $0x380]] }
 0x1b9   :  { %606 = vadd.xlane.f32.xlu0 %v605_v37  ;;  %v387_v20 = vadd.f32 %v385_v13, %v381_v12  ;;  %v368_v23 = vadd.f32 %v367_v15, %v366_v9  ;;  %v394_v24 = vadd.f32 %v392_v17, %v388_v16  ;;  %v397_v32 = vmul.f32 %v8477_v22, %v396_v19 }
 0x1ba   :  { %v404_v37 = vmul.f32 %v8483_v26, %v402_v30  ;;  %v408_v40 = vstv %s6125_s26  ;;  %v403_v51 = vmul.f32 %v8489_v33, %v402_v30  ;;  %s8570_s26 = sld [smem:[#allocation19 + $0x201]] }
 0x1bb   :  { %v393_v31 = vadd.f32 %v391_v21, %v387_v20  ;;  %v369_v35 = vrot.slane %v368_v23, 2  ;;  %v400_v36 = vadd.f32 %v398_v25, %v394_v24  ;;  %v410_v57 = vmul.f32 %v8495_v39, %v408_v40  ;;  %v8521_v20 = vld [vmem:[%s9812_s16] sm:$0xff] }
 0x1bc   :  { %vm429_vm6 = vcmp.gt.f32.partialorder %v8521_v20, 0.0  ;;  %9815 = sst [smem:[#allocation31_spill]] %s8623_s5 }
 0x1bd   :  { %v406_v56 = vadd.f32 %v404_v37, %v400_v36 }
 0x1bf   :  { %v412_v4 = vadd.f32 %v410_v57, %v406_v56 }
 0x1cf   :  { %711 = vperm.xlu0 %7680, %v8405_v49  }
 0x1d3   :  { %7682 = vset.pattern.permute.xlu0 %v8057_v50  ;;  %v399_v50 = vadd.f32 %v397_v32, %v393_v31 }
 0x1d5   :  { %v405_v63 = vadd.f32 %v403_v51, %v399_v50  ;;  %v1292_v50 = vsel %vm351_vm2, %v8380_v34, 0.0  ;;  %v1295_v51 = vsel %vm351_vm2, %v8375_v28, 0.0 }
 0x1ee   :  { %803 = vadd.xlane.f32.xlu0 %v802_v52  ;;  %v8501_v52 = vld [vmem:[%s9810_s10 + $0x60] sm:$0xff] }
 0x1ef   :  { %v409_v0 = vmul.f32 %v8501_v52, %v408_v40  ;;  %v1197_v40 = vsel %vm351_vm2, %v8373_v27, 0.0 }
 0x1f1   :  { %v411_v7 = vadd.f32 %v409_v0, %v405_v63 }
 0x204   :  { %907 = vperm.xlu0 %7682, %v8405_v49  }
 0x208   :  { %7684 = vset.pattern.permute.xlu0 %v8058_v53  ;;  %v370_v53 = vadd.f32 %v369_v35, %v368_v23  ;;  %v8526_v23 = vld [vmem:[%s9812_s16 + $0x8] sm:$0xff]  ;;  %s6194_s16 = sld [smem:[#allocation19 + $0x107]] }
 0x209   :  { %vm430_vm8 = vcmp.gt.f32.partialorder %v8526_v23, 0.0 }
 0x20a   :  { %v371_v3 = vrot.slane %v370_v53, 1 }
 0x20c   :  { %v372_v9 = vadd.f32 %v371_v3, %v370_v53 }
 0x223   :  { %999 = vadd.xlane.f32.xlu0 %v998_v60  ;;  %v414_v60 = vstv %s6126_s9  ;;  %s8621_s9 = sld [smem:[#allocation19 + $0x83]] }
 0x224   :  { %v416_v5 = vmul.f32 %v8508_v58, %v414_v60  ;;  %v415_v8 = vmul.f32 %v8514_v1, %v414_v60 }
 0x226   :  { %v418_v11 = vadd.f32 %v416_v5, %v412_v4  ;;  %v417_v13 = vadd.f32 %v415_v8, %v411_v7  ;;  %v8059_v7 = vmov 2   ;;  %v608_v8 = vsel %vm351_vm2, %v8377_v29, 0.0 }
 0x227   :  { %v653_v29 = vstv %s8561_s3  ;;  %s6197_s3 = sld [smem:[#allocation19 + $0x287]] }
 0x229   :  { %9814 = sst [smem:[#allocation30_spill]] %s8621_s9 }
 0x239   :  { %1103 = vperm.xlu0 %7684, %v8405_v49  }
 0x241   :  { %v357_v12 = vpop.xlane.xlu1 %356 }
 0x242   :  { %v420_v15 = vadd.f32 %v372_v9, %v357_v12  ;;  %v354_v16 = vpop.xlane.xlu0 %353 }
 0x243   :  { %v419_v17 = vadd.f32 %v372_v9, %v354_v16  ;;  %v704_v9 = vsel %vm351_vm2, %v8384_v38, 0.0  ;;  %v657_v38 = vstv %s8563_s1  ;;  %s6165_s1 = sld [smem:[#allocation19 + $0x4]] }
 0x244   :  { %v422_v19 = vadd.f32 %v420_v15, %v418_v11  ;;  %v707_v11 = vsel %vm351_vm2, %v8386_v41, 0.0  ;;  %v655_v41 = vmul.f32 %v653_v29, %v8413_v54  ;;  %v659_v12 = vmul.f32 %v8418_v55, %v657_v38 }
 0x245   :  { %v421_v21 = vadd.f32 %v419_v17, %v417_v13  ;;  %v8060_v13 = vmov 4   ;;  %v663_v15 = vstv %s8565_s15  ;;  %s9843_s15 = sld [smem:[#allocation30_spill]] }
 0x246   :  { %vm424_vm4 = vcmp.gt.f32.partialorder %v422_v19, 0.0  ;;  %v426_v24 = vmul.f32 0.01, %v422_v19  ;;  %v661_v16 = vadd.f32 %v659_v12, %v655_v41  ;;  %v665_v17 = vmul.f32 %v8444_v2, %v663_v15 }
 0x247   :  { %vm423_vm5 = vcmp.gt.f32.partialorder %v421_v21, 0.0  ;;  %v425_v25 = vmul.f32 0.01, %v421_v21  ;;  %v9749_v12 = vstv %s8625_s12  ;;  %s8801_s12 = sld [smem:[#allocation19 + $0x382]] }
 0x248   :  { %v428_v31 = vsel %vm424_vm4, %v422_v19, %v426_v24  ;;  %v669_v19 = vstv %s8567_s20  ;;  %s9846_s20 = sld [smem:[#allocation32_spill]] }
 0x249   :  { %v427_v30 = vsel %vm423_vm5, %v421_v21, %v425_v25  ;;  %v432_v36 = vsel %vm430_vm8, %v428_v31, -1e+30  ;;  %v667_v21 = vadd.f32 %v665_v17, %v661_v16  ;;  %v671_v24 = vmul.f32 %v8458_v10, %v669_v19 }
 0x24a   :  { %v431_v32 = vsel %vm429_vm6, %v427_v30, -1e+30  ;;  %v437_v37 = vsel %vm433_vm7, %v432_v36, -inf  ;;  %v675_v25 = vstv %s8570_s26  ;;  %v867_v16 = vmul.f32 %v8458_v10, %v9749_v12  ;;  %s9847_s26 = sld [smem:[#allocation33_spill]] }
 0x24b   :  { %v434_v35 = vsel %vm433_vm7, %v431_v32, -inf  ;;  %v673_v30 = vadd.f32 %v671_v24, %v667_v21  ;;  %v677_v31 = vmul.f32 %v8471_v18, %v675_v25  ;;  %v9747_v17 = vstv %s8628_s21  ;;  %s8792_s21 = sld [smem:[#allocation19 + $0x302]] }
 0x24c   :  { %435 = vmax.xlane.f32.xlu1 %v434_v35  ;;  %v873_v24 = vmul.f32 %v8471_v18, %v9747_v17 }
 0x24d   :  { %v679_v35 = vadd.f32 %v677_v31, %v673_v30  ;;  %v9743_v30 = vstv %s8631_s25  ;;  %s8783_s25 = sld [smem:[#allocation19 + $0x282]]  ;;  %9824 = sst [smem:[#allocation40_spill]] %s8801_s12 }
 0x250   :  { %438 = vmax.xlane.f32.xlu1 %v437_v37  ;;  %v687_v37 = vstv %s8583_s22  ;;  %s9268_s22 = sld [smem:[#allocation19 + $0x185]] }
 0x251   :  { %9823 = sst [smem:[#allocation39_spill]] %s8792_s21 }
 0x252   :  { %s9834_s10 = sld [smem:[#allocation39_spill]] }
 0x253   :  { %9822 = sst [smem:[#allocation38_spill]] %s8783_s25 }
 0x258   :  { %1198 = vadd.xlane.f32.xlu0 %v1197_v40 }
 0x25c   :  { %1293 = vadd.xlane.f32.xlu0 %v1292_v50  ;;  %v689_v50 = vmul.f32 %v8495_v39, %v687_v37 }
 0x260   :  { %1296 = vadd.xlane.f32.xlu0 %v1295_v51  ;;  %v693_v51 = vstv %s8589_s8 }
 0x2d9   :  { %v436_v53 = vpop.xlane.xlu1 %435 }
 0x2da   :  { %v440_v56 = vsub.f32 %v431_v32, %v436_v53  ;;  %v681_v32 = vstv %s8574_s29  ;;  %s9261_s29 = sld [smem:[#allocation19 + $0x204]] }
 0x2dc   :  { %v442_v57 = vmul.f32 1.442695, %v440_v56  ;;  %v695_v56 = vmul.f32 %v8508_v58, %v693_v51 }
 0x2dd   :  { %v439_v60 = vpop.xlane.xlu1 %438 }
 0x2de   :  { %7688 = vpow2.f32 %v442_v57  ;;  %v441_v63 = vsub.f32 %v432_v36, %v439_v60  ;;  %v683_v36 = vmul.f32 %v8483_v26, %v681_v32  ;;  %v8061_v60 = vmov 7  }
 0x2df   :  { %7687 = vset.pattern.permute.xlu0 %v8061_v60 }
 0x2e0   :  { %v444_v0 = vmul.f32 1.442695, %v441_v63  ;;  %v685_v40 = vadd.f32 %v683_v36, %v679_v35  ;;  %v805_v63 = vsel %vm351_vm2, %v8388_v42, 0.0  ;;  %v879_v36 = vmul.f32 %v8483_v26, %v9743_v30 }
 0x2e2   :  { %7690 = vpow2.f32 %v444_v0  ;;  %v691_v53 = vadd.f32 %v689_v50, %v685_v40  ;;  %v900_v0 = vsel %vm351_vm2, %v8390_v43, 0.0  ;;  %v9742_v50 = vstv %s8638_s23  ;;  %s8776_s23 = sld [smem:[#allocation19 + $0x202]] }
 0x2e4   :  { %v8610_v57 = vadd.f32 %v695_v56, %v691_v53  ;;  %v885_v56 = vmul.f32 %v8495_v39, %v9742_v50 }
 0x2e8   :  { %v7689_v3 = vpop.eup %7688  ;;  %9821 = sst [smem:[#allocation37_spill]] %s8776_s23 }
 0x2e9   :  { %v8544_v27 = vsel %vm429_vm6, %v7689_v3, 0.0  ;;  %v903_v3 = vsel %vm351_vm2, %v8392_v44, 0.0  ;;  %s9829_s8 = sld [smem:[#allocation37_spill]] }
 0x2ea   :  { %v448_v34 = vsel %vm433_vm7, %v8544_v27, 0.0 }
 0x2eb   :  { %449 = vadd.xlane.f32.xlu1 %v448_v34  ;;  %v9753_v34 = vstv %s8619_s2  ;;  %s8871_s2 = sld [smem:[#allocation19 + $0x86]] }
 0x2ec   :  { %v7691_v4 = vpop.eup %7690 }
 0x2ed   :  { %v8550_v28 = vsel %vm430_vm8, %v7691_v4, 0.0 }
 0x2ee   :  { %v451_v5 = vsel %vm433_vm7, %v8550_v28, 0.0 }
 0x2ef   :  { %452 = vadd.xlane.f32.xlu1 %v451_v5  ;;  %v9751_v5 = vstv %s8621_s9  ;;  %s8822_s9 = sld [smem:[#allocation21 + $0x3]] }
 0x2f5   :  { %9826 = sst [smem:[#allocation42_spill]] %s8822_s9 }
 0x300   :  { %613 = vperm.xlu1 %7679, %v8405_v49  }
 0x304   :  { %7681 = vset.pattern.permute.xlu1 %v8059_v7  ;;  %v851_v7 = vmul.f32 %v9753_v34, %v8413_v54 }
 0x324   :  { %609 = vadd.xlane.f32.xlu1 %v608_v8  ;;  %v8062_v8 = vmov 6  }
 0x328   :  { %705 = vadd.xlane.f32.xlu1 %v704_v9  ;;  %v9750_v9 = vstv %s8623_s5  ;;  %s8815_s5 = sld [smem:[#allocation21 + $0x2]] }
 0x329   :  { %v861_v41 = vmul.f32 %v8444_v2, %v9750_v9 }
 0x32c   :  { %708 = vadd.xlane.f32.xlu1 %v707_v11  ;;  %v855_v11 = vmul.f32 %v8418_v55, %v9751_v5  ;;  %v779_v5 = vstv %s8783_s25 }
 0x32e   :  { %9825 = sst [smem:[#allocation41_spill]] %s8815_s5 }
 0x33d   :  { %809 = vperm.xlu1 %7681, %v8405_v49  }
 0x341   :  { %7683 = vset.pattern.permute.xlu1 %v8060_v13  ;;  %v857_v13 = vadd.f32 %v855_v11, %v851_v7  ;;  %v558_v7 = vstv %s8669_s28  ;;  %s8906_s28 = sld [smem:[#allocation19 + $0x286]] }
 0x343   :  { %v863_v21 = vadd.f32 %v861_v41, %v857_v13  ;;  %v564_v41 = vstv %s8678_s13  ;;  %s8917_s13 = sld [smem:[#allocation19 + $0x306]] }
 0x345   :  { %v869_v31 = vadd.f32 %v867_v16, %v863_v21  ;;  %v566_v16 = vmul.f32 %v8444_v2, %v564_v41 }
 0x347   :  { %v875_v53 = vadd.f32 %v873_v24, %v869_v31  ;;  %v570_v24 = vstv %s8682_s19  ;;  %v8700_v31 = vpop.xlane.xlu0 %606  ;;  %s8928_s19 = sld [smem:[#allocation19 + $0x386]] }
 0x361   :  { %806 = vadd.xlane.f32.xlu1 %v805_v63  ;;  %v9741_v63 = vstv %s8647_s18  ;;  %s8767_s18 = sld [smem:[#allocation19 + $0x182]] }
 0x365   :  { %901 = vadd.xlane.f32.xlu1 %v900_v0  ;;  %v881_v0 = vadd.f32 %v879_v36, %v875_v53  ;;  %v572_v36 = vmul.f32 %v8458_v10, %v570_v24  ;;  %v576_v53 = vstv %s8691_s0  ;;  %s8955_s0 = sld [smem:[#allocation21 + $0x6]] }
 0x369   :  { %904 = vadd.xlane.f32.xlu1 %v903_v3 }
 0x378   :  { %v450_v42 = vpop.xlane.xlu1 %449 }
 0x379   :  { %v454_v43 = vadd.f32 1e-09, %v450_v42 }
 0x37a   :  { %1005 = vperm.xlu1 %7683, %v8405_v49  }
 0x37b   :  { %7692 = vrcp.f32 %v454_v43  ;;  %v887_v43 = vadd.f32 %v885_v56, %v881_v0  ;;  %v1001_v56 = vsel %vm351_vm2, %v8394_v45, 0.0  ;;  %v712_v0 = vpop.permute.xlu0 %711 }
 0x37c   :  { %v453_v44 = vpop.xlane.xlu1 %452 }
 0x37d   :  { %v455_v4 = vadd.f32 1e-09, %v453_v44 }
 0x37e   :  { %7685 = vset.pattern.permute.xlu1 %v8062_v8 }
 0x37f   :  { %7694 = vrcp.f32 %v455_v4  ;;  %v554_v4 = vstv %s8667_s4  ;;  %s8895_s4 = sld [smem:[#allocation19 + $0x206]] }
 0x380   :  { %v556_v8 = vmul.f32 %v554_v4, %v8413_v54  ;;  %v614_v11 = vpop.permute.xlu1 %613 }
 0x381   :  { %v616_v21 = vmul.f32 %v614_v11, %v8425_v59 }
 0x385   :  { %v7693_v35 = vpop.eup %7692 }
 0x386   :  { %v457_v40 = vmul.f32 %v7693_v35, %v8544_v27  ;;  %v891_v27 = vmul.f32 %v8508_v58, %v9741_v63 }
 0x388   :  { %6664 = vmatprep.mubr.msk.f32.mxu0 %vm433_vm7, %v457_v40  ;;  %v8676_v44 = vadd.f32 %v891_v27, %v887_v43  ;;  %v617_v40 = vsel %vm365_vm3, %v616_v21, 0.0  ;;  %v714_v43 = vmul.f32 %v712_v0, %v8425_v59  ;;  %v588_v21 = vstv %s8707_s27  ;;  %s9830_s27 = sld [smem:[#allocation50_spill]] }
 0x389   :  { %v7695_v3 = vpop.eup %7694 }
 0x38a   :  { %v459_v42 = vmul.f32 %v7695_v3, %v8550_v28  ;;  %v560_v28 = vmul.f32 %v8418_v55, %v558_v7  ;;  %v618_v3 = vrot.slane %v617_v40, 4 }
 0x38c   :  { %6665 = vmatmul.mubr.msk.f32.vlgmr.msra.gmra.mrb[2].mxu0 %vm433_vm7, %v459_v42  ;;  %v562_v13 = vadd.f32 %v560_v28, %v556_v8  ;;  %v578_v42 = vmul.f32 %v8471_v18, %v576_v53  ;;  %v582_v8 = vstv %s8698_s7  ;;  %v1096_v28 = vsel %vm351_vm2, %v8396_v46, 0.0  ;;  %s9879_s7 = sld [smem:[#allocation59_spill]] }
 0x38d   :  { %v619_v11 = vadd.f32 %v618_v3, %v617_v40  ;;  %v590_v46 = vmul.f32 %v8495_v39, %v588_v21  ;;  %v594_v40 = vstv %s8716_s30  ;;  %s9863_s30 = sld [smem:[#allocation48_spill]] }
 0x38e   :  { %v568_v35 = vadd.f32 %v566_v16, %v562_v13  ;;  %v584_v13 = vmul.f32 %v8483_v26, %v582_v8  ;;  %v715_v16 = vsel %vm365_vm3, %v714_v43, 0.0 }
 0x390   :  { %v574_v27 = vadd.f32 %v572_v36, %v568_v35  ;;  %v1099_v35 = vsel %vm351_vm2, %v8398_v47, 0.0  ;;  %v716_v36 = vrot.slane %v715_v16, 4 }
 0x392   :  { %v580_v45 = vadd.f32 %v578_v42, %v574_v27  ;;  %v717_v3 = vadd.f32 %v716_v36, %v715_v16  ;;  %v596_v42 = vmul.f32 %v8508_v58, %v594_v40  ;;  %v629_v16 = vstv %s8734_s24  ;;  %s9851_s24 = sld [smem:[#allocation36_spill]] }
 0x394   :  { %v586_v0 = vadd.f32 %v584_v13, %v580_v45  ;;  %v718_v43 = vrot.slane %v717_v3, 2 }
 0x396   :  { %v592_v27 = vadd.f32 %v590_v46, %v586_v0 }
 0x398   :  { %v598_v47 = vadd.f32 %v596_v42, %v592_v27 }
 0x39e   :  { %1002 = vadd.xlane.f32.xlu1 %v1001_v56  ;;  %v620_v56 = vrot.slane %v619_v11, 2 }
 0x3a2   :  { %1097 = vadd.xlane.f32.xlu1 %v1096_v28  ;;  %v621_v28 = vadd.f32 %v620_v56, %v619_v11 }
 0x3a4   :  { %v622_v63 = vrot.slane %v621_v28, 1 }
 0x3a6   :  { %1100 = vadd.xlane.f32.xlu1 %v1099_v35  ;;  %v719_v35 = vadd.f32 %v718_v43, %v717_v3  ;;  %v8736_v45 = vadd.f32 %v622_v63, %v621_v28  ;;  %v9759_v3 = vstv %s8740_s17  ;;  %v9755_v43 = vstv %s8763_s6 }
 0x3a8   :  { %v720_v56 = vrot.slane %v719_v35, 1 }
 0x3aa   :  { %v8749_v46 = vadd.f32 %v720_v56, %v719_v35  ;;  %v763_v35 = vmul.f32 %v8444_v2, %v9755_v43  ;;  %v9754_v56 = vstv %s8767_s18  ;;  %v9761_v43 = vstv %s8792_s21  ;;  %s8883_s21 = sld [smem:[#allocation19 + $0x186]] }
 0x3b1   :  { %v610_v50 = vpop.xlane.xlu1 %609 }
 0x3b2   :  { %v625_v13 = vadd.f32 %v610_v50, %v598_v47 }
 0x3b4   :  { %v627_v30 = vadd.f32 %v625_v13, %v8736_v45 }
 0x3b5   :  { %v8742_v11 = vpop.xlane.xlu1 %705 }
 0x3b6   :  { %v8746_v36 = vadd.f32 %v629_v16, %v627_v30 }
 0x3b7   :  { %1201 = vperm.xlu1 %7685, %v8405_v49  }
 0x3b8   :  { %vm633_vm12 = vcmp.gt.f32.partialorder %v8746_v36, 0.0 }
 0x3b9   :  { %v709_v0 = vpop.xlane.xlu1 %708 }
 0x3ba   :  { %v723_v50 = vadd.f32 %v709_v0, %v8610_v57  ;;  %v9758_v57 = vstv %s8759_s14  ;;  %v8785_v0 = vpop.xlane.xlu0 %803 }
 0x3bb   :  { %7686 = vset.pattern.permute.xlu1 %v8061_v60  ;;  %v9757_v60 = vstv %s8761_s11  ;;  %v753_v30 = vmul.f32 %v9758_v57, %v8413_v54 }
 0x3bc   :  { %v725_v63 = vadd.f32 %v723_v50, %v8749_v46  ;;  %v757_v27 = vmul.f32 %v8418_v55, %v9757_v60 }
 0x3bd   :  { %v810_v42 = vpop.permute.xlu1 %809 }
 0x3be   :  { %v8757_v28 = vadd.f32 %v9759_v3, %v725_v63  ;;  %v759_v47 = vadd.f32 %v757_v27, %v753_v30  ;;  %v812_v13 = vmul.f32 %v810_v42, %v8425_v59  ;;  %v769_v63 = vmul.f32 %v8458_v10, %v9754_v56  ;;  %v908_v42 = vpop.permute.xlu0 %907 }
 0x3bf   :  { %v9756_v30 = vstv %s8776_s23  ;;  %v1194_v27 = vsel %vm351_vm2, %v8400_v48, 0.0  ;;  %v781_v48 = vmul.f32 %v8483_v26, %v779_v5  ;;  %s8869_s23 = sld [smem:[#allocation19 + $0x6]] }
 0x3c0   :  { %v765_v50 = vadd.f32 %v763_v35, %v759_v47  ;;  %v813_v17 = vsel %vm365_vm3, %v812_v13, 0.0  ;;  %v775_v47 = vmul.f32 %v8471_v18, %v9756_v30  ;;  %v910_v35 = vmul.f32 %v908_v42, %v8425_v59 }
 0x3c1   :  { %v814_v12 = vrot.slane %v813_v17, 4  ;;  %v787_v30 = vmul.f32 %v8495_v39, %v9761_v43  ;;  %v791_v42 = vstv %s8801_s12  ;;  %s9827_s12 = sld [smem:[#allocation56_spill]]  ;;  %vm731_vm14 = vcmp.gt.f32.partialorder %v8757_v28, 0.0 }
 0x3c2   :  { %v771_v9 = vadd.f32 %v769_v63, %v765_v50  ;;  %v911_v56 = vsel %vm365_vm3, %v910_v35, 0.0 }
 0x3c3   :  { %v815_v13 = vadd.f32 %v814_v12, %v813_v17  ;;  %v793_v12 = vmul.f32 %v8508_v58, %v791_v42 }
 0x3c4   :  { %v777_v34 = vadd.f32 %v775_v47, %v771_v9 }
 0x3c5   :  { %v816_v50 = vrot.slane %v815_v13, 2 }
 0x3c6   :  { %v783_v63 = vadd.f32 %v781_v48, %v777_v34 }
 0x3c7   :  { %v817_v57 = vadd.f32 %v816_v50, %v815_v13 }
 0x3c8   :  { %v789_v3 = vadd.f32 %v787_v30, %v783_v63  ;;  %v825_v30 = vstv %s8815_s5  ;;  %v923_v63 = vstv %s8822_s9  ;;  %s8873_s5 = sld [smem:[#allocation19 + $0x106]] }
 0x3c9   :  { %v818_v47 = vrot.slane %v817_v57, 1 }
 0x3ca   :  { %v795_v17 = vadd.f32 %v793_v12, %v789_v3  ;;  %v1338_v12 = vld [vmem:[#allocation6] sm:$0xff] }
 0x3cb   :  { %v8818_v48 = vadd.f32 %v818_v47, %v817_v57  ;;  %v6233_v47 = vld [vmem:[%s9827_s12 + $0x88] sm:$0xff] }
 0x3db   :  { %1195 = vadd.xlane.f32.xlu1 %v1194_v27  ;;  %v912_v27 = vrot.slane %v911_v56, 4 }
 0x3dd   :  { %v913_v60 = vadd.f32 %v912_v27, %v911_v56 }
 0x3df   :  { %v914_v9 = vrot.slane %v913_v60, 2 }
 0x3e1   :  { %v915_v35 = vadd.f32 %v914_v9, %v913_v60  ;;  %v1339_v9 = vld [vmem:[#allocation6 + $0x8] sm:$0xff] }
 0x3e3   :  { %v916_v3 = vrot.slane %v915_v35, 1 }
 0x3ec   :  { %1299 = vperm.xlu1 %7686, %v8405_v49   ;;  %v8830_v49 = vadd.f32 %v916_v3, %v915_v35  ;;  %v6234_v3 = vld [vmem:[%s9827_s12 + $0x90] sm:$0xff] }
 0x3ee   :  { %v807_v34 = vpop.xlane.xlu1 %806 }
 0x3ef   :  { %v821_v43 = vadd.f32 %v807_v34, %v795_v17  ;;  %v6232_v17 = vld [vmem:[%s9827_s12 + $0x80] sm:$0xff]  ;;  %v7224_v34 = vpack.c.bf16 %v1339_v9, %v1338_v12  ;;  %v1431_v9 = vld [vmem:[%s9827_s12 + $0x8] sm:$0xff] }
 0x3f0   :  { %v7280_v35 = vpack.c.bf16 %v6233_v47, %v6232_v17  ;;  %v1430_v12 = vld [vmem:[%s9827_s12] sm:$0xff] }
 0x3f1   :  { %v823_v56 = vadd.f32 %v821_v43, %v8818_v48  ;;  %7225 = vmatprep.subr.bf16.mxu0 %v7224_v34  ;;  %v6240_v17 = vld [vmem:[%s9827_s12 + $0xa0] sm:$0xff]  ;;  %v8860_v47 = vpack.c.bf16 %v1431_v9, %v1430_v12  ;;  %v9775_v9 = vstv %s8873_s5 }
 0x3f2   :  { %v8824_v13 = vpop.xlane.xlu1 %901  ;;  %7281 = vmatprep.subr.bf16.mxu1 %v7280_v35  ;;  %7227 = vmatpush3.bf16.msra.mxu0 %v7224_v34  ;;  %v6241_v34 = vld [vmem:[%s9827_s12 + $0xa8] sm:$0xff] }
 0x3f3   :  { %v8828_v27 = vadd.f32 %v825_v30, %v823_v56  ;;  %v1341_v56 = vld [vmem:[#allocation6 + $0x18] sm:$0xff]  ;;  %7283 = vmatpush3.bf16.msra.mxu1 %v7280_v35  ;;  %v8865_v35 = vpack.c.bf16 %v6241_v34, %v6240_v17  ;;  %v1155_v34 = vmul.f32 %v8444_v2, %v9775_v9  ;;  %v577_v2 = vmul.f32 %v8477_v22, %v576_v53 }
 0x3f5   :  { %vm829_vm0 = vcmp.gt.f32.partialorder %v8828_v27, 0.0 }
 0x3f6   :  { %v905_v50 = vpop.xlane.xlu1 %904 }
 0x3f7   :  { %v919_v57 = vadd.f32 %v905_v50, %v8676_v44  ;;  %v1340_v44 = vld [vmem:[#allocation6 + $0x10] sm:$0xff] }
 0x3f8   :  { %v7228_v50 = vpack.c.bf16 %v1341_v56, %v1340_v44  ;;  %v555_v44 = vmul.f32 %v554_v4, %v8431_v61  ;;  %v559_v56 = vmul.f32 %v8436_v62, %v558_v7  ;;  %v565_v4 = vmul.f32 %v8451_v6, %v564_v41 }
 0x3f9   :  { %v921_v60 = vadd.f32 %v919_v57, %v8830_v49  ;;  %v6235_v57 = vld [vmem:[%s9827_s12 + $0x98] sm:$0xff] }
 0x3fa   :  { %7229 = vmatprep.subr.bf16.mxu0 %v7228_v50  ;;  %v561_v12 = vadd.f32 %v559_v56, %v555_v44  ;;  %v8897_v7 = vpop.permute.xlu1 %1005  ;;  %v9774_v44 = vstv %s8883_s21 }
 0x3fb   :  { %v8837_v43 = vadd.f32 %v923_v63, %v921_v60  ;;  %v7284_v60 = vpack.c.bf16 %v6235_v57, %v6234_v3  ;;  %7231 = vmatpush3.bf16.msra.mxu0 %v7228_v50  ;;  %v9780_v3 = vstv %s8869_s23  ;;  %v9772_v50 = vstv %s8871_s2 }
 0x3fc   :  { %7233 = vmatprep.subr.bf16.mxu0 %v8860_v47  ;;  %v1145_v57 = vmul.f32 %v9780_v3, %v8413_v54  ;;  %v567_v54 = vadd.f32 %v565_v4, %v561_v12 }
 0x3fd   :  { %7285 = vmatprep.subr.bf16.mxu1 %v7284_v60  ;;  %vm927_vm4 = vcmp.gt.f32.partialorder %v8837_v43, 0.0 }
 0x3fe   :  { %7287 = vmatpush3.bf16.msra.mxu1 %v7284_v60  ;;  %v1149_v60 = vmul.f32 %v8418_v55, %v9772_v50  ;;  %v571_v55 = vmul.f32 %v8465_v14, %v570_v24  ;;  %v1161_v50 = vmul.f32 %v8458_v10, %v9774_v44  ;;  %v583_v10 = vmul.f32 %v8489_v33, %v582_v8 }
 0x3ff   :  { %7293 = vmatprep.subr.bf16.mxu1 %v8865_v35 }
 0x400   :  { %v1151_v17 = vadd.f32 %v1149_v60, %v1145_v57  ;;  %v573_v57 = vadd.f32 %v571_v55, %v567_v54  ;;  %v9773_v60 = vstv %s8895_s4 }
 0x401   :  { %v1167_v4 = vmul.f32 %v8471_v18, %v9773_v60  ;;  %v589_v18 = vmul.f32 %v8501_v52, %v588_v21 }
 0x402   :  { %v1157_v56 = vadd.f32 %v1155_v34, %v1151_v17  ;;  %v579_v17 = vadd.f32 %v577_v2, %v573_v57  ;;  %v9776_v34 = vstv %s8906_s28  ;;  %v8939_v2 = vpop.xlane.xlu0 %999 }
 0x403   :  { %v1173_v55 = vmul.f32 %v8483_v26, %v9776_v34  ;;  %v9779_v26 = vstv %s8928_s19 }
 0x404   :  { %v1163_v12 = vadd.f32 %v1161_v50, %v1157_v56  ;;  %v585_v50 = vadd.f32 %v583_v10, %v579_v17  ;;  %v9777_v56 = vstv %s8917_s13  ;;  %v1185_v34 = vmul.f32 %v8508_v58, %v9779_v26 }
 0x405   :  { %v1179_v44 = vmul.f32 %v8495_v39, %v9777_v56  ;;  %v9778_v56 = vstv %s8955_s0 }
 0x406   :  { %v1169_v54 = vadd.f32 %v1167_v4, %v1163_v12  ;;  %v591_v9 = vadd.f32 %v589_v18, %v585_v50  ;;  %v595_v12 = vmul.f32 %v8514_v1, %v594_v40  ;;  %v8950_v10 = vpop.permute.xlu0 %1103 }
 0x408   :  { %v1175_v60 = vadd.f32 %v1173_v55, %v1169_v54  ;;  %v597_v54 = vadd.f32 %v595_v12, %v591_v9 }
 0x40a   :  { %v1181_v21 = vadd.f32 %v1179_v44, %v1175_v60  ;;  %v624_v50 = vadd.f32 %v8700_v31, %v597_v54  ;;  %v1199_v18 = vpop.xlane.xlu0 %1198 }
 0x40c   :  { %v1187_v55 = vadd.f32 %v1185_v34, %v1181_v21 }
 0x40e   :  { %v1213_v44 = vadd.f32 %v1199_v18, %v1187_v55  ;;  %v1432_v18 = vld [vmem:[%s9827_s12 + $0x10] sm:$0xff] }
 0x42b   :  { %v8908_v41 = vpop.xlane.xlu1 %1002 }
 0x42f   :  { %v8919_v24 = vpop.xlane.xlu1 %1097 }
 0x433   :  { %v8930_v53 = vpop.xlane.xlu1 %1100 }
 0x437   :  { %v1202_v57 = vpop.permute.xlu1 %1201 }
 0x438   :  { %v1204_v8 = vmul.f32 %v1202_v57, %v8425_v59 }
 0x43a   :  { %v1205_v4 = vsel %vm365_vm3, %v1204_v8, 0.0  ;;  %v626_v8 = vadd.f32 %v624_v50, %v8736_v45 }
 0x43b   :  { %v1206_v17 = vrot.slane %v1205_v4, 4 }
 0x43c   :  { %v630_v9 = vadd.f32 %v629_v16, %v626_v8  ;;  %v1433_v8 = vld [vmem:[%s9827_s12 + $0x18] sm:$0xff] }
 0x43d   :  { %v1207_v59 = vadd.f32 %v1206_v17, %v1205_v4 }
 0x43e   :  { %v634_v4 = vmul.f32 0.01, %v630_v9  ;;  %vm632_vm9 = vcmp.gt.f32.partialorder %v630_v9, 0.0 }
 0x43f   :  { %v1208_v39 = vrot.slane %v1207_v59, 2 }
 0x440   :  { %v636_v34 = vsel %vm632_vm9, %v630_v9, %v634_v4 }
 0x441   :  { %v1209_v40 = vadd.f32 %v1208_v39, %v1207_v59  ;;  %v638_v17 = vsub.f32 0.0, %v636_v34  ;;  %v7236_v34 = vpack.c.bf16 %v1433_v8, %v1432_v18 }
 0x443   :  { %v1210_v57 = vrot.slane %v1209_v40, 1  ;;  %v640_v31 = vmul.f32 1.442695, %v638_v17 }
 0x445   :  { %v8959_v60 = vadd.f32 %v1210_v57, %v1209_v40  ;;  %7696 = vpow2.f32 %v640_v31  ;;  %v6256_v31 = vld [vmem:[%s9827_s12 + $0xe0] sm:$0xff] }
 0x447   :  { %v1215_v58 = vadd.f32 %v1213_v44, %v8959_v60  ;;  %v6242_v44 = vld [vmem:[%s9827_s12 + $0xb0] sm:$0xff] }
 0x449   :  { %v8967_v12 = vadd.f32 %v9778_v56, %v1215_v58  ;;  %v6243_v58 = vld [vmem:[%s9827_s12 + $0xb8] sm:$0xff] }
 0x44a   :  { %v7296_v17 = vpack.c.bf16 %v6243_v58, %v6242_v44  ;;  %v676_v44 = vmul.f32 %v8477_v22, %v675_v25 }
 0x44f   :  { %v7697_v39 = vpop.eup %7696 }
 0x450   :  { %v644_v55 = vadd.f32 1.0, %v7697_v39 }
 0x45f   :  { %v6666_v21 = vpop.f32.mrb[2].mxu0 }
 0x460   :  { %v545_v59 = vmul.f32 1.442695, %v6666_v21  ;;  %v532_v45 = vpop.f32.mrb[3].mxu0  ;;  %vm542_vm11 = vcmp.gt.f32.partialorder %v6666_v21, 0.0 }
 0x461   :  { %v543_v54 = vmul.f32 1.442695, %v532_v45  ;;  %vm541_vm10 = vcmp.gt.f32.partialorder %v532_v45, 0.0 }
 0x462   :  { %7698 = vpow2.f32 %v545_v59  ;;  %v6257_v59 = vld [vmem:[%s9827_s12 + $0xe8] sm:$0xff] }
 0x463   :  { %7700 = vpow2.f32 %v543_v54 }
 0x464   :  { %7702 = vrcp.f32 %v644_v55  ;;  %v654_v55 = vmul.f32 %v653_v29, %v8431_v61  ;;  %v682_v61 = vmul.f32 %v8489_v33, %v681_v32  ;;  %v9828_v33 = vstv %s8740_s17  ;;  %s9296_s17 = sld [smem:[#allocation19 + $0x205]] }
 0x46c   :  { %v7699_v40 = vpop.eup %7698 }
 0x46d   :  { %v7701_v16 = vpop.eup %7700  ;;  %v6130_v50 = vadd.f32 -1.0, %v7699_v40  ;;  %v658_v40 = vmul.f32 %v8436_v62, %v657_v38  ;;  %v688_v62 = vmul.f32 %v8501_v52, %v687_v37 }
 0x46e   :  { %v6129_v57 = vadd.f32 -1.0, %v7701_v16 }
 0x46f   :  { %v8983_v4 = vsel %vm542_vm11, %v6666_v21, %v6130_v50  ;;  %v7316_v21 = vpack.c.bf16 %v6257_v59, %v6256_v31  ;;  %v660_v16 = vadd.f32 %v658_v40, %v654_v55  ;;  %v664_v50 = vmul.f32 %v8451_v6, %v663_v15 }
 0x470   :  { %v8981_v9 = vsel %vm541_vm10, %v532_v45, %v6129_v57  ;;  %v6258_v45 = vld [vmem:[%s9827_s12 + $0xf0] sm:$0xff]  ;;  %v670_v57 = vmul.f32 %v8465_v14, %v669_v19  ;;  %v694_v6 = vmul.f32 %v8514_v1, %v693_v51  ;;  %v635_v14 = vmul.f32 0.01, %v8746_v36 }
 0x471   :  { %6675 = vmatprep.mubr.msk.f32.mxu0 %vm351_vm2, %v8981_v9  ;;  %6758 = vmatprep.mubr.msk.f32.mxu1 %vm351_vm2, %v8981_v9  ;;  %v666_v18 = vadd.f32 %v664_v50, %v660_v16 }
 0x472   :  { %6676 = vmatmul.mubr.msk.f32.vlgmr.msra.gmra.mrb[4].mxu0 %vm351_vm2, %v8983_v4  ;;  %6759 = vmatmul.mubr.msk.f32.vlgmr.msra.gmra.mrb[0].mxu1 %vm351_vm2, %v8983_v4  ;;  %v637_v19 = vsel %vm633_vm12, %v8746_v36, %v635_v14  ;;  %v9832_v14 = vstv %s8759_s14  ;;  %s9841_s14 = sld [smem:[#allocation29_spill]] }
 0x473   :  { %7235 = vmatpush3.bf16.msra.mxu0 %v8860_v47  ;;  %7295 = vmatpush3.bf16.msra.mxu1 %v8865_v35  ;;  %v6259_v47 = vld [vmem:[%s9827_s12 + $0xf8] sm:$0xff]  ;;  %v7703_v35 = vpop.eup %7702  ;;  %v672_v8 = vadd.f32 %v670_v57, %v666_v18  ;;  %v639_v32 = vsub.f32 0.0, %v637_v19  ;;  %v9833_v19 = vstv %s8761_s11  ;;  %s9842_s11 = sld [smem:[#allocation49_spill]] }
 0x474   :  { %6686 = vmatprep.mubr.msk.f32.mxu0 %vm351_vm2, %v8981_v9  ;;  %6776 = vmatprep.mubr.msk.f32.mxu1 %vm351_vm2, %v8981_v9  ;;  %v7320_v54 = vpack.c.bf16 %v6259_v47, %v6258_v45  ;;  %v9012_v39 = vmul.f32 %v7703_v35, %v8521_v20  ;;  %v6208_v47 = vld [vmem:[%s9827_s12 + $0x20] sm:$0xff]  ;;  %v6209_v35 = vld [vmem:[%s9827_s12 + $0x28] sm:$0xff] }
 0x475   :  { %7237 = vmatprep.subr.bf16.mxu0 %v7236_v34  ;;  %7297 = vmatprep.subr.bf16.mxu1 %v7296_v17  ;;  %v678_v58 = vadd.f32 %v676_v44, %v672_v8  ;;  %v642_v52 = vmul.f32 1.442695, %v639_v32  ;;  %v7244_v57 = vpack.c.bf16 %v6209_v35, %v6208_v47  ;;  %v6210_v44 = vld [vmem:[%s9827_s12 + $0x30] sm:$0xff]  ;;  %v9106_v32 = vld [vmem:[%s9830_s27 + $0x20] sm:$0xff] }
 0x476   :  { %v9130_v47 = vld [vmem:[%s9830_s27 + $0x50] sm:$0xff] }
 0x477   :  { %7239 = vmatpush3.bf16.msra.mxu0 %v7236_v34  ;;  %7299 = vmatpush3.bf16.msra.mxu1 %v7296_v17  ;;  %v684_v29 = vadd.f32 %v682_v61, %v678_v58  ;;  %7704 = vpow2.f32 %v642_v52  ;;  %v6211_v58 = vld [vmem:[%s9827_s12 + $0x38] sm:$0xff]  ;;  %v780_v35 = vmul.f32 %v9130_v47, %v779_v5 }
 0x478   :  { %7317 = vmatprep.subr.bf16.mxu1 %v7316_v21 }
 0x479   :  { %v690_v38 = vadd.f32 %v688_v62, %v684_v29  ;;  %v7248_v29 = vpack.c.bf16 %v6211_v58, %v6210_v44  ;;  %v733_v58 = vmul.f32 0.01, %v8757_v28 }
 0x47a   :  { %6687 = vmatmul.mubr.msk.f32.vlgmr.msra.gmra.mrb[6].mxu0 %vm351_vm2, %v8983_v4  ;;  %6777 = vmatmul.mubr.msk.f32.vlgmr.msra.gmra.mrb[2].mxu1 %vm351_vm2, %v8983_v4 }
 0x47b   :  { %6693 = vmatprep.mubr.msk.f32.mxu0 %vm433_vm7, %v9012_v39  ;;  %7319 = vmatpush3.bf16.msra.mxu1 %v7316_v21  ;;  %v696_v15 = vadd.f32 %v694_v6, %v690_v38 }
 0x47c   :  { %6812 = vmatprep.mubr.msk.f32.mxu1 %vm351_vm2, %v8981_v9  ;;  %7321 = vmatprep.subr.bf16.mxu1 %v7320_v54 }
 0x47d   :  { %v722_v34 = vadd.f32 %v8742_v11, %v696_v15 }
 0x47f   :  { %7323 = vmatpush3.bf16.msra.mxu1 %v7320_v54  ;;  %v724_v22 = vadd.f32 %v722_v34, %v8749_v46  ;;  %v9090_v34 = vld [vmem:[%s9830_s27] sm:$0xff] }
 0x481   :  { %v728_v25 = vadd.f32 %v9828_v33, %v724_v22  ;;  %v7705_v11 = vpop.eup %7704  ;;  %v752_v22 = vmul.f32 %v9090_v34, %v9832_v14 }
 0x482   :  { %6813 = vmatmul.mubr.msk.f32.vlgmr.msra.gmra.mrb[4].mxu1 %vm351_vm2, %v8983_v4  ;;  %v645_v31 = vadd.f32 1.0, %v7705_v11 }
 0x483   :  { %v732_v17 = vmul.f32 0.01, %v728_v25  ;;  %vm730_vm13 = vcmp.gt.f32.partialorder %v728_v25, 0.0 }
 0x485   :  { %v734_v37 = vsel %vm730_vm13, %v728_v25, %v732_v17  ;;  %v9835_v17 = vstv %s8763_s6  ;;  %s9845_s6 = sld [smem:[#allocation31_spill]] }
 0x486   :  { %v736_v1 = vsub.f32 0.0, %v734_v37  ;;  %v762_v52 = vmul.f32 %v9106_v32, %v9835_v17 }
 0x488   :  { %v738_v51 = vmul.f32 1.442695, %v736_v1  ;;  %v9114_v1 = vld [vmem:[%s9830_s27 + $0x30] sm:$0xff] }
 0x48a   :  { %7706 = vpow2.f32 %v738_v51  ;;  %v9837_v51 = vstv %s8767_s18  ;;  %s9848_s18 = sld [smem:[#allocation34_spill]] }
 0x48b   :  { %7708 = vrcp.f32 %v645_v31  ;;  %v768_v11 = vmul.f32 %v9114_v1, %v9837_v51 }
 0x494   :  { %v7707_v46 = vpop.eup %7706 }
 0x495   :  { %v742_v36 = vadd.f32 1.0, %v7707_v46  ;;  %v7709_v8 = vpop.eup %7708 }
 0x496   :  { %v9072_v61 = vmul.f32 %v7709_v8, %v8526_v23 }
 0x497   :  { %7710 = vrcp.f32 %v742_v36 }
 0x4a1   :  { %v7711_v23 = vpop.eup %7710 }
 0x4a2   :  { %v9081_v15 = vmul.f32 %v7711_v23, %v8521_v20  ;;  %v9098_v20 = vld [vmem:[%s9830_s27 + $0x10] sm:$0xff] }
 0x4a3   :  { %v756_v33 = vmul.f32 %v9098_v20, %v9833_v19 }
 0x4a5   :  { %v758_v25 = vadd.f32 %v756_v33, %v752_v22 }
 0x4a7   :  { %v764_v37 = vadd.f32 %v762_v52, %v758_v25 }
 0x4a9   :  { %v770_v31 = vadd.f32 %v768_v11, %v764_v37 }
 0x545   :  { %v6760_v59 = vpop.f32.mrb[0].mxu1 }
 0x546   :  { %v2152_v21 = vpop.f32.mrb[1].mxu1 }
 0x547   :  { %v9055_v45 = vpack.c.bf16 %v6760_v59, %v2152_v21  ;;  %v9122_v59 = vld [vmem:[%s9830_s27 + $0x40] sm:$0xff]  ;;  %v9838_v21 = vstv %s9829_s8  ;;  %s9849_s8 = sld [smem:[#allocation35_spill]] }
 0x548   :  { %v774_v46 = vmul.f32 %v9122_v59, %v9838_v21  ;;  %v6218_v21 = vld [vmem:[%s9827_s12 + $0x50] sm:$0xff] }
 0x54a   :  { %v776_v36 = vadd.f32 %v774_v46, %v770_v31  ;;  %v6219_v46 = vld [vmem:[%s9827_s12 + $0x58] sm:$0xff] }
 0x54d   :  { %v6688_v54 = vpop.f32.mrb[6].mxu0  ;;  %v6778_v55 = vpop.f32.mrb[2].mxu1 }
 0x54e   :  { %v1500_v40 = vpop.f32.mrb[7].mxu0  ;;  %v2315_v16 = vpop.f32.mrb[3].mxu1 }
 0x54f   :  { %v7240_v50 = vpack.c.bf16 %v6688_v54, %v1500_v40  ;;  %v9063_v18 = vpack.c.bf16 %v6778_v55, %v2315_v16  ;;  %v782_v54 = vadd.f32 %v780_v35, %v776_v36  ;;  %v9138_v55 = vld [vmem:[%s9830_s27 + $0x60] sm:$0xff]  ;;  %v9840_v40 = vstv %s9834_s10  ;;  %v9173_v36 = vld [vmem:[%s9842_s11 + $0x8] sm:$0xff]  ;;  %s6193_s10 = sld [smem:[#allocation19 + $0x87]] }
 0x550   :  { %v786_v16 = vmul.f32 %v9138_v55, %v9840_v40 }
 0x551   :  { %7241 = vmatprep.subr.bf16.mxu0 %v7240_v50 }
 0x552   :  { %7243 = vmatpush3.bf16.msra.mxu0 %v7240_v50  ;;  %v788_v50 = vadd.f32 %v786_v16, %v782_v54  ;;  %v7260_v54 = vpack.c.bf16 %v6219_v46, %v6218_v21  ;;  %v9185_v16 = vld [vmem:[%s9842_s11] sm:$0xff]  ;;  %v831_v21 = vmul.f32 0.01, %v8828_v27  ;;  %s6166_s11 = sld [smem:[#allocation19 + $0x84]] }
 0x553   :  { %7245 = vmatprep.subr.bf16.mxu0 %v7244_v57 }
 0x555   :  { %6694 = vmatmul.mubr.msk.f32.vlgmr.msra.gmra.mrb[4].mxu0 %vm433_vm7, %v9072_v61  ;;  %v6814_v62 = vpop.f32.mrb[4].mxu1 }
 0x556   :  { %7247 = vmatpush3.bf16.msra.mxu0 %v7244_v57  ;;  %6704 = vmatprep.mubr.msk.f32.mxu0 %vm351_vm2, %v8981_v9  ;;  %v2641_v38 = vpop.f32.mrb[5].mxu1  ;;  %v9146_v57 = vld [vmem:[%s9830_s27 + $0x70] sm:$0xff] }
 0x557   :  { %v9078_v6 = vpack.c.bf16 %v6814_v62, %v2641_v38  ;;  %7249 = vmatprep.subr.bf16.mxu0 %v7248_v29  ;;  %v792_v8 = vmul.f32 %v9146_v57, %v791_v42  ;;  %v735_v62 = vsel %vm731_vm14, %v8757_v28, %v733_v58  ;;  %v6216_v28 = vld [vmem:[%s9827_s12 + $0x40] sm:$0xff] }
 0x558   :  { %v737_v23 = vsub.f32 0.0, %v735_v62  ;;  %v9854_v62 = vstv %s9845_s6  ;;  %s9253_s6 = sld [smem:[#allocation19 + $0x5]] }
 0x559   :  { %v794_v44 = vadd.f32 %v792_v8, %v788_v50  ;;  %v9852_v8 = vstv %s9841_s14  ;;  %s9300_s14 = sld [smem:[#allocation19 + $0x304]] }
 0x55a   :  { %7251 = vmatpush3.bf16.msra.mxu0 %v7248_v29  ;;  %v740_v22 = vmul.f32 1.442695, %v737_v23 }
 0x55b   :  { %v820_v5 = vadd.f32 %v8785_v0, %v794_v44  ;;  %v850_v44 = vmul.f32 %v9090_v34, %v9852_v8 }
 0x55c   :  { %7712 = vpow2.f32 %v740_v22 }
 0x55d   :  { %6705 = vmatmul.mubr.msk.f32.vlgmr.msra.gmra.mrb[8].mxu0 %vm351_vm2, %v8983_v4  ;;  %v822_v29 = vadd.f32 %v820_v5, %v8818_v48  ;;  %v6217_v48 = vld [vmem:[%s9827_s12 + $0x48] sm:$0xff]  ;;  %v9853_v5 = vstv %s9843_s15  ;;  %s9251_s15 = sld [smem:[#allocation19 + $0x104]] }
 0x55e   :  { %6711 = vmatprep.mubr.msk.f32.mxu0 %vm433_vm7, %v9081_v15  ;;  %v7256_v11 = vpack.c.bf16 %v6217_v48, %v6216_v28  ;;  %v854_v58 = vmul.f32 %v9098_v20, %v9853_v5  ;;  %v9859_v28 = vstv %s9849_s8  ;;  %s9271_s8 = sld [smem:[#allocation19 + $0x284]] }
 0x55f   :  { %v826_v38 = vadd.f32 %v825_v30, %v822_v29  ;;  %v884_v48 = vmul.f32 %v9138_v55, %v9859_v28 }
 0x560   :  { %v856_v29 = vadd.f32 %v854_v58, %v850_v44 }
 0x561   :  { %v830_v14 = vmul.f32 0.01, %v826_v38  ;;  %vm828_vm15 = vcmp.gt.f32.partialorder %v826_v38, 0.0 }
 0x563   :  { %v832_v19 = vsel %vm828_vm15, %v826_v38, %v830_v14  ;;  %v860_v38 = vmul.f32 %v9106_v32, %v9854_v62  ;;  %v9855_v14 = vstv %s9846_s20  ;;  %s9255_s20 = sld [smem:[#allocation19 + $0x85]] }
 0x564   :  { %v834_v42 = vsub.f32 0.0, %v832_v19  ;;  %v866_v22 = vmul.f32 %v9114_v1, %v9855_v14 }
 0x565   :  { %v862_v23 = vadd.f32 %v860_v38, %v856_v29 }
 0x566   :  { %v836_v33 = vmul.f32 1.442695, %v834_v42  ;;  %v7713_v0 = vpop.eup %7712  ;;  %v9857_v42 = vstv %s9847_s26  ;;  %s9257_s26 = sld [smem:[#allocation19 + $0x184]] }
 0x567   :  { %v743_v25 = vadd.f32 1.0, %v7713_v0  ;;  %v868_v19 = vadd.f32 %v866_v22, %v862_v23 }
 0x568   :  { %7714 = vpow2.f32 %v836_v33  ;;  %v872_v33 = vmul.f32 %v9122_v59, %v9857_v42 }
 0x569   :  { %7716 = vrcp.f32 %v743_v25  ;;  %v9858_v25 = vstv %s9848_s18  ;;  %s9259_s18 = sld [smem:[#allocation19 + $0x105]] }
 0x56a   :  { %v874_v0 = vadd.f32 %v872_v33, %v868_v19 }
 0x572   :  { %v7715_v17 = vpop.eup %7714 }
 0x573   :  { %v840_v52 = vadd.f32 1.0, %v7715_v17  ;;  %v7717_v31 = vpop.eup %7716  ;;  %v878_v17 = vmul.f32 %v9130_v47, %v9858_v25  ;;  %v6227_v25 = vld [vmem:[%s9827_s12 + $0x78] sm:$0xff] }
 0x574   :  { %v9176_v35 = vmul.f32 %v9173_v36, %v7717_v31 }
 0x575   :  { %7718 = vrcp.f32 %v840_v52  ;;  %v880_v52 = vadd.f32 %v878_v17, %v874_v0  ;;  %v6226_v0 = vld [vmem:[%s9827_s12 + $0x70] sm:$0xff] }
 0x576   :  { %9844 = vst [vmem:[#allocation43_spill] sm:$0xff] %v9176_v35 }
 0x57f   :  { %v7719_v40 = vpop.eup %7718 }
 0x580   :  { %v9188_v50 = vmul.f32 %v9185_v16, %v7719_v40 }
 0x582   :  { %9850 = vst [vmem:[#allocation44_spill] sm:$0xff] %v9188_v50 }
 0x630   :  { %v6706_v30 = vpop.f32.mrb[8].mxu0 }
 0x631   :  { %v1663_v37 = vpop.f32.mrb[9].mxu0 }
 0x632   :  { %v7252_v51 = vpack.c.bf16 %v6706_v30, %v1663_v37  ;;  %v886_v30 = vadd.f32 %v884_v48, %v880_v52  ;;  %v9860_v37 = vstv %s9851_s24  ;;  %v7272_v52 = vpack.c.bf16 %v6227_v25, %v6226_v0 }
 0x634   :  { %7253 = vmatprep.subr.bf16.mxu0 %v7252_v51 }
 0x635   :  { %7255 = vmatpush3.bf16.msra.mxu0 %v7252_v51  ;;  %v890_v51 = vmul.f32 %v9146_v57, %v9860_v37  ;;  %v951_v37 = vstv %s6166_s11  ;;  %s9313_s11 = sld [smem:[#allocation19 + $0x285]] }
 0x636   :  { %7257 = vmatprep.subr.bf16.mxu0 %v7256_v11 }
 0x638   :  { %6712 = vmatmul.mubr.msk.f32.vlgmr.msra.gmra.mrb[4].mxu0 %vm433_vm7, %v9176_v35 }
 0x639   :  { %7259 = vmatpush3.bf16.msra.mxu0 %v7256_v11  ;;  %6722 = vmatprep.mubr.msk.f32.mxu0 %vm351_vm2, %v8981_v9  ;;  %v892_v11 = vadd.f32 %v890_v51, %v886_v30  ;;  %v947_v30 = vstv %s6165_s1  ;;  %s6198_s1 = sld [smem:[#allocation19 + $0x307]] }
 0x63a   :  { %7261 = vmatprep.subr.bf16.mxu0 %v7260_v54  ;;  %v948_v51 = vmul.f32 %v9090_v34, %v947_v30 }
 0x63b   :  { %v918_v31 = vadd.f32 %v8824_v13, %v892_v11  ;;  %v952_v11 = vmul.f32 %v9098_v20, %v951_v37  ;;  %v1073_v56 = vstv %s9313_s11  ;;  %s6199_s11 = sld [smem:[#allocation19 + $0x387]] }
 0x63d   :  { %7263 = vmatpush3.bf16.msra.mxu0 %v7260_v54  ;;  %v920_v46 = vadd.f32 %v918_v31, %v8830_v49  ;;  %v833_v54 = vsel %vm829_vm0, %v8828_v27, %v831_v21  ;;  %v6224_v27 = vld [vmem:[%s9827_s12 + $0x60] sm:$0xff]  ;;  %v6225_v49 = vld [vmem:[%s9827_s12 + $0x68] sm:$0xff]  ;;  %v957_v31 = vstv %s9251_s15  ;;  %v1045_v21 = vstv %s9253_s6  ;;  %s9317_s15 = sld [smem:[#allocation19 + $0x384]] }
 0x63e   :  { %v835_v8 = vsub.f32 0.0, %v833_v54  ;;  %v7268_v42 = vpack.c.bf16 %v6225_v49, %v6224_v27  ;;  %v963_v54 = vstv %s9257_s26  ;;  %v969_v27 = vstv %s9261_s29  ;;  %s9330_s26 = sld [smem:[#allocation19 + $0x305]] }
 0x63f   :  { %v924_v40 = vadd.f32 %v923_v63, %v920_v46  ;;  %v1049_v46 = vstv %s9255_s20 }
 0x640   :  { %6723 = vmatmul.mubr.msk.f32.vlgmr.msra.gmra.mrb[10].mxu0 %vm351_vm2, %v8983_v4  ;;  %v838_v5 = vmul.f32 1.442695, %v835_v8 }
 0x641   :  { %6729 = vmatprep.mubr.msk.f32.mxu0 %vm433_vm7, %v9188_v50  ;;  %v928_v44 = vmul.f32 0.01, %v924_v40  ;;  %vm926_vm1 = vcmp.gt.f32.partialorder %v924_v40, 0.0 }
 0x642   :  { %7720 = vpow2.f32 %v838_v5  ;;  %v958_v5 = vmul.f32 %v9106_v32, %v957_v31 }
 0x643   :  { %v930_v58 = vsel %vm926_vm1, %v924_v40, %v928_v44  ;;  %v9276_v40 = vld [vmem:[%s9863_s30] sm:$0xf]  ;;  %v954_v44 = vadd.f32 %v952_v11, %v948_v51  ;;  %vm8064_vm1 = vmmov 0  }
 0x644   :  { %v932_v29 = vsub.f32 0.0, %v930_v58  ;;  %v1008_v8 = vmul.f32 %v9276_v40, %v8897_v7  ;;  %v9284_v58 = vld [vmem:[%s9830_s27 + $0x8] sm:$0xff]  ;;  %v1050_v7 = vmul.f32 %v9098_v20, %v1049_v46 }
 0x646   :  { %v934_v62 = vmul.f32 1.442695, %v932_v29  ;;  %v949_v29 = vmul.f32 %v9284_v58, %v947_v30  ;;  %v1009_v49 = vsel %vm365_vm3, %v1008_v8, 0.0  ;;  %v970_v30 = vmul.f32 %v9122_v59, %v969_v27 }
 0x648   :  { %7722 = vpow2.f32 %v934_v62  ;;  %v9290_v62 = vld [vmem:[%s9830_s27 + $0x18] sm:$0xff] }
 0x64c   :  { %v7721_v13 = vpop.eup %7720 }
 0x64d   :  { %v841_v38 = vadd.f32 1.0, %v7721_v13  ;;  %v953_v13 = vmul.f32 %v9290_v62, %v951_v37 }
 0x64f   :  { %7724 = vrcp.f32 %v841_v38  ;;  %v1046_v38 = vmul.f32 %v9090_v34, %v1045_v21 }
 0x651   :  { %v1052_v0 = vadd.f32 %v1050_v7, %v1046_v38  ;;  %v1067_v7 = vstv %s9296_s17  ;;  %s6195_s17 = sld [smem:[#allocation19 + $0x187]] }
 0x652   :  { %v7723_v23 = vpop.eup %7722 }
 0x653   :  { %v938_v14 = vadd.f32 1.0, %v7723_v23  ;;  %v1055_v23 = vstv %s9259_s18 }
 0x654   :  { %v1056_v25 = vmul.f32 %v9106_v32, %v1055_v23 }
 0x655   :  { %7726 = vrcp.f32 %v938_v14  ;;  %v964_v14 = vmul.f32 %v9114_v1, %v963_v54 }
 0x659   :  { %v7725_v33 = vpop.eup %7724 }
 0x65a   :  { %v9238_v17 = vmul.f32 %v9173_v36, %v7725_v33 }
 0x65c   :  { %9861 = vst [vmem:[#allocation45_spill] sm:$0xff] %v9238_v17 }
 0x65f   :  { %v7727_v28 = vpop.eup %7726 }
 0x660   :  { %v9245_v48 = vmul.f32 %v9185_v16, %v7727_v28  ;;  %v1061_v28 = vstv %s9268_s22  ;;  %s9343_s22 = sld [smem:[#allocation19 + $0x385]] }
 0x662   :  { %9862 = vst [vmem:[#allocation46_spill] sm:$0xff] %v9245_v48 }
 0x713   :  { %v6724_v63 = vpop.f32.mrb[10].mxu0 }
 0x714   :  { %v1826_v22 = vpop.f32.mrb[11].mxu0 }
 0x715   :  { %v7264_v19 = vpack.c.bf16 %v6724_v63, %v1826_v22  ;;  %v960_v63 = vadd.f32 %v958_v5, %v954_v44  ;;  %v1106_v22 = vmul.f32 %v9276_v40, %v8950_v10  ;;  %v975_v10 = vstv %s9271_s8 }
 0x716   :  { %v1058_v44 = vadd.f32 %v1056_v25, %v1052_v0  ;;  %v1062_v5 = vmul.f32 %v9114_v1, %v1061_v28 }
 0x717   :  { %7265 = vmatprep.subr.bf16.mxu0 %v7264_v19  ;;  %v966_v37 = vadd.f32 %v964_v14, %v960_v63  ;;  %v1107_v51 = vsel %vm365_vm3, %v1106_v22, 0.0  ;;  %v976_v14 = vmul.f32 %v9130_v47, %v975_v10  ;;  %v981_v63 = vstv %s9300_s14  ;;  %s6196_s14 = sld [smem:[#allocation19 + $0x207]] }
 0x718   :  { %7267 = vmatpush3.bf16.msra.mxu0 %v7264_v19  ;;  %v955_v19 = vadd.f32 %v953_v13, %v949_v29  ;;  %v1047_v29 = vmul.f32 %v9284_v58, %v1045_v21  ;;  %v1051_v13 = vmul.f32 %v9290_v62, %v1049_v46  ;;  %v1064_v46 = vadd.f32 %v1062_v5, %v1058_v44 }
 0x719   :  { %7269 = vmatprep.subr.bf16.mxu0 %v7268_v42  ;;  %v972_v22 = vadd.f32 %v970_v30, %v966_v37  ;;  %v982_v30 = vmul.f32 %v9138_v55, %v981_v63  ;;  %v987_v37 = vstv %s9317_s15  ;;  %v1074_v5 = vmul.f32 %v9130_v47, %v1073_v56  ;;  %s6200_s15 = sld [smem:[#allocation21 + $0x7]] }
 0x71a   :  { %v1053_v0 = vadd.f32 %v1051_v13, %v1047_v29 }
 0x71b   :  { %6730 = vmatmul.mubr.msk.f32.vlgmr.msra.gmra.mrb[4].mxu0 %vm433_vm7, %v9238_v17  ;;  %v9864_v17 = vstv %s8869_s23  ;;  %s9375_s23 = sld [smem:[#allocation21 + $0x4]] }
 0x71c   :  { %7271 = vmatpush3.bf16.msra.mxu0 %v7268_v42  ;;  %6740 = vmatprep.mubr.msk.f32.mxu0 %vm351_vm2, %v8981_v9  ;;  %v9308_v42 = vld [vmem:[%s9830_s27 + $0x28] sm:$0xff] }
 0x71d   :  { %7273 = vmatprep.subr.bf16.mxu0 %v7272_v52  ;;  %v959_v33 = vmul.f32 %v9308_v42, %v957_v31  ;;  %v9323_v31 = vld [vmem:[%s9830_s27 + $0x38] sm:$0xff]  ;;  %v1057_v25 = vmul.f32 %v9308_v42, %v1055_v23 }
 0x71e   :  { %v965_v8 = vmul.f32 %v9323_v31, %v963_v54  ;;  %v9337_v54 = vld [vmem:[%s9830_s27 + $0x48] sm:$0xff]  ;;  %v1063_v13 = vmul.f32 %v9323_v31, %v1061_v28 }
 0x71f   :  { %v961_v11 = vadd.f32 %v959_v33, %v955_v19  ;;  %v1108_v19 = vrot.slane %v1107_v51, 4  ;;  %v971_v21 = vmul.f32 %v9337_v54, %v969_v27  ;;  %v9350_v27 = vld [vmem:[%s9830_s27 + $0x58] sm:$0xff]  ;;  %v1059_v29 = vadd.f32 %v1057_v25, %v1053_v0 }
 0x720   :  { %7275 = vmatpush3.bf16.msra.mxu0 %v7272_v52  ;;  %v1010_v52 = vrot.slane %v1009_v49, 4  ;;  %v977_v23 = vmul.f32 %v9350_v27, %v975_v10 }
 0x721   :  { %v967_v33 = vadd.f32 %v965_v8, %v961_v11  ;;  %v978_v11 = vadd.f32 %v976_v14, %v972_v22  ;;  %v1109_v8 = vadd.f32 %v1108_v19, %v1107_v51  ;;  %v1144_v51 = vmul.f32 %v9090_v34, %v9864_v17 }
 0x722   :  { %v1011_v38 = vadd.f32 %v1010_v52, %v1009_v49  ;;  %v1068_v49 = vmul.f32 %v9122_v59, %v1067_v7  ;;  %v9865_v14 = vstv %s8871_s2  ;;  %v988_v19 = vmul.f32 %v9146_v57, %v987_v37  ;;  %s9880_s2 = sld [smem:[#allocation60_spill]] }
 0x723   :  { %6741 = vmatmul.mubr.msk.f32.vlgmr.msra.gmra.mrb[12].mxu0 %vm351_vm2, %v8983_v4  ;;  %v973_v26 = vadd.f32 %v971_v21, %v967_v33  ;;  %v1148_v22 = vmul.f32 %v9098_v20, %v9865_v14  ;;  %v984_v33 = vadd.f32 %v982_v30, %v978_v11  ;;  %v1110_v10 = vrot.slane %v1109_v8, 2 }
 0x724   :  { %6747 = vmatprep.mubr.msk.f32.mxu0 %vm433_vm7, %v9245_v48  ;;  %v1012_v52 = vrot.slane %v1011_v38, 2  ;;  %v1070_v44 = vadd.f32 %v1068_v49, %v1064_v46  ;;  %v1079_v48 = vstv %s9330_s26  ;;  %v9366_v46 = vld [vmem:[%s9830_s27 + $0x68] sm:$0xff]  ;;  %v1065_v0 = vadd.f32 %v1063_v13, %v1059_v29  ;;  %s9873_s26 = sld [smem:[#allocation57_spill]] }
 0x725   :  { %v979_v21 = vadd.f32 %v977_v23, %v973_v26  ;;  %v983_v28 = vmul.f32 %v9366_v46, %v981_v63  ;;  %v1080_v49 = vmul.f32 %v9138_v55, %v1079_v48  ;;  %v1069_v17 = vmul.f32 %v9337_v54, %v1067_v7  ;;  %v9380_v63 = vld [vmem:[%s9830_s27 + $0x78] sm:$0xff] }
 0x726   :  { %v1013_v3 = vadd.f32 %v1012_v52, %v1011_v38  ;;  %v1076_v38 = vadd.f32 %v1074_v5, %v1070_v44  ;;  %v1085_v52 = vstv %s9343_s22  ;;  %v1150_v14 = vadd.f32 %v1148_v22, %v1144_v51  ;;  %s9878_s22 = sld [smem:[#allocation58_spill]] }
 0x727   :  { %v9866_v30 = vstv %s8873_s5  ;;  %v990_v11 = vadd.f32 %v988_v19, %v984_v33  ;;  %v985_v23 = vadd.f32 %v983_v28, %v979_v21  ;;  %v989_v44 = vmul.f32 %v9380_v63, %v987_v37  ;;  %s9394_s5 = sld [smem:[#allocation21 + $0x5]] }
 0x728   :  { %v1014_v25 = vrot.slane %v1013_v3, 1  ;;  %v1154_v26 = vmul.f32 %v9106_v32, %v9866_v30  ;;  %v1111_v5 = vadd.f32 %v1110_v10, %v1109_v8  ;;  %v1086_v7 = vmul.f32 %v9146_v57, %v1085_v52 }
 0x729   :  { %v1071_v29 = vadd.f32 %v1069_v17, %v1065_v0  ;;  %v1075_v13 = vmul.f32 %v9350_v27, %v1073_v56  ;;  %v1082_v22 = vadd.f32 %v1080_v49, %v1076_v38  ;;  %v9867_v19 = vstv %s8883_s21  ;;  %s9881_s21 = sld [smem:[#allocation61_spill]] }
 0x72a   :  { %v1015_v51 = vadd.f32 %v1014_v25, %v1013_v3  ;;  %v1156_v30 = vadd.f32 %v1154_v26, %v1150_v14  ;;  %v1160_v33 = vmul.f32 %v9114_v1, %v9867_v19  ;;  %v1016_v21 = vadd.f32 %v8939_v2, %v990_v11 }
 0x72b   :  { %v991_v28 = vadd.f32 %v989_v44, %v985_v23  ;;  %v1112_v50 = vrot.slane %v1111_v5, 1  ;;  %v1077_v37 = vadd.f32 %v1075_v13, %v1071_v29  ;;  %v1081_v8 = vmul.f32 %v9366_v46, %v1079_v48 }
 0x72c   :  { %v1018_v10 = vadd.f32 %v1016_v21, %v1015_v51  ;;  %v1088_v35 = vadd.f32 %v1086_v7, %v1082_v22  ;;  %v1162_v0 = vadd.f32 %v1160_v33, %v1156_v30  ;;  %v9868_v17 = vstv %s8895_s4 }
 0x72d   :  { %v1166_v3 = vmul.f32 %v9122_v59, %v9868_v17  ;;  %v1021_v56 = vstv %s9375_s23  ;;  %v1017_v38 = vadd.f32 %v8908_v41, %v991_v28  ;;  %v1113_v49 = vadd.f32 %v1112_v50, %v1111_v5 }
 0x72e   :  { %v1083_v2 = vadd.f32 %v1081_v8, %v1077_v37  ;;  %v1087_v25 = vmul.f32 %v9380_v63, %v1085_v52  ;;  %v1022_v14 = vadd.f32 %v1021_v56, %v1018_v10  ;;  %v1114_v48 = vadd.f32 %v8919_v24, %v1088_v35 }
 0x72f   :  { %v1168_v26 = vadd.f32 %v1166_v3, %v1162_v0  ;;  %v9869_v11 = vstv %s8906_s28  ;;  %v1019_v44 = vadd.f32 %v1017_v38, %v1015_v51  ;;  %v929_v7 = vmul.f32 0.01, %v8837_v43  ;;  %v1196_v38 = vpop.xlane.xlu1 %1195 }
 0x730   :  { %v1172_v23 = vmul.f32 %v9130_v47, %v9869_v11  ;;  %v1089_v29 = vadd.f32 %v1087_v25, %v1083_v2  ;;  %v9870_v13 = vstv %s8917_s13  ;;  %v1026_v50 = vmul.f32 0.01, %v1022_v14 }
 0x731   :  { %v1178_v41 = vmul.f32 %v9138_v55, %v9870_v13  ;;  %v1116_v5 = vadd.f32 %v1114_v48, %v1113_v49  ;;  %vm1024_vm5 = vcmp.gt.f32.partialorder %v1022_v14, 0.0  ;;  %v1119_v22 = vstv %s9394_s5 }
 0x732   :  { %v1174_v52 = vadd.f32 %v1172_v23, %v1168_v26  ;;  %v1023_v24 = vadd.f32 %v1021_v56, %v1019_v44  ;;  %v931_v35 = vsel %vm927_vm4, %v8837_v43, %v929_v7  ;;  %v1115_v30 = vadd.f32 %v8930_v53, %v1089_v29 }
 0x733   :  { %v1028_v51 = vsel %vm1024_vm5, %v1022_v14, %v1026_v50  ;;  %v1120_v19 = vadd.f32 %v1119_v22, %v1116_v5  ;;  %v9871_v21 = vstv %s8928_s19  ;;  %v933_v37 = vsub.f32 0.0, %v931_v35 }
 0x734   :  { %v1180_v33 = vadd.f32 %v1178_v41, %v1174_v52  ;;  %v1184_v28 = vmul.f32 %v9146_v57, %v9871_v21  ;;  %v1027_v8 = vmul.f32 0.01, %v1023_v24  ;;  %vm1025_vm6 = vcmp.gt.f32.partialorder %v1023_v24, 0.0 }
 0x735   :  { %v1030_v10 = vsub.f32 0.0, %v1028_v51  ;;  %v1117_v0 = vadd.f32 %v1115_v30, %v1113_v49  ;;  %v1124_v17 = vmul.f32 0.01, %v1120_v19  ;;  %vm1122_vm8 = vcmp.gt.f32.partialorder %v1120_v19, 0.0 }
 0x736   :  { %v1186_v3 = vadd.f32 %v1184_v28, %v1180_v33  ;;  %v936_v56 = vmul.f32 1.442695, %v933_v37  ;;  %v1029_v43 = vsel %vm1025_vm6, %v1023_v24, %v1027_v8  ;;  %v9872_v29 = vstv %s8955_s0 }
 0x737   :  { %v1032_v2 = vmul.f32 1.442695, %v1030_v10  ;;  %v1121_v53 = vadd.f32 %v1119_v22, %v1117_v0  ;;  %v1126_v25 = vsel %vm1122_vm8, %v1120_v19, %v1124_v17  ;;  %v1031_v48 = vsub.f32 0.0, %v1029_v43 }
 0x738   :  { %v1212_v14 = vadd.f32 %v1196_v38, %v1186_v3  ;;  %7728 = vpow2.f32 %v936_v56  ;;  %v1128_v26 = vsub.f32 0.0, %v1126_v25  ;;  %v6248_v25 = vld [vmem:[%s9827_s12 + $0xc0] sm:$0xff] }
 0x739   :  { %7730 = vpow2.f32 %v1032_v2  ;;  %v1125_v11 = vmul.f32 0.01, %v1121_v53  ;;  %vm1123_vm9 = vcmp.gt.f32.partialorder %v1121_v53, 0.0  ;;  %v1034_v49 = vmul.f32 1.442695, %v1031_v48 }
 0x73a   :  { %v1214_v23 = vadd.f32 %v1212_v14, %v8959_v60  ;;  %v1130_v44 = vmul.f32 1.442695, %v1128_v26  ;;  %v6249_v14 = vld [vmem:[%s9827_s12 + $0xc8] sm:$0xff] }
 0x73b   :  { %v1127_v7 = vsel %vm1123_vm9, %v1121_v53, %v1125_v11  ;;  %7732 = vpow2.f32 %v1034_v49 }
 0x73c   :  { %v1218_v13 = vadd.f32 %v9872_v29, %v1214_v23  ;;  %v1129_v41 = vsub.f32 0.0, %v1127_v7  ;;  %7734 = vpow2.f32 %v1130_v44  ;;  %v6250_v44 = vld [vmem:[%s9827_s12 + $0xd0] sm:$0xff]  ;;  %v6251_v7 = vld [vmem:[%s9827_s12 + $0xd8] sm:$0xff]  ;;  %s6192_s12 = sld [smem:[#allocation19 + $0x7]] }
 0x73e   :  { %v1222_v5 = vmul.f32 0.01, %v1218_v13  ;;  %vm1220_vm10 = vcmp.gt.f32.partialorder %v1218_v13, 0.0  ;;  %v1132_v22 = vmul.f32 1.442695, %v1129_v41 }
 0x740   :  { %v1224_v30 = vsel %vm1220_vm10, %v1218_v13, %v1222_v5  ;;  %7736 = vpow2.f32 %v1132_v22  ;;  %v7308_v13 = vpack.c.bf16 %v6251_v7, %v6250_v44  ;;  %v1245_v5 = vstv %s6193_s10 }
 0x741   :  { %v1226_v60 = vsub.f32 0.0, %v1224_v30  ;;  %v1246_v22 = vmul.f32 %v9098_v20, %v1245_v5  ;;  %v1263_v20 = vstv %s6196_s14 }
 0x742   :  { %v7729_v50 = vpop.eup %7728 }
 0x743   :  { %v7731_v52 = vpop.eup %7730  ;;  %v939_v24 = vadd.f32 1.0, %v7729_v50  ;;  %v1228_v21 = vmul.f32 1.442695, %v1226_v60  ;;  %v1241_v50 = vstv %s6192_s12 }
 0x744   :  { %v1036_v35 = vadd.f32 1.0, %v7731_v52  ;;  %v1242_v52 = vmul.f32 %v9090_v34, %v1241_v50 }
 0x745   :  { %v7733_v51 = vpop.eup %7732  ;;  %7738 = vrcp.f32 %v939_v24  ;;  %v1300_v24 = vpop.permute.xlu1 %1299 }
 0x746   :  { %7740 = vrcp.f32 %v1036_v35  ;;  %v7735_v19 = vpop.eup %7734  ;;  %v1037_v33 = vadd.f32 1.0, %v7733_v51  ;;  %v1251_v35 = vstv %s6194_s16  ;;  %v1302_v30 = vmul.f32 %v9276_v40, %v1300_v24 }
 0x747   :  { %v1134_v28 = vadd.f32 1.0, %v7735_v19  ;;  %v1248_v51 = vadd.f32 %v1246_v22, %v1242_v52  ;;  %v1252_v60 = vmul.f32 %v9106_v32, %v1251_v35  ;;  %v1257_v19 = vstv %s6195_s17 }
 0x748   :  { %7742 = vrcp.f32 %v1037_v33  ;;  %v1243_v33 = vmul.f32 %v9284_v58, %v1241_v50  ;;  %v1258_v34 = vmul.f32 %v9114_v1, %v1257_v19  ;;  %v1253_v40 = vmul.f32 %v9308_v42, %v1251_v35  ;;  %v1294_v50 = vpop.xlane.xlu0 %1293 }
 0x749   :  { %7744 = vpow2.f32 %v1228_v21  ;;  %v1247_v21 = vmul.f32 %v9290_v62, %v1245_v5  ;;  %v1264_v32 = vmul.f32 %v9122_v59, %v1263_v20  ;;  %v1259_v62 = vmul.f32 %v9323_v31, %v1257_v19 }
 0x74a   :  { %v7737_v10 = vpop.eup %7736  ;;  %7746 = vrcp.f32 %v1134_v28  ;;  %v1303_v28 = vsel %vm365_vm3, %v1302_v30, 0.0  ;;  %v1315_v35 = vstv %s6200_s15  ;;  %vm1221_vm3 = vcmp.gt.f32.partialorder %v8967_v12, 0.0 }
 0x74b   :  { %v1135_v38 = vadd.f32 1.0, %v7737_v10  ;;  %v1249_v10 = vadd.f32 %v1247_v21, %v1243_v33 }
 0x74c   :  { %v1297_v30 = vpop.xlane.xlu0 %1296 }
 0x74d   :  { %7748 = vrcp.f32 %v1135_v38  ;;  %v1255_v58 = vadd.f32 %v1253_v40, %v1249_v10 }
 0x74f   :  { %v7739_v17 = vpop.eup %7738 }
 0x750   :  { %v7741_v3 = vpop.eup %7740  ;;  %v9418_v56 = vmul.f32 %v9173_v36, %v7739_v17  ;;  %v1269_v17 = vstv %s6197_s3 }
 0x751   :  { %v9421_v43 = vmul.f32 %v9185_v16, %v7741_v3 }
 0x752   :  { %v7743_v2 = vpop.eup %7742 }
 0x753   :  { %v7745_v53 = vpop.eup %7744  ;;  %v9436_v11 = vmul.f32 %v9173_v36, %v7743_v2  ;;  %v1270_v2 = vmul.f32 %v9130_v47, %v1269_v17 }
 0x754   :  { %v7747_v48 = vpop.eup %7746  ;;  %v1232_v26 = vadd.f32 1.0, %v7745_v53  ;;  %v1275_v53 = vstv %s6198_s1 }
 0x755   :  { %v9439_v23 = vmul.f32 %v9185_v16, %v7747_v48  ;;  %v1276_v42 = vmul.f32 %v9138_v55, %v1275_v53  ;;  %v1277_v47 = vmul.f32 %v9366_v46, %v1275_v53 }
 0x756   :  { %7750 = vrcp.f32 %v1232_v26  ;;  %v1281_v26 = vstv %s6199_s11 }
 0x757   :  { %v7749_v49 = vpop.eup %7748  ;;  %v1282_v7 = vmul.f32 %v9146_v57, %v1281_v26  ;;  %v1283_v52 = vmul.f32 %v9380_v63, %v1281_v26  ;;  %v1223_v57 = vmul.f32 0.01, %v8967_v12  ;;  %v2835_v26 = vld [vmem:[#allocation8] sm:$0xff] }
 0x758   :  { %v9453_v29 = vmul.f32 %v9173_v36, %v7749_v49  ;;  %v1271_v49 = vmul.f32 %v9350_v27, %v1269_v17 }
 0x759   :  { %v1225_v19 = vsel %vm1221_vm3, %v8967_v12, %v1223_v57 }
 0x7f6   :  { %v6742_v37 = vpop.f32.mrb[12].mxu0 }
 0x7f7   :  { %v1989_v8 = vpop.f32.mrb[13].mxu0 }
 0x7f8   :  { %v7276_v0 = vpack.c.bf16 %v6742_v37, %v1989_v8  ;;  %v1254_v37 = vadd.f32 %v1252_v60, %v1248_v51  ;;  %v1304_v8 = vrot.slane %v1303_v28, 4 }
 0x7fa   :  { %7277 = vmatprep.subr.bf16.mxu0 %v7276_v0  ;;  %v1305_v3 = vadd.f32 %v1304_v8, %v1303_v28  ;;  %v1227_v28 = vsub.f32 0.0, %v1225_v19 }
 0x7fb   :  { %7279 = vmatpush3.bf16.msra.mxu0 %v7276_v0  ;;  %v1260_v0 = vadd.f32 %v1258_v34, %v1254_v37 }
 0x7fc   :  { %7289 = vmatprep.subr.bf16.mxu0 %v9055_v45  ;;  %v1306_v1 = vrot.slane %v1305_v3, 2  ;;  %v1230_v34 = vmul.f32 1.442695, %v1227_v28 }
 0x7fd   :  { %v1266_v38 = vadd.f32 %v1264_v32, %v1260_v0 }
 0x7fe   :  { %6748 = vmatmul.mubr.msk.f32.vlgmr.msra.gmra.mrb[4].mxu0 %vm433_vm7, %v9418_v56  ;;  %7752 = vpow2.f32 %v1230_v34 }
 0x7ff   :  { %7291 = vmatpush3.bf16.msra.mxu0 %v9055_v45  ;;  %6765 = vmatprep.mubr.msk.f32.mxu0 %vm433_vm7, %v9421_v43  ;;  %v7304_v45 = vpack.c.bf16 %v6249_v14, %v6248_v25  ;;  %v1261_v25 = vadd.f32 %v1259_v62, %v1255_v58  ;;  %v1265_v14 = vmul.f32 %v9337_v54, %v1263_v20 }
 0x800   :  { %7301 = vmatprep.subr.bf16.mxu0 %v9063_v18  ;;  %v1272_v48 = vadd.f32 %v1270_v2, %v1266_v38 }
 0x801   :  { %v1267_v59 = vadd.f32 %v1265_v14, %v1261_v25 }
 0x802   :  { %v1278_v44 = vadd.f32 %v1276_v42, %v1272_v48 }
 0x806   :  { %6766 = vmatmul.mubr.msk.f32.vlgmr.msra.gmra.mrb[4].mxu0 %vm433_vm7, %v9436_v11 }
 0x807   :  { %7303 = vmatpush3.bf16.msra.mxu0 %v9063_v18  ;;  %6783 = vmatprep.mubr.msk.f32.mxu0 %vm433_vm7, %v9439_v23  ;;  %v7751_v18 = vpop.eup %7750 }
 0x808   :  { %7305 = vmatprep.subr.bf16.mxu0 %v7304_v45  ;;  %v9460_v41 = vmul.f32 %v9185_v16, %v7751_v18  ;;  %v1284_v18 = vadd.f32 %v1282_v7, %v1278_v44  ;;  %v7753_v0 = vpop.eup %7752  ;;  %v2837_v44 = vld [vmem:[#allocation8 + $0x10] sm:$0xff]  ;;  %v2838_v7 = vld [vmem:[#allocation8 + $0x18] sm:$0xff] }
 0x809   :  { %v1233_v17 = vadd.f32 1.0, %v7753_v0  ;;  %v3464_v0 = vld [vmem:[#allocation8 + $0x88] sm:$0xff] }
 0x80a   :  { %v1310_v55 = vadd.f32 %v1294_v50, %v1284_v18  ;;  %v3149_v18 = vld [vmem:[#allocation8 + $0x40] sm:$0xff] }
 0x80e   :  { %6784 = vmatmul.mubr.msk.f32.vlgmr.msra.gmra.mrb[4].mxu0 %vm433_vm7, %v9453_v29 }
 0x80f   :  { %7307 = vmatpush3.bf16.msra.mxu0 %v7304_v45  ;;  %6794 = vmatprep.mubr.msk.f32.mxu0 %vm351_vm2, %v8981_v9  ;;  %v1307_v45 = vadd.f32 %v1306_v1, %v1305_v3 }
 0x810   :  { %7309 = vmatprep.subr.bf16.mxu0 %v7308_v13 }
 0x811   :  { %v1308_v31 = vrot.slane %v1307_v45, 1 }
 0x813   :  { %7311 = vmatpush3.bf16.msra.mxu0 %v7308_v13  ;;  %v1273_v13 = vadd.f32 %v1271_v49, %v1267_v59  ;;  %v1309_v5 = vadd.f32 %v1308_v31, %v1307_v45  ;;  %v2836_v45 = vld [vmem:[#allocation8 + $0x8] sm:$0xff]  ;;  %v2743_v59 = vld [vmem:[#allocation9] sm:$0xff] }
 0x814   :  { %v2744_v49 = vld [vmem:[#allocation9 + $0x8] sm:$0xff] }
 0x815   :  { %v1279_v54 = vadd.f32 %v1277_v47, %v1273_v13  ;;  %v1312_v22 = vadd.f32 %v1310_v55, %v1309_v5  ;;  %v7328_v31 = vpack.c.bf16 %v2744_v49, %v2743_v59  ;;  %v7340_v13 = vpack.c.bf16 %v2838_v7, %v2837_v44  ;;  %v2746_v47 = vld [vmem:[#allocation9 + $0x18] sm:$0xff]  ;;  %v3936_v59 = vld [vmem:[#allocation8 + $0xf0] sm:$0xff]  ;;  %v2992_v44 = vld [vmem:[#allocation8 + $0x20] sm:$0xff] }
 0x816   :  { %6795 = vmatmul.mubr.msk.f32.vlgmr.msra.gmra.mrb[14].mxu0 %vm351_vm2, %v8983_v4  ;;  %v2993_v7 = vld [vmem:[#allocation8 + $0x28] sm:$0xff] }
 0x817   :  { %6801 = vmatprep.mubr.msk.f32.mxu0 %vm433_vm7, %v9460_v41  ;;  %v1285_v24 = vadd.f32 %v1283_v52, %v1279_v54  ;;  %v1316_v27 = vadd.f32 %v1315_v35, %v1312_v22  ;;  %7329 = vmatprep.subr.bf16.mxu1 %v7328_v31  ;;  %v6201_v54 = vld [vmem:[%s9873_s26] ss:$0 sm:$0xff] }
 0x818   :  { %7331 = vmatpush3.bf16.msra.mxu1 %v7328_v31 }
 0x819   :  { %v1311_v51 = vadd.f32 %v1297_v30, %v1285_v24  ;;  %v1320_v46 = vmul.f32 0.01, %v1316_v27  ;;  %vm1318_vm11 = vcmp.gt.f32.partialorder %v1316_v27, 0.0 }
 0x81b   :  { %v1313_v60 = vadd.f32 %v1311_v51, %v1309_v5  ;;  %v1322_v21 = vsel %vm1318_vm11, %v1316_v27, %v1320_v46  ;;  %v3150_v5 = vld [vmem:[#allocation8 + $0x48] sm:$0xff]  ;;  %v3152_v46 = vld [vmem:[#allocation8 + $0x58] sm:$0xff] }
 0x81c   :  { %v1324_v37 = vsub.f32 0.0, %v1322_v21 }
 0x81d   :  { %v1317_v33 = vadd.f32 %v1315_v35, %v1313_v60  ;;  %v3151_v60 = vld [vmem:[#allocation8 + $0x50] sm:$0xff] }
 0x81e   :  { %v1326_v8 = vmul.f32 1.442695, %v1324_v37  ;;  %v7364_v21 = vpack.c.bf16 %v3152_v46, %v3151_v60  ;;  %v3307_v37 = vld [vmem:[#allocation8 + $0x68] sm:$0xff] }
 0x81f   :  { %v1321_v63 = vmul.f32 0.01, %v1317_v33  ;;  %vm1319_vm12 = vcmp.gt.f32.partialorder %v1317_v33, 0.0 }
 0x820   :  { %7754 = vpow2.f32 %v1326_v8  ;;  %v3309_v8 = vld [vmem:[#allocation8 + $0x78] sm:$0xff] }
 0x821   :  { %v1323_v20 = vsel %vm1319_vm12, %v1317_v33, %v1321_v63  ;;  %v3306_v63 = vld [vmem:[#allocation8 + $0x60] sm:$0xff] }
 0x822   :  { %v1325_v10 = vsub.f32 0.0, %v1323_v20  ;;  %v7372_v34 = vpack.c.bf16 %v3307_v37, %v3306_v63  ;;  %v3308_v20 = vld [vmem:[#allocation8 + $0x70] sm:$0xff] }
 0x824   :  { %v1328_v40 = vmul.f32 1.442695, %v1325_v10  ;;  %v7376_v10 = vpack.c.bf16 %v3309_v8, %v3308_v20  ;;  %v9874_v20 = vld [vmem:[#allocation43_spill] sm:$0xff]  ;;  %v9875_v8 = vld [vmem:[#allocation44_spill] sm:$0xff] }
 0x826   :  { %7756 = vpow2.f32 %v1328_v40  ;;  %v3463_v40 = vld [vmem:[#allocation8 + $0x80] sm:$0xff] }
 0x827   :  { %7758 = vrcp.f32 %v1233_v17  ;;  %v3465_v17 = vld [vmem:[#allocation8 + $0x90] sm:$0xff] }
 0x82a   :  { %v7755_v32 = vpop.eup %7754 }
 0x82b   :  { %v1330_v3 = vadd.f32 1.0, %v7755_v32  ;;  %v7384_v32 = vpack.c.bf16 %v3464_v0, %v3463_v40  ;;  %v9877_v40 = vld [vmem:[#allocation46_spill] sm:$0xff] }
 0x82c   :  { %v3620_v0 = vld [vmem:[#allocation8 + $0xa0] sm:$0xff] }
 0x82d   :  { %7760 = vrcp.f32 %v1330_v3  ;;  %v3466_v3 = vld [vmem:[#allocation8 + $0x98] sm:$0xff] }
 0x830   :  { %v7757_v12 = vpop.eup %7756 }
 0x831   :  { %v1331_v58 = vadd.f32 1.0, %v7757_v12  ;;  %v7759_v53 = vpop.eup %7758  ;;  %v7388_v12 = vpack.c.bf16 %v3466_v3, %v3465_v17  ;;  %v3622_v3 = vld [vmem:[#allocation8 + $0xb0] sm:$0xff] }
 0x832   :  { %v9489_v25 = vmul.f32 %v9173_v36, %v7759_v53  ;;  %v3780_v53 = vld [vmem:[#allocation8 + $0xd8] sm:$0xff] }
 0x833   :  { %7762 = vrcp.f32 %v1331_v58  ;;  %v3777_v58 = vld [vmem:[#allocation8 + $0xc0] sm:$0xff] }
 0x837   :  { %v7761_v1 = vpop.eup %7760 }
 0x838   :  { %v9492_v14 = vmul.f32 %v9185_v16, %v7761_v1  ;;  %v7336_v16 = vpack.c.bf16 %v2836_v45, %v2835_v26  ;;  %v3935_v26 = vld [vmem:[#allocation8 + $0xe8] sm:$0xff] }
 0x83d   :  { %v7763_v48 = vpop.eup %7762 }
 0x83e   :  { %v9500_v42 = vmul.f32 %v9173_v36, %v7763_v48  ;;  %v7360_v36 = vpack.c.bf16 %v3150_v5, %v3149_v18  ;;  %v3934_v48 = vld [vmem:[#allocation8 + $0xe0] sm:$0xff]  ;;  %v2994_v18 = vld [vmem:[#allocation8 + $0x30] sm:$0xff] }
 0x83f   :  { %v7420_v45 = vpack.c.bf16 %v3935_v26, %v3934_v48  ;;  %v4100_v48 = vld [vmem:[#allocation12] sm:$0xff] }
 0x8e9   :  { %v6796_v62 = vpop.f32.mrb[14].mxu0 }
 0x8ea   :  { %v2478_v38 = vpop.f32.mrb[15].mxu0 }
 0x8eb   :  { %v7312_v2 = vpack.c.bf16 %v6796_v62, %v2478_v38  ;;  %v3778_v62 = vld [vmem:[#allocation8 + $0xc8] sm:$0xff] }
 0x8ec   :  { %v7408_v38 = vpack.c.bf16 %v3778_v62, %v3777_v58 }
 0x8ed   :  { %7313 = vmatprep.subr.bf16.mxu0 %v7312_v2 }
 0x8ee   :  { %7315 = vmatpush3.bf16.msra.mxu0 %v7312_v2  ;;  %v3779_v2 = vld [vmem:[#allocation8 + $0xd0] sm:$0xff] }
 0x8ef   :  { %7325 = vmatprep.subr.bf16.mxu0 %v9078_v6  ;;  %v7412_v1 = vpack.c.bf16 %v3780_v53, %v3779_v2  ;;  %v4192_v53 = vld [vmem:[#allocation11] sm:$0xff] }
 0x8f1   :  { %6802 = vmatmul.mubr.msk.f32.vlgmr.msra.gmra.mrb[4].mxu0 %vm433_vm7, %v9489_v25 }
 0x8f2   :  { %7327 = vmatpush3.bf16.msra.mxu0 %v9078_v6  ;;  %6819 = vmatprep.mubr.msk.f32.mxu0 %vm433_vm7, %v9492_v14  ;;  %v2745_v6 = vld [vmem:[#allocation9 + $0x10] sm:$0xff] }
 0x8f3   :  { %7337 = vmatprep.subr.bf16.mxu0 %v7336_v16  ;;  %v7332_v50 = vpack.c.bf16 %v2746_v47, %v2745_v6  ;;  %v7348_v47 = vpack.c.bf16 %v2993_v7, %v2992_v44  ;;  %v4102_v7 = vld [vmem:[#allocation12 + $0x10] sm:$0xff] }
 0x8f5   :  { %7333 = vmatprep.subr.bf16.mxu1 %v7332_v50 }
 0x8f6   :  { %7335 = vmatpush3.bf16.msra.mxu1 %v7332_v50  ;;  %v2995_v50 = vld [vmem:[#allocation8 + $0x38] sm:$0xff] }
 0x8f7   :  { %v7352_v5 = vpack.c.bf16 %v2995_v50, %v2994_v18  ;;  %v6266_v50 = vld [vmem:[%s9878_s22] ss:$0 sm:$0xff] }
 0x8f9   :  { %6820 = vmatmul.mubr.msk.f32.vlgmr.msra.gmra.mrb[4].mxu0 %vm433_vm7, %v9500_v42 }
 0x8fa   :  { %7339 = vmatpush3.bf16.msra.mxu0 %v7336_v16  ;;  %v3937_v16 = vld [vmem:[#allocation8 + $0xf8] sm:$0xff] }
 0x8fb   :  { %7341 = vmatprep.subr.bf16.mxu0 %v7340_v13  ;;  %v7424_v49 = vpack.c.bf16 %v3937_v16, %v3936_v59  ;;  %v4194_v59 = vld [vmem:[#allocation11 + $0x10] sm:$0xff]  ;;  %v4195_v16 = vld [vmem:[#allocation11 + $0x18] sm:$0xff] }
 0x8fc   :  { %v7444_v44 = vpack.c.bf16 %v4195_v16, %v4194_v59  ;;  %v5292_v59 = vld [vmem:[#allocation11 + $0xe8] sm:$0xff] }
 0x8fe   :  { %7343 = vmatpush3.bf16.msra.mxu0 %v7340_v13 }
 0x8ff   :  { %7361 = vmatprep.subr.bf16.mxu0 %v7360_v36 }
 0x9cc   :  { %v6821_v52 = vpop.f32.mrb[4].mxu0 }
 0x9cd   :  { %v7584_v55 = vadd.f32 %v6821_v52, %v6201_v54  ;;  %v2722_v22 = vpop.f32.mrb[5].mxu0 }
 0x9ce   :  { %v7585_v24 = vadd.f32 %v6201_v54, %v2722_v22 }
 0x9cf   :  { %v2737_v35 = vmul.f32 1.442695, %v7584_v55  ;;  %vm2734_vm14 = vcmp.gt.f32.partialorder %v7584_v55, 0.0 }
 0x9d0   :  { %v2735_v30 = vmul.f32 1.442695, %v7585_v24  ;;  %vm2733_vm13 = vcmp.gt.f32.partialorder %v7585_v24, 0.0 }
 0x9d1   :  { %7764 = vpow2.f32 %v2737_v35 }
 0x9d2   :  { %7766 = vpow2.f32 %v2735_v30 }
 0x9db   :  { %v7765_v27 = vpop.eup %7764 }
 0x9dc   :  { %v7767_v51 = vpop.eup %7766  ;;  %v6265_v57 = vadd.f32 -1.0, %v7765_v27 }
 0x9dd   :  { %v6264_v19 = vadd.f32 -1.0, %v7767_v51 }
 0x9de   :  { %v9509_v28 = vsel %vm2734_vm14, %v7584_v55, %v6265_v57 }
 0x9df   :  { %v9507_v33 = vsel %vm2733_vm13, %v7585_v24, %v6264_v19 }
 0x9e0   :  { %6830 = vmatprep.mubr.msk.f32.mxu1 %vm351_vm2, %v9507_v33  ;;  %6841 = vmatprep.mubr.msk.f32.mxu0 %vm351_vm2, %v9507_v33 }
 0x9e1   :  { %6831 = vmatmul.mubr.msk.f32.vlgmr.msra.gmra.mrb[6].mxu1 %vm351_vm2, %v9509_v28  ;;  %6842 = vmatmul.mubr.msk.f32.vlgmr.msra.gmra.mrb[16].mxu0 %vm351_vm2, %v9509_v28 }
 0x9e2   :  { %7363 = vmatpush3.bf16.msra.mxu0 %v7360_v36  ;;  %6848 = vmatprep.mubr.msk.f32.mxu1 %vm433_vm7, %v9012_v39 }
 0x9e3   :  { %6877 = vmatprep.mubr.msk.f32.mxu0 %vm351_vm2, %v9507_v33  ;;  %7365 = vmatprep.subr.bf16.mxu0 %v7364_v21 }
 0x9e6   :  { %7367 = vmatpush3.bf16.msra.mxu0 %v7364_v21 }
 0x9e7   :  { %7373 = vmatprep.subr.bf16.mxu0 %v7372_v34 }
 0x9e9   :  { %6878 = vmatmul.mubr.msk.f32.vlgmr.msra.gmra.mrb[18].mxu0 %vm351_vm2, %v9509_v28 }
 0x9ea   :  { %7375 = vmatpush3.bf16.msra.mxu0 %v7372_v34  ;;  %6895 = vmatprep.mubr.msk.f32.mxu0 %vm351_vm2, %v9507_v33 }
 0x9eb   :  { %7377 = vmatprep.subr.bf16.mxu0 %v7376_v10 }
 0x9ee   :  { %7379 = vmatpush3.bf16.msra.mxu0 %v7376_v10  ;;  %v9876_v10 = vld [vmem:[#allocation45_spill] sm:$0xff] }
 0x9ef   :  { %7385 = vmatprep.subr.bf16.mxu0 %v7384_v32 }
 0x9f1   :  { %6896 = vmatmul.mubr.msk.f32.vlgmr.msra.gmra.mrb[20].mxu0 %vm351_vm2, %v9509_v28 }
 0x9f2   :  { %7387 = vmatpush3.bf16.msra.mxu0 %v7384_v32  ;;  %6913 = vmatprep.mubr.msk.f32.mxu0 %vm351_vm2, %v9507_v33  ;;  %v3621_v32 = vld [vmem:[#allocation8 + $0xa8] sm:$0xff] }
 0x9f3   :  { %7389 = vmatprep.subr.bf16.mxu0 %v7388_v12  ;;  %v7396_v17 = vpack.c.bf16 %v3621_v32, %v3620_v0  ;;  %v4666_v0 = vld [vmem:[#allocation11 + $0x78] sm:$0xff] }
 0x9f6   :  { %7391 = vmatpush3.bf16.msra.mxu0 %v7388_v12  ;;  %v3623_v12 = vld [vmem:[#allocation8 + $0xb8] sm:$0xff] }
 0x9f7   :  { %7409 = vmatprep.subr.bf16.mxu0 %v7408_v38  ;;  %v7400_v58 = vpack.c.bf16 %v3623_v12, %v3622_v3  ;;  %v4821_v3 = vld [vmem:[#allocation11 + $0x88] sm:$0xff]  ;;  %v4822_v12 = vld [vmem:[#allocation11 + $0x90] sm:$0xff] }
 0x9f9   :  { %6914 = vmatmul.mubr.msk.f32.vlgmr.msra.gmra.mrb[22].mxu0 %vm351_vm2, %v9509_v28 }
 0x9fa   :  { %7411 = vmatpush3.bf16.msra.mxu0 %v7408_v38  ;;  %6949 = vmatprep.mubr.msk.f32.mxu0 %vm351_vm2, %v9507_v33 }
 0x9fb   :  { %7413 = vmatprep.subr.bf16.mxu0 %v7412_v1 }
 0x9fe   :  { %7415 = vmatpush3.bf16.msra.mxu0 %v7412_v1  ;;  %v4193_v1 = vld [vmem:[#allocation11 + $0x8] sm:$0xff] }
 0x9ff   :  { %7421 = vmatprep.subr.bf16.mxu0 %v7420_v45  ;;  %v7440_v26 = vpack.c.bf16 %v4193_v1, %v4192_v53  ;;  %v4979_v1 = vld [vmem:[#allocation11 + $0xb0] sm:$0xff] }
 0xa01   :  { %6950 = vmatmul.mubr.msk.f32.vlgmr.msra.gmra.mrb[24].mxu0 %vm351_vm2, %v9509_v28 }
 0xa02   :  { %7423 = vmatpush3.bf16.msra.mxu0 %v7420_v45  ;;  %6967 = vmatprep.mubr.msk.f32.mxu0 %vm351_vm2, %v9507_v33  ;;  %v4101_v45 = vld [vmem:[#allocation12 + $0x8] sm:$0xff] }
 0xa03   :  { %7425 = vmatprep.subr.bf16.mxu0 %v7424_v49 }
 0xa06   :  { %7427 = vmatpush3.bf16.msra.mxu0 %v7424_v49  ;;  %v7432_v49 = vpack.c.bf16 %v4101_v45, %v4100_v48  ;;  %v4980_v48 = vld [vmem:[#allocation11 + $0xb8] sm:$0xff]  ;;  %v5291_v45 = vld [vmem:[#allocation11 + $0xe0] sm:$0xff] }
 0xa07   :  { %v7524_v16 = vpack.c.bf16 %v5292_v59, %v5291_v45  ;;  %v4506_v45 = vld [vmem:[#allocation11 + $0x40] sm:$0xff]  ;;  %v4507_v59 = vld [vmem:[#allocation11 + $0x48] sm:$0xff] }
 0xa08   :  { %7433 = vmatprep.subr.bf16.mxu0 %v7432_v49 }
 0xa09   :  { %6968 = vmatmul.mubr.msk.f32.vlgmr.msra.gmra.mrb[26].mxu0 %vm351_vm2, %v9509_v28 }
 0xa0a   :  { %7435 = vmatpush3.bf16.msra.mxu0 %v7432_v49  ;;  %v5293_v49 = vld [vmem:[#allocation11 + $0xf0] sm:$0xff] }
 0xab4   :  { %v6843_v31 = vpop.f32.mrb[16].mxu0 }
 0xab5   :  { %v2905_v13 = vpop.f32.mrb[17].mxu0 }
 0xab6   :  { %v7344_v6 = vpack.c.bf16 %v6843_v31, %v2905_v13  ;;  %v4103_v31 = vld [vmem:[#allocation12 + $0x18] sm:$0xff]  ;;  %v4349_v13 = vld [vmem:[#allocation11 + $0x20] sm:$0xff] }
 0xab8   :  { %7345 = vmatprep.subr.bf16.mxu1 %v7344_v6 }
 0xab9   :  { %7347 = vmatpush3.bf16.msra.mxu1 %v7344_v6  ;;  %v7436_v6 = vpack.c.bf16 %v4103_v31, %v4102_v7  ;;  %v5458_v31 = vld [vmem:[#allocation14] sm:$0xff] }
 0xaba   :  { %7349 = vmatprep.subr.bf16.mxu1 %v7348_v47 }
 0xabb   :  { %7437 = vmatprep.subr.bf16.mxu0 %v7436_v6 }
 0xabc   :  { %v6879_v36 = vpop.f32.mrb[18].mxu0  ;;  %6849 = vmatmul.mubr.msk.f32.vlgmr.msra.gmra.mrb[6].mxu1 %vm433_vm7, %v9072_v61  ;;  %7439 = vmatpush3.bf16.msra.mxu0 %v7436_v6 }
 0xabd   :  { %v3219_v54 = vpop.f32.mrb[19].mxu0  ;;  %7351 = vmatpush3.bf16.msra.mxu1 %v7348_v47  ;;  %6859 = vmatprep.mubr.msk.f32.mxu1 %vm351_vm2, %v9507_v33  ;;  %v4350_v47 = vld [vmem:[#allocation11 + $0x28] sm:$0xff] }
 0xabe   :  { %v7368_v52 = vpack.c.bf16 %v6879_v36, %v3219_v54  ;;  %7353 = vmatprep.subr.bf16.mxu1 %v7352_v5  ;;  %v7452_v18 = vpack.c.bf16 %v4350_v47, %v4349_v13  ;;  %v5459_v13 = vld [vmem:[#allocation14 + $0x8] sm:$0xff]  ;;  %v8063_v47 = vmov 0.0|0.0  }
 0xabf   :  { %v7537_v6 = vpack.c.bf16 %v5459_v13, %v5458_v31  ;;  %v4508_v31 = vld [vmem:[#allocation11 + $0x50] sm:$0xff]  ;;  %v4509_v13 = vld [vmem:[#allocation11 + $0x58] sm:$0xff] }
 0xac1   :  { %7355 = vmatpush3.bf16.msra.mxu1 %v7352_v5 }
 0xac4   :  { %v6897_v55 = vpop.f32.mrb[20].mxu0  ;;  %6860 = vmatmul.mubr.msk.f32.vlgmr.msra.gmra.mrb[8].mxu1 %vm351_vm2, %v9509_v28 }
 0xac5   :  { %v3376_v22 = vpop.f32.mrb[21].mxu0  ;;  %6866 = vmatprep.mubr.msk.f32.mxu1 %vm433_vm7, %v9081_v15 }
 0xac6   :  { %v7380_v24 = vpack.c.bf16 %v6897_v55, %v3376_v22 }
 0xacc   :  { %v6915_v35 = vpop.f32.mrb[22].mxu0 }
 0xacd   :  { %v3533_v30 = vpop.f32.mrb[23].mxu0 }
 0xace   :  { %v7392_v27 = vpack.c.bf16 %v6915_v35, %v3533_v30 }
 0xad4   :  { %v6951_v51 = vpop.f32.mrb[24].mxu0 }
 0xad5   :  { %v3847_v57 = vpop.f32.mrb[25].mxu0 }
 0xad6   :  { %v7416_v60 = vpack.c.bf16 %v6951_v51, %v3847_v57  ;;  %v4352_v51 = vld [vmem:[#allocation11 + $0x38] sm:$0xff] }
 0xadc   :  { %v6969_v46 = vpop.f32.mrb[26].mxu0 }
 0xadd   :  { %v4004_v19 = vpop.f32.mrb[27].mxu0 }
 0xade   :  { %v7428_v21 = vpack.c.bf16 %v6969_v46, %v4004_v19 }
 0xb97   :  { %v6861_v63 = vpop.f32.mrb[8].mxu1 }
 0xb98   :  { %v3062_v37 = vpop.f32.mrb[9].mxu1 }
 0xb99   :  { %v7356_v34 = vpack.c.bf16 %v6861_v63, %v3062_v37  ;;  %v4664_v63 = vld [vmem:[#allocation11 + $0x68] sm:$0xff] }
 0xb9b   :  { %7357 = vmatprep.subr.bf16.mxu1 %v7356_v34 }
 0xb9c   :  { %7359 = vmatpush3.bf16.msra.mxu1 %v7356_v34  ;;  %v4665_v34 = vld [vmem:[#allocation11 + $0x70] sm:$0xff] }
 0xb9d   :  { %7369 = vmatprep.subr.bf16.mxu1 %v7368_v52  ;;  %v7480_v32 = vpack.c.bf16 %v4666_v0, %v4665_v34  ;;  %v5620_v34 = vld [vmem:[#allocation14 + $0xb0] sm:$0xff]  ;;  %v5621_v0 = vld [vmem:[#allocation14 + $0xb8] sm:$0xff] }
 0xb9f   :  { %6867 = vmatmul.mubr.msk.f32.vlgmr.msra.gmra.mrb[6].mxu1 %vm433_vm7, %v9874_v20 }
 0xba0   :  { %7371 = vmatpush3.bf16.msra.mxu1 %v7368_v52  ;;  %6884 = vmatprep.mubr.msk.f32.mxu1 %vm433_vm7, %v9875_v8 }
 0xba1   :  { %7381 = vmatprep.subr.bf16.mxu1 %v7380_v24 }
 0xba7   :  { %6885 = vmatmul.mubr.msk.f32.vlgmr.msra.gmra.mrb[6].mxu1 %vm433_vm7, %v9876_v10 }
 0xba8   :  { %7383 = vmatpush3.bf16.msra.mxu1 %v7380_v24  ;;  %6902 = vmatprep.mubr.msk.f32.mxu1 %vm433_vm7, %v9877_v40 }
 0xba9   :  { %7393 = vmatprep.subr.bf16.mxu1 %v7392_v27 }
 0xbaf   :  { %6903 = vmatmul.mubr.msk.f32.vlgmr.msra.gmra.mrb[6].mxu1 %vm433_vm7, %v9418_v56 }
 0xbb0   :  { %7395 = vmatpush3.bf16.msra.mxu1 %v7392_v27  ;;  %6920 = vmatprep.mubr.msk.f32.mxu1 %vm433_vm7, %v9421_v43  ;;  %v4351_v27 = vld [vmem:[#allocation11 + $0x30] sm:$0xff] }
 0xbb1   :  { %7397 = vmatprep.subr.bf16.mxu1 %v7396_v17  ;;  %v7456_v46 = vpack.c.bf16 %v4352_v51, %v4351_v27  ;;  %v5615_v27 = vld [vmem:[#allocation14 + $0x28] sm:$0xff] }
 0xbb7   :  { %6921 = vmatmul.mubr.msk.f32.vlgmr.msra.gmra.mrb[6].mxu1 %vm433_vm7, %v9436_v11 }
 0xbb8   :  { %7399 = vmatpush3.bf16.msra.mxu1 %v7396_v17  ;;  %6931 = vmatprep.mubr.msk.f32.mxu1 %vm351_vm2, %v9507_v33  ;;  %v4820_v17 = vld [vmem:[#allocation11 + $0x80] sm:$0xff] }
 0xbb9   :  { %7401 = vmatprep.subr.bf16.mxu1 %v7400_v58 }
 0xbbc   :  { %7403 = vmatpush3.bf16.msra.mxu1 %v7400_v58  ;;  %v4823_v58 = vld [vmem:[#allocation11 + $0x98] sm:$0xff] }
 0xbbf   :  { %6932 = vmatmul.mubr.msk.f32.vlgmr.msra.gmra.mrb[10].mxu1 %vm351_vm2, %v9509_v28 }
 0xbc0   :  { %6938 = vmatprep.mubr.msk.f32.mxu1 %vm433_vm7, %v9439_v23 }
 0xc92   :  { %v6933_v62 = vpop.f32.mrb[10].mxu1 }
 0xc93   :  { %v3690_v38 = vpop.f32.mrb[11].mxu1 }
 0xc94   :  { %v7404_v2 = vpack.c.bf16 %v6933_v62, %v3690_v38  ;;  %v7492_v62 = vpack.c.bf16 %v4823_v58, %v4822_v12  ;;  %v4977_v38 = vld [vmem:[#allocation11 + $0xa0] sm:$0xff]  ;;  %v5767_v12 = vld [vmem:[#allocation14 + $0x58] sm:$0xff] }
 0xc95   :  { %v5768_v58 = vld [vmem:[#allocation14 + $0xc0] sm:$0xff] }
 0xc96   :  { %7405 = vmatprep.subr.bf16.mxu1 %v7404_v2 }
 0xc97   :  { %7407 = vmatpush3.bf16.msra.mxu1 %v7404_v2  ;;  %v4978_v2 = vld [vmem:[#allocation11 + $0xa8] sm:$0xff] }
 0xc98   :  { %7417 = vmatprep.subr.bf16.mxu1 %v7416_v60  ;;  %v7500_v53 = vpack.c.bf16 %v4978_v2, %v4977_v38  ;;  %v5770_v2 = vld [vmem:[#allocation14 + $0xd0] sm:$0xff] }
 0xc9a   :  { %6939 = vmatmul.mubr.msk.f32.vlgmr.msra.gmra.mrb[6].mxu1 %vm433_vm7, %v9453_v29 }
 0xc9b   :  { %7419 = vmatpush3.bf16.msra.mxu1 %v7416_v60  ;;  %6956 = vmatprep.mubr.msk.f32.mxu1 %vm433_vm7, %v9460_v41 }
 0xc9c   :  { %7429 = vmatprep.subr.bf16.mxu1 %v7428_v21 }
 0xca2   :  { %6957 = vmatmul.mubr.msk.f32.vlgmr.msra.gmra.mrb[6].mxu1 %vm433_vm7, %v9489_v25 }
 0xca3   :  { %7431 = vmatpush3.bf16.msra.mxu1 %v7428_v21  ;;  %6974 = vmatprep.mubr.msk.f32.mxu1 %vm433_vm7, %v9492_v14  ;;  %v4663_v21 = vld [vmem:[#allocation11 + $0x60] sm:$0xff] }
 0xca4   :  { %7441 = vmatprep.subr.bf16.mxu1 %v7440_v26  ;;  %v7476_v37 = vpack.c.bf16 %v4664_v63, %v4663_v21  ;;  %v5618_v21 = vld [vmem:[#allocation14 + $0xa0] sm:$0xff]  ;;  %v5619_v63 = vld [vmem:[#allocation14 + $0xa8] sm:$0xff] }
 0xcaa   :  { %6975 = vmatmul.mubr.msk.f32.vlgmr.msra.gmra.mrb[6].mxu1 %vm433_vm7, %v9500_v42 }
 0xcab   :  { %7443 = vmatpush3.bf16.msra.mxu1 %v7440_v26  ;;  %v7504_v26 = vpack.c.bf16 %v4980_v48, %v4979_v1 }
 0xcac   :  { %7445 = vmatprep.subr.bf16.mxu1 %v7444_v44 }
 0xcaf   :  { %7447 = vmatpush3.bf16.msra.mxu1 %v7444_v44  ;;  %v5294_v44 = vld [vmem:[#allocation11 + $0xf8] sm:$0xff] }
 0xcb0   :  { %7453 = vmatprep.subr.bf16.mxu1 %v7452_v18  ;;  %v7528_v7 = vpack.c.bf16 %v5294_v44, %v5293_v49 }
 0xd7d   :  { %v6976_v5 = vpop.f32.mrb[6].mxu1 }
 0xd7e   :  { %v7586_v36 = vadd.f32 %v6976_v5, %v6266_v50  ;;  %v4079_v54 = vpop.f32.mrb[7].mxu1 }
 0xd7f   :  { %v7587_v52 = vadd.f32 %v6266_v50, %v4079_v54  ;;  %v5461_v50 = vld [vmem:[#allocation14 + $0x18] sm:$0xff]  ;;  %v5462_v54 = vld [vmem:[#allocation14 + $0x80] sm:$0xff] }
 0xd80   :  { %v4094_v55 = vmul.f32 1.442695, %v7586_v36  ;;  %vm4091_vm0 = vcmp.gt.f32.partialorder %v7586_v36, 0.0 }
 0xd81   :  { %v4092_v22 = vmul.f32 1.442695, %v7587_v52  ;;  %vm4090_vm15 = vcmp.gt.f32.partialorder %v7587_v52, 0.0 }
 0xd82   :  { %7768 = vpow2.f32 %v4094_v55 }
 0xd83   :  { %7770 = vpow2.f32 %v4092_v22  ;;  %v5464_v22 = vld [vmem:[#allocation14 + $0x90] sm:$0xff] }
 0xd8c   :  { %v7769_v24 = vpop.eup %7768 }
 0xd8d   :  { %v7771_v35 = vpop.eup %7770  ;;  %v6302_v30 = vadd.f32 -1.0, %v7769_v24  ;;  %v5465_v24 = vld [vmem:[#allocation14 + $0x98] sm:$0xff] }
 0xd8e   :  { %v6301_v57 = vadd.f32 -1.0, %v7771_v35  ;;  %v7546_v35 = vpack.c.bf16 %v5465_v24, %v5464_v22 }
 0xd8f   :  { %v9584_v19 = vsel %vm4091_vm0, %v7586_v36, %v6302_v30  ;;  %v8065_v36 = vmov 0.0   ;;  %v5614_v30 = vld [vmem:[#allocation14 + $0x20] sm:$0xff] }
 0xd90   :  { %v9582_v60 = vsel %vm4090_vm15, %v7587_v52, %v6301_v57  ;;  %v5463_v52 = vld [vmem:[#allocation14 + $0x88] sm:$0xff]  ;;  %v7549_v51 = vpack.c.bf16 %v5615_v27, %v5614_v30  ;;  %v5616_v57 = vld [vmem:[#allocation14 + $0x30] sm:$0xff] }
 0xd91   :  { %6985 = vmatprep.mubr.msk.f32.mxu0 %vm351_vm2, %v9582_v60  ;;  %6996 = vmatprep.mubr.msk.f32.mxu1 %vm351_vm2, %v9582_v60  ;;  %v7543_v55 = vpack.c.bf16 %v5463_v52, %v5462_v54 }
 0xd92   :  { %6986 = vmatmul.mubr.msk.f32.vlgmr.msra.gmra.mrb[28].mxu0 %vm351_vm2, %v9584_v19  ;;  %6997 = vmatmul.mubr.msk.f32.vlgmr.msra.gmra.mrb[12].mxu1 %vm351_vm2, %v9584_v19 }
 0xd93   :  { %7455 = vmatpush3.bf16.msra.mxu1 %v7452_v18  ;;  %7003 = vmatprep.mubr.msk.f32.mxu0 %vm433_vm7, %v9012_v39  ;;  %v7488_v39 = vpack.c.bf16 %v4821_v3, %v4820_v17  ;;  %v5460_v18 = vld [vmem:[#allocation14 + $0x10] sm:$0xff]  ;;  %v5765_v17 = vld [vmem:[#allocation14 + $0x48] sm:$0xff] }
 0xd94   :  { %7014 = vmatprep.mubr.msk.f32.mxu1 %vm351_vm2, %v9582_v60  ;;  %7457 = vmatprep.subr.bf16.mxu1 %v7456_v46  ;;  %v7540_v5 = vpack.c.bf16 %v5461_v50, %v5460_v18 }
 0xd97   :  { %7459 = vmatpush3.bf16.msra.mxu1 %v7456_v46  ;;  %v5617_v46 = vld [vmem:[#allocation14 + $0x38] sm:$0xff] }
 0xd98   :  { %7477 = vmatprep.subr.bf16.mxu1 %v7476_v37 }
 0xd9a   :  { %7015 = vmatmul.mubr.msk.f32.vlgmr.msra.gmra.mrb[14].mxu1 %vm351_vm2, %v9584_v19 }
 0xd9b   :  { %7479 = vmatpush3.bf16.msra.mxu1 %v7476_v37  ;;  %7050 = vmatprep.mubr.msk.f32.mxu1 %vm351_vm2, %v9582_v60  ;;  %v7555_v37 = vpack.c.bf16 %v5619_v63, %v5618_v21 }
 0xd9c   :  { %7481 = vmatprep.subr.bf16.mxu1 %v7480_v32 }
 0xd9f   :  { %7483 = vmatpush3.bf16.msra.mxu1 %v7480_v32  ;;  %v5764_v32 = vld [vmem:[#allocation14 + $0x40] sm:$0xff] }
 0xda0   :  { %7489 = vmatprep.subr.bf16.mxu1 %v7488_v39  ;;  %v7561_v3 = vpack.c.bf16 %v5765_v17, %v5764_v32  ;;  %v5919_v32 = vld [vmem:[#allocation14 + $0xe8] sm:$0xff] }
 0xda2   :  { %7051 = vmatmul.mubr.msk.f32.vlgmr.msra.gmra.mrb[16].mxu1 %vm351_vm2, %v9584_v19 }
 0xda3   :  { %7491 = vmatpush3.bf16.msra.mxu1 %v7488_v39  ;;  %7068 = vmatprep.mubr.msk.f32.mxu1 %vm351_vm2, %v9582_v60  ;;  %v5766_v39 = vld [vmem:[#allocation14 + $0x50] sm:$0xff] }
 0xda4   :  { %7493 = vmatprep.subr.bf16.mxu1 %v7492_v62 }
 0xda7   :  { %7495 = vmatpush3.bf16.msra.mxu1 %v7492_v62  ;;  %v5769_v62 = vld [vmem:[#allocation14 + $0xc8] sm:$0xff] }
 0xda8   :  { %7501 = vmatprep.subr.bf16.mxu1 %v7500_v53  ;;  %v7567_v38 = vpack.c.bf16 %v5769_v62, %v5768_v58 }
 0xdaa   :  { %7069 = vmatmul.mubr.msk.f32.vlgmr.msra.gmra.mrb[18].mxu1 %vm351_vm2, %v9584_v19 }
 0xdab   :  { %7503 = vmatpush3.bf16.msra.mxu1 %v7500_v53  ;;  %7086 = vmatprep.mubr.msk.f32.mxu1 %vm351_vm2, %v9582_v60  ;;  %v5771_v53 = vld [vmem:[#allocation14 + $0xd8] sm:$0xff] }
 0xdac   :  { %7505 = vmatprep.subr.bf16.mxu1 %v7504_v26 }
 0xdaf   :  { %7507 = vmatpush3.bf16.msra.mxu1 %v7504_v26 }
 0xdb0   :  { %7525 = vmatprep.subr.bf16.mxu1 %v7524_v16 }
 0xdb2   :  { %7087 = vmatmul.mubr.msk.f32.vlgmr.msra.gmra.mrb[20].mxu1 %vm351_vm2, %v9584_v19 }
 0xdb3   :  { %7527 = vmatpush3.bf16.msra.mxu1 %v7524_v16  ;;  %7122 = vmatprep.mubr.msk.f32.mxu1 %vm351_vm2, %v9582_v60 }
 0xdb4   :  { %7529 = vmatprep.subr.bf16.mxu1 %v7528_v7 }
 0xdb7   :  { %7531 = vmatpush3.bf16.msra.mxu1 %v7528_v7  ;;  %v7464_v7 = vpack.c.bf16 %v4507_v59, %v4506_v45  ;;  %v6349_v45 = vld [vmem:[#allocation17] ss:$0 sm:$0xff] }
 0xdb8   :  { %7536 = vmatprep.subr.bf16.mxu1 %v8063_v47 }
 0xdba   :  { %7123 = vmatmul.mubr.msk.f32.vlgmr.msra.gmra.mrb[22].mxu1 %vm351_vm2, %v9584_v19 }
 0xdbb   :  { %7538 = vmatpush3.bf16.msra.mxu1 %v7537_v6  ;;  %7140 = vmatprep.mubr.msk.f32.mxu1 %vm8064_vm1, %v8065_v36  ;;  %v7468_v6 = vpack.c.bf16 %v4509_v13, %v4508_v31 }
 0xdbc   :  { %7539 = vmatprep.subr.bf16.mxu1 %v8063_v47 }
 0xdbf   :  { %7541 = vmatpush3.bf16.msra.mxu1 %v7540_v5 }
 0xdc0   :  { %7542 = vmatprep.subr.bf16.mxu1 %v8063_v47 }
 0xdc2   :  { %7141 = vmatmul.mubr.msk.f32.vlgmr.msra.gmra.mrb[24].mxu1 %vm351_vm2, %v8981_v9  ;;  %v7552_v9 = vpack.c.bf16 %v5617_v46, %v5616_v57  ;;  %v5135_v57 = vld [vmem:[#allocation11 + $0xc8] sm:$0xff] }
 0xdc3   :  { %7544 = vmatpush3.bf16.msra.mxu1 %v7543_v55  ;;  %7151 = vmatprep.mubr.msk.f32.mxu1 %vm8064_vm1, %v8065_v36 }
 0xdc4   :  { %7545 = vmatprep.subr.bf16.mxu1 %v8063_v47 }
 0xdc7   :  { %7547 = vmatpush3.bf16.msra.mxu1 %v7546_v35 }
 0xdc8   :  { %7548 = vmatprep.subr.bf16.mxu1 %v8063_v47 }
 0xdca   :  { %7152 = vmatmul.mubr.msk.f32.vlgmr.msra.gmra.mrb[24].mxu1 %vm351_vm2, %v8983_v4  ;;  %v7558_v4 = vpack.c.bf16 %v5621_v0, %v5620_v34 }
 0xdcb   :  { %7550 = vmatpush3.bf16.msra.mxu1 %v7549_v51  ;;  %7162 = vmatprep.mubr.msk.f32.mxu1 %vm8064_vm1, %v8065_v36 }
 0xdcc   :  { %7551 = vmatprep.subr.bf16.mxu1 %v8063_v47 }
 0xdcf   :  { %7553 = vmatpush3.bf16.msra.mxu1 %v7552_v9 }
 0xdd0   :  { %7554 = vmatprep.subr.bf16.mxu1 %v8063_v47 }
 0xdd2   :  { %7163 = vmatmul.mubr.msk.f32.vlgmr.msra.gmra.mrb[24].mxu1 %vm351_vm2, %v9507_v33  ;;  %v7564_v33 = vpack.c.bf16 %v5767_v12, %v5766_v39  ;;  %v5920_v12 = vld [vmem:[#allocation14 + $0xf0] sm:$0xff] }
 0xdd3   :  { %7556 = vmatpush3.bf16.msra.mxu1 %v7555_v37  ;;  %7173 = vmatprep.mubr.msk.f32.mxu1 %vm8064_vm1, %v8065_v36 }
 0xdd4   :  { %7557 = vmatprep.subr.bf16.mxu1 %v8063_v47 }
 0xdd7   :  { %7559 = vmatpush3.bf16.msra.mxu1 %v7558_v4  ;;  %v5918_v4 = vld [vmem:[#allocation14 + $0xe0] sm:$0xff] }
 0xdd8   :  { %7560 = vmatprep.subr.bf16.mxu1 %v8063_v47  ;;  %v7579_v39 = vpack.c.bf16 %v5919_v32, %v5918_v4 }
 0xdda   :  { %7174 = vmatmul.mubr.msk.f32.vlgmr.msra.gmra.mrb[24].mxu1 %vm351_vm2, %v9509_v28  ;;  %v7570_v28 = vpack.c.bf16 %v5771_v53, %v5770_v2 }
 0xddb   :  { %7562 = vmatpush3.bf16.msra.mxu1 %v7561_v3  ;;  %7184 = vmatprep.mubr.msk.f32.mxu1 %vm8064_vm1, %v8065_v36 }
 0xddc   :  { %7563 = vmatprep.subr.bf16.mxu1 %v8063_v47 }
 0xddf   :  { %7565 = vmatpush3.bf16.msra.mxu1 %v7564_v33  ;;  %v5921_v33 = vld [vmem:[#allocation14 + $0xf8] sm:$0xff] }
 0xde0   :  { %7566 = vmatprep.subr.bf16.mxu1 %v8063_v47 }
 0xde2   :  { %7185 = vmatmul.mubr.msk.f32.vlgmr.msra.gmra.mrb[24].mxu1 %vm351_vm2, %v9582_v60 }
 0xde3   :  { %7568 = vmatpush3.bf16.msra.mxu1 %v7567_v38  ;;  %7195 = vmatprep.mubr.msk.f32.mxu1 %vm8064_vm1, %v8065_v36  ;;  %v7582_v38 = vpack.c.bf16 %v5921_v33, %v5920_v12 }
 0xde4   :  { %7569 = vmatprep.subr.bf16.mxu1 %v8063_v47 }
 0xde7   :  { %7571 = vmatpush3.bf16.msra.mxu1 %v7570_v28  ;;  %v6341_v28 = vld [vmem:[#allocation15] ss:$0 sm:$0xff] }
 0xde8   :  { %7572 = vmatprep.subr.bf16.mxu1 %v8063_v47 }
 0xdea   :  { %7196 = vmatmul.mubr.msk.f32.vlgmr.msra.gmra.mrb[24].mxu1 %vm351_vm2, %v9584_v19 }
 0xdeb   :  { %7206 = vmatprep.mubr.msk.f32.mxu1 %vm8064_vm1, %v8065_v36 }
 0xe65   :  { %v6998_v1 = vpop.f32.mrb[12].mxu1 }
 0xe66   :  { %v4262_v48 = vpop.f32.mrb[13].mxu1 }
 0xe67   :  { %v7448_v26 = vpack.c.bf16 %v6998_v1, %v4262_v48 }
 0xe69   :  { %7449 = vmatprep.subr.bf16.mxu0 %v7448_v26 }
 0xe6a   :  { %7451 = vmatpush3.bf16.msra.mxu0 %v7448_v26 }
 0xe6d   :  { %v7016_v16 = vpop.f32.mrb[14].mxu1  ;;  %7004 = vmatmul.mubr.msk.f32.vlgmr.msra.gmra.mrb[28].mxu0 %vm433_vm7, %v9072_v61 }
 0xe6e   :  { %v4419_v49 = vpop.f32.mrb[15].mxu1  ;;  %7021 = vmatprep.mubr.msk.f32.mxu0 %vm433_vm7, %v9081_v15 }
 0xe6f   :  { %v7460_v44 = vpack.c.bf16 %v7016_v16, %v4419_v49 }
 0xe71   :  { %7461 = vmatprep.subr.bf16.mxu0 %v7460_v44 }
 0xe72   :  { %7463 = vmatpush3.bf16.msra.mxu0 %v7460_v44 }
 0xe73   :  { %7465 = vmatprep.subr.bf16.mxu0 %v7464_v7 }
 0xe75   :  { %v7052_v18 = vpop.f32.mrb[16].mxu1  ;;  %7022 = vmatmul.mubr.msk.f32.vlgmr.msra.gmra.mrb[28].mxu0 %vm433_vm7, %v9874_v20 }
 0xe76   :  { %7467 = vmatpush3.bf16.msra.mxu0 %v7464_v7  ;;  %v4733_v50 = vpop.f32.mrb[17].mxu1  ;;  %7032 = vmatprep.mubr.msk.f32.mxu0 %vm351_vm2, %v9582_v60 }
 0xe77   :  { %v7484_v61 = vpack.c.bf16 %v7052_v18, %v4733_v50  ;;  %7469 = vmatprep.subr.bf16.mxu0 %v7468_v6 }
 0xe7a   :  { %7471 = vmatpush3.bf16.msra.mxu0 %v7468_v6 }
 0xe7d   :  { %7033 = vmatmul.mubr.msk.f32.vlgmr.msra.gmra.mrb[30].mxu0 %vm351_vm2, %v9584_v19  ;;  %v7070_v15 = vpop.f32.mrb[18].mxu1 }
 0xe7e   :  { %7039 = vmatprep.mubr.msk.f32.mxu0 %vm433_vm7, %v9875_v8  ;;  %v4890_v5 = vpop.f32.mrb[19].mxu1  ;;  %v5134_v8 = vld [vmem:[#allocation11 + $0xc0] sm:$0xff] }
 0xe7f   :  { %v7496_v54 = vpack.c.bf16 %v7070_v15, %v4890_v5  ;;  %v7512_v46 = vpack.c.bf16 %v5135_v57, %v5134_v8 }
 0xe85   :  { %v7088_v52 = vpop.f32.mrb[20].mxu1 }
 0xe86   :  { %v5047_v55 = vpop.f32.mrb[21].mxu1 }
 0xe87   :  { %v7508_v20 = vpack.c.bf16 %v7088_v52, %v5047_v55 }
 0xe8d   :  { %v7124_v22 = vpop.f32.mrb[22].mxu1 }
 0xe8e   :  { %v5361_v24 = vpop.f32.mrb[23].mxu1 }
 0xe8f   :  { %v7532_v35 = vpack.c.bf16 %v7124_v22, %v5361_v24 }
 0xf50   :  { %v7034_v30 = vpop.f32.mrb[30].mxu0 }
 0xf51   :  { %v4576_v27 = vpop.f32.mrb[31].mxu0 }
 0xf52   :  { %v7472_v51 = vpack.c.bf16 %v7034_v30, %v4576_v27 }
 0xf54   :  { %7473 = vmatprep.subr.bf16.mxu0 %v7472_v51 }
 0xf55   :  { %7475 = vmatpush3.bf16.msra.mxu0 %v7472_v51 }
 0xf56   :  { %7485 = vmatprep.subr.bf16.mxu0 %v7484_v61 }
 0xf58   :  { %7040 = vmatmul.mubr.msk.f32.vlgmr.msra.gmra.mrb[28].mxu0 %vm433_vm7, %v9876_v10  ;;  %v5136_v10 = vld [vmem:[#allocation11 + $0xd0] sm:$0xff] }
 0xf59   :  { %7487 = vmatpush3.bf16.msra.mxu0 %v7484_v61  ;;  %7057 = vmatprep.mubr.msk.f32.mxu0 %vm433_vm7, %v9877_v40  ;;  %v5137_v40 = vld [vmem:[#allocation11 + $0xd8] sm:$0xff] }
 0xf5a   :  { %7497 = vmatprep.subr.bf16.mxu0 %v7496_v54  ;;  %v7516_v9 = vpack.c.bf16 %v5137_v40, %v5136_v10 }
 0xf60   :  { %7058 = vmatmul.mubr.msk.f32.vlgmr.msra.gmra.mrb[28].mxu0 %vm433_vm7, %v9418_v56 }
 0xf61   :  { %7499 = vmatpush3.bf16.msra.mxu0 %v7496_v54  ;;  %7075 = vmatprep.mubr.msk.f32.mxu0 %vm433_vm7, %v9421_v43 }
 0xf62   :  { %7509 = vmatprep.subr.bf16.mxu0 %v7508_v20 }
 0xf68   :  { %7076 = vmatmul.mubr.msk.f32.vlgmr.msra.gmra.mrb[28].mxu0 %vm433_vm7, %v9436_v11 }
 0xf69   :  { %7511 = vmatpush3.bf16.msra.mxu0 %v7508_v20  ;;  %7093 = vmatprep.mubr.msk.f32.mxu0 %vm433_vm7, %v9439_v23  ;;  %v5914_v23 = vld [vmem:[#allocation14 + $0x60] sm:$0xff] }
 0xf6a   :  { %7513 = vmatprep.subr.bf16.mxu0 %v7512_v46 }
 0xf70   :  { %7094 = vmatmul.mubr.msk.f32.vlgmr.msra.gmra.mrb[28].mxu0 %vm433_vm7, %v9453_v29  ;;  %v5915_v29 = vld [vmem:[#allocation14 + $0x68] sm:$0xff] }
 0xf71   :  { %7515 = vmatpush3.bf16.msra.mxu0 %v7512_v46  ;;  %7104 = vmatprep.mubr.msk.f32.mxu0 %vm351_vm2, %v9582_v60  ;;  %v5916_v60 = vld [vmem:[#allocation14 + $0x70] sm:$0xff] }
 0xf72   :  { %7517 = vmatprep.subr.bf16.mxu0 %v7516_v9 }
 0xf75   :  { %7519 = vmatpush3.bf16.msra.mxu0 %v7516_v9 }
 0xf78   :  { %7105 = vmatmul.mubr.msk.f32.vlgmr.msra.gmra.mrb[32].mxu0 %vm351_vm2, %v9584_v19  ;;  %v5917_v19 = vld [vmem:[#allocation14 + $0x78] sm:$0xff] }
 0xf79   :  { %7111 = vmatprep.mubr.msk.f32.mxu0 %vm433_vm7, %v9460_v41  ;;  %v7573_v41 = vpack.c.bf16 %v5915_v29, %v5914_v23  ;;  %v7576_v21 = vpack.c.bf16 %v5917_v19, %v5916_v60 }
 0xf7b   :  { %7574 = vmatpush3.bf16.msra.mxu1 %v7573_v41 }
 0xf7c   :  { %7575 = vmatprep.subr.bf16.mxu1 %v8063_v47 }
 0xf7f   :  { %7577 = vmatpush3.bf16.msra.mxu1 %v7576_v21 }
 0xf80   :  { %7578 = vmatprep.subr.bf16.mxu1 %v8063_v47 }
0x104b   :  { %v7106_v56 = vpop.f32.mrb[32].mxu0 }
0x104c   :  { %v5204_v43 = vpop.f32.mrb[33].mxu0 }
0x104d   :  { %v7520_v11 = vpack.c.bf16 %v7106_v56, %v5204_v43 }
0x104f   :  { %7521 = vmatprep.subr.bf16.mxu0 %v7520_v11 }
0x1050   :  { %7523 = vmatpush3.bf16.msra.mxu0 %v7520_v11 }
0x1051   :  { %7533 = vmatprep.subr.bf16.mxu0 %v7532_v35 }
0x1053   :  { %7112 = vmatmul.mubr.msk.f32.vlgmr.msra.gmra.mrb[28].mxu0 %vm433_vm7, %v9489_v25  ;;  %v6303_v25 = vld [vmem:[%s9879_s7] ss:$0 sm:$0xff] }
0x1054   :  { %7535 = vmatpush3.bf16.msra.mxu0 %v7532_v35  ;;  %7129 = vmatprep.mubr.msk.f32.mxu0 %vm433_vm7, %v9492_v14 }
0x105b   :  { %7130 = vmatmul.mubr.msk.f32.vlgmr.msra.gmra.mrb[28].mxu0 %vm433_vm7, %v9500_v42 }
0x112e   :  { %v7131_v14 = vpop.f32.mrb[28].mxu0 }
0x112f   :  { %v5436_v63 = vpop.f32.mrb[29].mxu0  ;;  %v7588_v37 = vadd.f32 %v7131_v14, %v6303_v25 }
0x1130   :  { %v7589_v42 = vadd.f32 %v6303_v25, %v5436_v63 }
0x1131   :  { %v5451_v0 = vmul.f32 1.442695, %v7588_v37  ;;  %vm5448_vm4 = vcmp.gt.f32.partialorder %v7588_v37, 0.0 }
0x1132   :  { %v5449_v34 = vmul.f32 1.442695, %v7589_v42  ;;  %vm5447_vm7 = vcmp.gt.f32.partialorder %v7589_v42, 0.0 }
0x1134   :  { %7772 = vpow2.f32 %v5449_v34 }
0x1135   :  { %7774 = vpow2.f32 %v5451_v0 }
0x113e   :  { %v7773_v17 = vpop.eup %7772 }
0x113f   :  { %v6338_v3 = vadd.f32 -1.0, %v7773_v17  ;;  %v7775_v62 = vpop.eup %7774 }
0x1140   :  { %v6339_v2 = vadd.f32 -1.0, %v7775_v62 }
0x1141   :  { %v5455_v58 = vsel %vm5447_vm7, %v7589_v42, %v6338_v3 }
0x1142   :  { %7207 = vmatmul.mubr.msk.f32.vlgmr.msra.gmra.mrb[24].mxu1 %vm351_vm2, %v5455_v58  ;;  %v5456_v53 = vsel %vm5448_vm4, %v7588_v37, %v6339_v2 }
0x1143   :  { %7580 = vmatpush3.bf16.msra.mxu1 %v7579_v39  ;;  %7217 = vmatprep.mubr.msk.f32.mxu1 %vm8064_vm1, %v8065_v36  ;;  %v6082_v36 = vstv %s9880_s2 }
0x1144   :  { %7581 = vmatprep.subr.bf16.mxu1 %v8063_v47 }
0x1147   :  { %7583 = vmatpush3.bf16.msra.mxu1 %v7582_v38 }
0x114a   :  { %7218 = vmatmul.mubr.msk.f32.vlgmr.msra.gmra.mrb[24].mxu1 %vm351_vm2, %v5456_v53 }
0x121d   :  { %v6065_v1 = vpop.f32.mrb[24].mxu1 }
0x121e   :  { %v7590_v48 = vadd.f32 %v6341_v28, %v6065_v1  ;;  %v7219_v26 = vpop.f32.mrb[25].mxu1 }
0x1220   :  { %v6070_v59 = vmax.f32 %v7590_v48, 0.0 }
0x1222   :  { %v6078_v16 = vmul.f32 %v6349_v45, %v6070_v59 }
0x1224   :  { %6079 = vadd.xlane.f32.xlu0 %v6078_v16 }
0x12b1   :  { %v6080_v49 = vpop.xlane.xlu0 %6079 }
0x12b2   :  { %v6083_v47 = vadd.f32 %v6082_v36, %v6080_v49 }
0x12b4   :  { %v6084_v44 = vsub.f32 0.0, %v6083_v47 }
0x12b6   :  { %v6085_v7 = vmul.f32 1.442695, %v6084_v44 }
0x12b8   :  { %7776 = vpow2.f32 %v6085_v7 }
0x12c2   :  { %v7777_v31 = vpop.eup %7776 }
0x12c3   :  { %v6087_v13 = vadd.f32 1.0, %v7777_v31 }
0x12c5   :  { %7778 = vrcp.f32 %v6087_v13 }
0x12cf   :  { %v7779_v6 = vpop.eup %7778 }
0x12d0   :  { %6090 = vst [vmem:[%s9881_s21] sm:$0xff] %v7779_v6 }
0x12d1   :  { %6095 = vsyncpa [#allocation4], 1 }
0x12d2   :  { %6096 = vsyncpa [#allocation7], 1 }
0x12d3   :  { %6097 = vsyncpa [#allocation10], 1 }
0x12d4   :  { %6098 = vsyncpa [#allocation13], 1 }
0x12d5   :  { %6099 = vsyncpa [#allocation16], 1 }
0x12d6   :  { %6100 = vsyncpa [#allocation5], 1 }
0x12d7   :  { %6101 = vsyncpa [#allocation20], 1 }

</bundles_post_ra>
